<compile_context>
chip_gen: v7x
topology: tpu7x:2x2x1
jax: 0.10.0
libtpu: 0.0.40
codegen_flags: <defaults>
</compile_context>

<pallas_src>
import functools
import math

import jax
import jax.numpy as jnp
from jax.experimental import pallas as pl
from jax.experimental.pallas import tpu as pltpu


def _round_up(v, m):
    return (v + m - 1) // m * m


def kan_linear_kernel(x_ref, grid_t_ref, recip_ref, w_ref, o_ref, feat_ref, *,
                      spline_order, strip):
    """Grid = (batch_tiles, out_tiles).

    x_ref:      (TB, IN_P)              input rows (zero-padded features)
    grid_t_ref: (G, IN_P)               knots, feature-major along lanes
    recip_ref:  (spline_order*G, IN_P)  1/(g[j+k]-g[j]) per recursion level k
    w_ref:      ((K+1)*IN_P, OUT_T)     [base_wt ; scaled spline slabs], one OUT tile
    o_ref:      (TB, OUT_T)
    feat_ref:   (TB, (K+1)*IN_P)        VMEM scratch: [silu(x), bases_0..K-1];
                                        persists across OUT tiles.
    """
    tb, in_p = x_ref.shape
    num_knots = grid_t_ref.shape[0]

    # Build the stacked feature slab once per batch tile (at out-tile 0); it is
    # reused by every OUT tile of the same batch tile.
    @pl.when(pl.program_id(1) == 0)
    def _build_features():
        knots = grid_t_ref[...]       # (G, IN_P)       -- loaded once, sliced in-register
        recips = recip_ref[...]       # (SO*G, IN_P)    -- loaded once

        # Process the batch tile in small sublane strips so per-strip
        # intermediates (d_j, bases) stay within the 64-vreg register file.
        @pl.loop(0, tb // strip)
        def _(s):
            r0 = pl.multiple_of(s * strip, strip)
            xs = x_ref[pl.ds(r0, strip), :]                       # (strip, IN_P)

            # base path: SiLU(x) -> chunk 0
            feat_ref[pl.ds(r0, strip), 0:in_p] = (
                xs * jax.nn.sigmoid(xs)).astype(feat_ref.dtype)

            # d_j = x - g_j, reused across every recursion level.
            d = [xs - knots[j:j + 1, :] for j in range(num_knots)]

            # order-0 bases: g_j <= x < g_{j+1}
            bases = [((d[j] >= 0.0) & (d[j + 1] < 0.0)).astype(jnp.float32)
                     for j in range(num_knots - 1)]

            # Cox-de Boor in u / (1-u) form with precomputed reciprocals:
            #   u_j   = (x - g_j) / (g_{j+k} - g_j)
            #   B_j^k = u_j * B_j^{k-1} + (1 - u_{j+1}) * B_{j+1}^{k-1}
            for k in range(1, spline_order + 1):
                row0 = (k - 1) * num_knots
                n = len(bases)                                    # == G - k
                u = [d[j] * recips[row0 + j:row0 + j + 1, :] for j in range(n)]
                bases = [u[j] * bases[j] + (1.0 - u[j + 1]) * bases[j + 1]
                         for j in range(n - 1)]

            # stage spline bases lane-dense into chunks 1..K
            for idx, b in enumerate(bases):
                feat_ref[pl.ds(r0, strip),
                         (idx + 1) * in_p:(idx + 2) * in_p] = b.astype(feat_ref.dtype)

    # Single fused MXU contraction over the (K+1)*IN_P axis for this OUT tile.
    # TODO(synk): on v5e (4x128^2 MXU, single vst slot) accumulating K+1 dots
    # straight from registers (skipping the feat staging) can be faster.
    o_ref[...] = jnp.dot(feat_ref[...], w_ref[...],
                         preferred_element_type=jnp.float32).astype(o_ref.dtype)


def kan_linear_forward(x, grid, base_weight, spline_weight, spline_scaler, *,
                       spline_order, block_batch=256, block_out=256,
                       matmul_dtype=jnp.bfloat16, strip=8):
    """x: (B, IN) f32.  Returns (B, OUT) f32."""
    if x.ndim != 2:
        x = x.reshape(x.shape[0], -1)
    B, IN = x.shape
    OUT = base_weight.shape[0]
    K = spline_weight.shape[-1]               # grid_size + spline_order
    G = grid.shape[-1]                        # grid_size + 2*spline_order + 1

    IN_P = _round_up(IN, 128)                 # lane-dense feature chunks
    OUT_P = _round_up(OUT, 128)               # lane-dense output (unmasked vst)
    # OUT tile: multiple of 128 dividing OUT_P (256 fills the v6e/v7x MXU N dim).
    OUT_T = math.gcd(OUT_P, _round_up(block_out, 128))
    n_out = OUT_P // OUT_T

    # Batch tile: multiple of `strip`; prefer >=2 tiles so the "parallel" batch
    # axis shards across v7x's two TensorCores, without over-padding B.
    strip = max(8, _round_up(strip, 8))
    n_bt = max(2, pl.cdiv(B, block_batch))
    TB = min(_round_up(block_batch, strip), _round_up(pl.cdiv(B, n_bt), strip))
    TB = max(TB, strip)
    B_P = _round_up(B, TB)
    n_batch = B_P // TB

    # ---------------- parameter / layout glue (plain JAX) --------------------
    x_p = jnp.pad(x.astype(jnp.float32), ((0, B_P - B), (0, IN_P - IN)))

    # Edge-replicate the per-feature grid into the feature padding so padded
    # lanes keep a strictly increasing knot vector (finite reciprocals).
    grid_p = jnp.pad(grid.astype(jnp.float32), ((0, IN_P - IN), (0, 0)), mode="edge")
    grid_t = grid_p.T                                                # (G, IN_P)

    # 1/(g[j+k]-g[j]) for every recursion level k.
    # TODO(synk): after KAN.update_grid (data-quantile grids) repeated knots are
    # possible; guard the reciprocal with jnp.where if that path is in scope.
    recips = []
    for k in range(1, spline_order + 1):
        diff = grid_p[:, k:] - grid_p[:, :-k]                        # (IN_P, G-k) > 0
        recips.append(jnp.pad(1.0 / diff, ((0, 0), (0, k))).T)       # (G, IN_P)
    recip = jnp.concatenate(recips, axis=0)                          # (SO*G, IN_P)

    # Fused, pre-scaled, lane-dense weight slab: rows = [base ; k=0 ; ... ; K-1]
    base_slab = jnp.pad(base_weight.T, ((0, IN_P - IN), (0, OUT_P - OUT)))
    scaled_spline = spline_weight * spline_scaler[:, :, None]        # fold scaler here
    spline_kio = jnp.transpose(scaled_spline, (2, 1, 0))             # (K, IN, OUT)
    spline_slab = jnp.pad(spline_kio, ((0, 0), (0, IN_P - IN), (0, OUT_P - OUT)))
    spline_slab = spline_slab.reshape(K * IN_P, OUT_P)
    w_slab = jnp.concatenate([base_slab, spline_slab], axis=0).astype(matmul_dtype)

    # Generation-aware VMEM limit (v7x: 64 MiB/TC, v5e/v6e: 128 MiB) with headroom.
    try:
        vmem_limit = int(pltpu.get_tpu_info().vmem_capacity_bytes * 0.8)
    except Exception:
        vmem_limit = None

    kernel = functools.partial(kan_linear_kernel, spline_order=spline_order,
                               strip=strip)

    def run(single_buffer_constants):
        def const_spec(shape):
            if single_buffer_constants:
                return pl.BlockSpec(shape, lambda i, j: (0, 0),
                                    pipeline_mode=pl.Buffered(1))
            return pl.BlockSpec(shape, lambda i, j: (0, 0))

        w_kwargs = {}
        if single_buffer_constants and n_out == 1:
            w_kwargs = dict(pipeline_mode=pl.Buffered(1))   # constant index map
        w_spec = pl.BlockSpec(((K + 1) * IN_P, OUT_T), lambda i, j: (0, j),
                              **w_kwargs)

        cp_kwargs = dict(dimension_semantics=("parallel", "arbitrary"))
        if vmem_limit is not None:
            cp_kwargs["vmem_limit_bytes"] = vmem_limit

        call = pl.pallas_call(
            kernel,
            out_shape=jax.ShapeDtypeStruct((B_P, OUT_P), jnp.float32),
            grid_spec=pltpu.PrefetchScalarGridSpec(
                num_scalar_prefetch=0,
                grid=(n_batch, n_out),
                in_specs=[
                    pl.BlockSpec((TB, IN_P), lambda i, j: (i, 0)),
                    const_spec((G, IN_P)),
                    const_spec((spline_order * G, IN_P)),
                    w_spec,
                ],
                out_specs=pl.BlockSpec((TB, OUT_T), lambda i, j: (i, j)),
                scratch_shapes=[pltpu.VMEM((TB, (K + 1) * IN_P), matmul_dtype)],
            ),
            compiler_params=pltpu.CompilerParams(**cp_kwargs),
        )
        return jax.block_until_ready(call(x_p, grid_t, recip, w_slab))

    try:
        out_p = run(True)
    except Exception:
        # pipeline_mode=pl.Buffered may be unsupported on this JAX build; fall
        # back to default double-buffering (identical numerics).
        out_p = run(False)

    return out_p[:B, :OUT]


def kan_linear_ref(x, grid, base_weight, spline_weight, spline_scaler,
                   *, spline_order):
    """Pure-JAX reference mirroring the PyTorch forward."""
    base = jax.nn.silu(x) @ base_weight.T
    xg = x[:, :, None]
    bases = ((xg >= grid[:, :-1]) & (xg < grid[:, 1:])).astype(x.dtype)
    for k in range(1, spline_order + 1):
        bases = ((xg - grid[:, :-(k + 1)]) / (grid[:, k:-1] - grid[:, :-(k + 1)])
                 * bases[:, :, :-1]
                 + (grid[:, k + 1:] - xg) / (grid[:, k + 1:] - grid[:, 1:-k])
                 * bases[:, :, 1:])
    scaled_w = spline_weight * spline_scaler[:, :, None]
    spline = bases.reshape(x.shape[0], -1) @ scaled_w.reshape(base_weight.shape[0], -1).T
    return base + spline


if __name__ == "__main__":
    # Module hyperparameters (small, consistent with KANLinear defaults)
    in_features, out_features = 32, 16
    grid_size, spline_order = 4, 3
    grid_range = (0.0, 1.0)
    batch = 8

    # grid buffer exactly as in KANLinear.__init__
    h = (grid_range[1] - grid_range[0]) / grid_size
    knots = (jnp.arange(-spline_order, grid_size + spline_order + 1,
                        dtype=jnp.float32) * h + grid_range[0])
    grid = jnp.broadcast_to(knots, (in_features, knots.shape[0]))    # (IN, G)

    # Deterministic synthetic parameters (shapes from __init__; kaiming/lstsq
    # init replaced by bounded uniform noise of comparable scale).
    key = jax.random.PRNGKey(0)
    k_x, k_bw, k_sw, k_sc = jax.random.split(key, 4)
    bound = 1.0 / math.sqrt(in_features)
    base_weight = jax.random.uniform(
        k_bw, (out_features, in_features), jnp.float32, -bound, bound)
    spline_weight = jax.random.uniform(
        k_sw, (out_features, in_features, grid_size + spline_order),
        jnp.float32, -bound, bound)
    spline_scaler = jax.random.uniform(
        k_sc, (out_features, in_features), jnp.float32, -bound, bound)

    # Input (already 2-D; forward would flatten higher-rank inputs)
    x = jax.random.uniform(k_x, (batch, in_features), jnp.float32, 0.0, 1.0)

    ref = kan_linear_ref(x, grid, base_weight, spline_weight, spline_scaler,
                         spline_order=spline_order)

    # f32-operand path: tight check against the reference.
    out_f32 = kan_linear_forward(x, grid, base_weight, spline_weight, spline_scaler,
                                 spline_order=spline_order, matmul_dtype=jnp.float32)
    out_f32 = jax.block_until_ready(out_f32)
    assert out_f32.shape == (batch, out_features)
    assert jnp.allclose(out_f32, ref, atol=1e-4, rtol=1e-4), "f32 mismatch vs reference"

    # Default perf path: bf16 operands at the MXU, f32 accumulation.
    out_bf16 = kan_linear_forward(x, grid, base_weight, spline_weight, spline_scaler,
                                  spline_order=spline_order)
    out_bf16 = jax.block_until_ready(out_bf16)
    assert out_bf16.shape == (batch, out_features)
    assert jnp.allclose(out_bf16, ref, atol=5e-2, rtol=5e-2), "bf16 mismatch vs reference"

    print("KERNEL_OK")
</pallas_src>

<mosaic_0001>
module attributes {stable_mosaic.version = 11 : i64} {
  func.func @kan_linear_kernel(%arg0: i32, %arg1: i32, %arg2: memref<8x128xf32, #tpu.memory_space<vmem>>, %arg3: memref<11x128xf32, #tpu.memory_space<vmem>>, %arg4: memref<33x128xf32, #tpu.memory_space<vmem>>, %arg5: memref<1024x128xf32, #tpu.memory_space<vmem>>, %arg6: memref<8x128xf32, #tpu.memory_space<vmem>>, %arg7: memref<8x1024xf32, #tpu.memory_space<vmem>>) attributes {dimension_semantics = [#tpu.dimension_semantics<parallel>, #tpu.dimension_semantics<arbitrary>], iteration_bounds = array<i64: 1, 1>, scalar_prefetch = 0 : i64, scratch_operands = 1 : i64, tpu.core_type = #tpu.core_type<tc>, window_params = [{transform_indices = @transform_0, window_bounds = array<i64: 8, 128>}, {pipeline_mode = #tpu.pipeline_mode<synchronous>, transform_indices = @transform_1, window_bounds = array<i64: 11, 128>}, {pipeline_mode = #tpu.pipeline_mode<synchronous>, transform_indices = @transform_2, window_bounds = array<i64: 33, 128>}, {pipeline_mode = #tpu.pipeline_mode<synchronous>, transform_indices = @transform_3, window_bounds = array<i64: 1024, 128>}, {transform_indices = @transform_4, window_bounds = array<i64: 8, 128>}]} {
    %c0_i32 = arith.constant 0 : i32
    %0 = arith.cmpi eq, %arg1, %c0_i32 : i32
    %1 = arith.extui %0 : i1 to i32
    %c0_i32_0 = arith.constant 0 : i32
    %2 = arith.cmpi ne, %1, %c0_i32_0 : i32
    scf.if %2 {
      %c0_6 = arith.constant 0 : index
      %c0_7 = arith.constant 0 : index
      %7 = vector.load %arg3[%c0_6, %c0_7] : memref<11x128xf32, #tpu.memory_space<vmem>>, vector<11x128xf32>
      %c0_8 = arith.constant 0 : index
      %c0_9 = arith.constant 0 : index
      %8 = vector.load %arg4[%c0_8, %c0_9] : memref<33x128xf32, #tpu.memory_space<vmem>>, vector<33x128xf32>
      %c0_i32_10 = arith.constant 0 : i32
      %c1_i32 = arith.constant 1 : i32
      %9 = arith.muli %c0_i32_10, %c1_i32 : i32
      %c0_i32_11 = arith.constant 0 : i32
      %10 = arith.addi %c0_i32_11, %9 : i32
      %c8_i32 = arith.constant 8 : i32
      %11 = arith.muli %10, %c8_i32 : i32
      %12 = tpu.assume_multiple %11, 8 : i32
      %13 = arith.index_cast %12 : i32 to index
      %c0_12 = arith.constant 0 : index
      %14 = vector.load %arg2[%13, %c0_12] : memref<8x128xf32, #tpu.memory_space<vmem>>, vector<8x128xf32>
      %15 = arith.negf %14 : vector<8x128xf32>
      %16 = math.exp %15 : vector<8x128xf32>
      %cst_13 = arith.constant 1.000000e+00 : f32
      %17 = vector.broadcast %cst_13 : f32 to vector<8x128xf32>
      %18 = arith.addf %17, %16 : vector<8x128xf32>
      %19 = arith.divf %17, %18 : vector<8x128xf32>
      %20 = arith.mulf %14, %19 : vector<8x128xf32>
      %21 = arith.index_cast %12 : i32 to index
      %c0_14 = arith.constant 0 : index
      %22 = vector.load %arg7[%21, %c0_14] : memref<8x1024xf32, #tpu.memory_space<vmem>>, vector<8x128xf32>
      tpu.vector_store %arg7[%21, %c0_14], %20 {strides = array<i32>} : memref<8x1024xf32, #tpu.memory_space<vmem>>, vector<8x128xf32>,
      %23 = vector.extract_strided_slice %7 {offsets = [0, 0], sizes = [1, 128], strides = [1, 1]} : vector<11x128xf32> to vector<1x128xf32>
      %24 = vector.broadcast %23 : vector<1x128xf32> to vector<8x128xf32>
      %25 = arith.subf %14, %24 : vector<8x128xf32>
      %26 = vector.extract_strided_slice %7 {offsets = [1, 0], sizes = [1, 128], strides = [1, 1]} : vector<11x128xf32> to vector<1x128xf32>
      %27 = vector.broadcast %26 : vector<1x128xf32> to vector<8x128xf32>
      %28 = arith.subf %14, %27 : vector<8x128xf32>
      %29 = vector.extract_strided_slice %7 {offsets = [2, 0], sizes = [1, 128], strides = [1, 1]} : vector<11x128xf32> to vector<1x128xf32>
      %30 = vector.broadcast %29 : vector<1x128xf32> to vector<8x128xf32>
      %31 = arith.subf %14, %30 : vector<8x128xf32>
      %32 = vector.extract_strided_slice %7 {offsets = [3, 0], sizes = [1, 128], strides = [1, 1]} : vector<11x128xf32> to vector<1x128xf32>
      %33 = vector.broadcast %32 : vector<1x128xf32> to vector<8x128xf32>
      %34 = arith.subf %14, %33 : vector<8x128xf32>
      %35 = vector.extract_strided_slice %7 {offsets = [4, 0], sizes = [1, 128], strides = [1, 1]} : vector<11x128xf32> to vector<1x128xf32>
      %36 = vector.broadcast %35 : vector<1x128xf32> to vector<8x128xf32>
      %37 = arith.subf %14, %36 : vector<8x128xf32>
      %38 = vector.extract_strided_slice %7 {offsets = [5, 0], sizes = [1, 128], strides = [1, 1]} : vector<11x128xf32> to vector<1x128xf32>
      %39 = vector.broadcast %38 : vector<1x128xf32> to vector<8x128xf32>
      %40 = arith.subf %14, %39 : vector<8x128xf32>
      %41 = vector.extract_strided_slice %7 {offsets = [6, 0], sizes = [1, 128], strides = [1, 1]} : vector<11x128xf32> to vector<1x128xf32>
      %42 = vector.broadcast %41 : vector<1x128xf32> to vector<8x128xf32>
      %43 = arith.subf %14, %42 : vector<8x128xf32>
      %44 = vector.extract_strided_slice %7 {offsets = [7, 0], sizes = [1, 128], strides = [1, 1]} : vector<11x128xf32> to vector<1x128xf32>
      %45 = vector.broadcast %44 : vector<1x128xf32> to vector<8x128xf32>
      %46 = arith.subf %14, %45 : vector<8x128xf32>
      %47 = vector.extract_strided_slice %7 {offsets = [8, 0], sizes = [1, 128], strides = [1, 1]} : vector<11x128xf32> to vector<1x128xf32>
      %48 = vector.broadcast %47 : vector<1x128xf32> to vector<8x128xf32>
      %49 = arith.subf %14, %48 : vector<8x128xf32>
      %50 = vector.extract_strided_slice %7 {offsets = [9, 0], sizes = [1, 128], strides = [1, 1]} : vector<11x128xf32> to vector<1x128xf32>
      %51 = vector.broadcast %50 : vector<1x128xf32> to vector<8x128xf32>
      %52 = arith.subf %14, %51 : vector<8x128xf32>
      %53 = vector.extract_strided_slice %7 {offsets = [10, 0], sizes = [1, 128], strides = [1, 1]} : vector<11x128xf32> to vector<1x128xf32>
      %54 = vector.broadcast %53 : vector<1x128xf32> to vector<8x128xf32>
      %55 = arith.subf %14, %54 : vector<8x128xf32>
      %cst_15 = arith.constant 0.000000e+00 : f32
      %56 = vector.broadcast %cst_15 : f32 to vector<8x128xf32>
      %57 = arith.cmpf oge, %25, %56 : vector<8x128xf32>
      %cst_16 = arith.constant 0.000000e+00 : f32
      %58 = vector.broadcast %cst_16 : f32 to vector<8x128xf32>
      %59 = arith.cmpf olt, %28, %58 : vector<8x128xf32>
      %60 = arith.andi %57, %59 : vector<8x128xi1>
      %61 = arith.extui %60 : vector<8x128xi1> to vector<8x128xi32>
      %62 = arith.sitofp %61 : vector<8x128xi32> to vector<8x128xf32>
      %cst_17 = arith.constant 0.000000e+00 : f32
      %63 = vector.broadcast %cst_17 : f32 to vector<8x128xf32>
      %64 = arith.cmpf oge, %28, %63 : vector<8x128xf32>
      %cst_18 = arith.constant 0.000000e+00 : f32
      %65 = vector.broadcast %cst_18 : f32 to vector<8x128xf32>
      %66 = arith.cmpf olt, %31, %65 : vector<8x128xf32>
      %67 = arith.andi %64, %66 : vector<8x128xi1>
      %68 = arith.extui %67 : vector<8x128xi1> to vector<8x128xi32>
      %69 = arith.sitofp %68 : vector<8x128xi32> to vector<8x128xf32>
      %cst_19 = arith.constant 0.000000e+00 : f32
      %70 = vector.broadcast %cst_19 : f32 to vector<8x128xf32>
      %71 = arith.cmpf oge, %31, %70 : vector<8x128xf32>
      %cst_20 = arith.constant 0.000000e+00 : f32
      %72 = vector.broadcast %cst_20 : f32 to vector<8x128xf32>
      %73 = arith.cmpf olt, %34, %72 : vector<8x128xf32>
      %74 = arith.andi %71, %73 : vector<8x128xi1>
      %75 = arith.extui %74 : vector<8x128xi1> to vector<8x128xi32>
      %76 = arith.sitofp %75 : vector<8x128xi32> to vector<8x128xf32>
      %cst_21 = arith.constant 0.000000e+00 : f32
      %77 = vector.broadcast %cst_21 : f32 to vector<8x128xf32>
      %78 = arith.cmpf oge, %34, %77 : vector<8x128xf32>
      %cst_22 = arith.constant 0.000000e+00 : f32
      %79 = vector.broadcast %cst_22 : f32 to vector<8x128xf32>
      %80 = arith.cmpf olt, %37, %79 : vector<8x128xf32>
      %81 = arith.andi %78, %80 : vector<8x128xi1>
      %82 = arith.extui %81 : vector<8x128xi1> to vector<8x128xi32>
      %83 = arith.sitofp %82 : vector<8x128xi32> to vector<8x128xf32>
      %cst_23 = arith.constant 0.000000e+00 : f32
      %84 = vector.broadcast %cst_23 : f32 to vector<8x128xf32>
      %85 = arith.cmpf oge, %37, %84 : vector<8x128xf32>
      %cst_24 = arith.constant 0.000000e+00 : f32
      %86 = vector.broadcast %cst_24 : f32 to vector<8x128xf32>
      %87 = arith.cmpf olt, %40, %86 : vector<8x128xf32>
      %88 = arith.andi %85, %87 : vector<8x128xi1>
      %89 = arith.extui %88 : vector<8x128xi1> to vector<8x128xi32>
      %90 = arith.sitofp %89 : vector<8x128xi32> to vector<8x128xf32>
      %cst_25 = arith.constant 0.000000e+00 : f32
      %91 = vector.broadcast %cst_25 : f32 to vector<8x128xf32>
      %92 = arith.cmpf oge, %40, %91 : vector<8x128xf32>
      %cst_26 = arith.constant 0.000000e+00 : f32
      %93 = vector.broadcast %cst_26 : f32 to vector<8x128xf32>
      %94 = arith.cmpf olt, %43, %93 : vector<8x128xf32>
      %95 = arith.andi %92, %94 : vector<8x128xi1>
      %96 = arith.extui %95 : vector<8x128xi1> to vector<8x128xi32>
      %97 = arith.sitofp %96 : vector<8x128xi32> to vector<8x128xf32>
      %cst_27 = arith.constant 0.000000e+00 : f32
      %98 = vector.broadcast %cst_27 : f32 to vector<8x128xf32>
      %99 = arith.cmpf oge, %43, %98 : vector<8x128xf32>
      %cst_28 = arith.constant 0.000000e+00 : f32
      %100 = vector.broadcast %cst_28 : f32 to vector<8x128xf32>
      %101 = arith.cmpf olt, %46, %100 : vector<8x128xf32>
      %102 = arith.andi %99, %101 : vector<8x128xi1>
      %103 = arith.extui %102 : vector<8x128xi1> to vector<8x128xi32>
      %104 = arith.sitofp %103 : vector<8x128xi32> to vector<8x128xf32>
      %cst_29 = arith.constant 0.000000e+00 : f32
      %105 = vector.broadcast %cst_29 : f32 to vector<8x128xf32>
      %106 = arith.cmpf oge, %46, %105 : vector<8x128xf32>
      %cst_30 = arith.constant 0.000000e+00 : f32
      %107 = vector.broadcast %cst_30 : f32 to vector<8x128xf32>
      %108 = arith.cmpf olt, %49, %107 : vector<8x128xf32>
      %109 = arith.andi %106, %108 : vector<8x128xi1>
      %110 = arith.extui %109 : vector<8x128xi1> to vector<8x128xi32>
      %111 = arith.sitofp %110 : vector<8x128xi32> to vector<8x128xf32>
      %cst_31 = arith.constant 0.000000e+00 : f32
      %112 = vector.broadcast %cst_31 : f32 to vector<8x128xf32>
      %113 = arith.cmpf oge, %49, %112 : vector<8x128xf32>
      %cst_32 = arith.constant 0.000000e+00 : f32
      %114 = vector.broadcast %cst_32 : f32 to vector<8x128xf32>
      %115 = arith.cmpf olt, %52, %114 : vector<8x128xf32>
      %116 = arith.andi %113, %115 : vector<8x128xi1>
      %117 = arith.extui %116 : vector<8x128xi1> to vector<8x128xi32>
      %118 = arith.sitofp %117 : vector<8x128xi32> to vector<8x128xf32>
      %cst_33 = arith.constant 0.000000e+00 : f32
      %119 = vector.broadcast %cst_33 : f32 to vector<8x128xf32>
      %120 = arith.cmpf oge, %52, %119 : vector<8x128xf32>
      %cst_34 = arith.constant 0.000000e+00 : f32
      %121 = vector.broadcast %cst_34 : f32 to vector<8x128xf32>
      %122 = arith.cmpf olt, %55, %121 : vector<8x128xf32>
      %123 = arith.andi %120, %122 : vector<8x128xi1>
      %124 = arith.extui %123 : vector<8x128xi1> to vector<8x128xi32>
      %125 = arith.sitofp %124 : vector<8x128xi32> to vector<8x128xf32>
      %126 = vector.extract_strided_slice %8 {offsets = [0, 0], sizes = [1, 128], strides = [1, 1]} : vector<33x128xf32> to vector<1x128xf32>
      %127 = vector.broadcast %126 : vector<1x128xf32> to vector<8x128xf32>
      %128 = arith.mulf %25, %127 : vector<8x128xf32>
      %129 = vector.extract_strided_slice %8 {offsets = [1, 0], sizes = [1, 128], strides = [1, 1]} : vector<33x128xf32> to vector<1x128xf32>
      %130 = vector.broadcast %129 : vector<1x128xf32> to vector<8x128xf32>
      %131 = arith.mulf %28, %130 : vector<8x128xf32>
      %132 = vector.extract_strided_slice %8 {offsets = [2, 0], sizes = [1, 128], strides = [1, 1]} : vector<33x128xf32> to vector<1x128xf32>
      %133 = vector.broadcast %132 : vector<1x128xf32> to vector<8x128xf32>
      %134 = arith.mulf %31, %133 : vector<8x128xf32>
      %135 = vector.extract_strided_slice %8 {offsets = [3, 0], sizes = [1, 128], strides = [1, 1]} : vector<33x128xf32> to vector<1x128xf32>
      %136 = vector.broadcast %135 : vector<1x128xf32> to vector<8x128xf32>
      %137 = arith.mulf %34, %136 : vector<8x128xf32>
      %138 = vector.extract_strided_slice %8 {offsets = [4, 0], sizes = [1, 128], strides = [1, 1]} : vector<33x128xf32> to vector<1x128xf32>
      %139 = vector.broadcast %138 : vector<1x128xf32> to vector<8x128xf32>
      %140 = arith.mulf %37, %139 : vector<8x128xf32>
      %141 = vector.extract_strided_slice %8 {offsets = [5, 0], sizes = [1, 128], strides = [1, 1]} : vector<33x128xf32> to vector<1x128xf32>
      %142 = vector.broadcast %141 : vector<1x128xf32> to vector<8x128xf32>
      %143 = arith.mulf %40, %142 : vector<8x128xf32>
      %144 = vector.extract_strided_slice %8 {offsets = [6, 0], sizes = [1, 128], strides = [1, 1]} : vector<33x128xf32> to vector<1x128xf32>
      %145 = vector.broadcast %144 : vector<1x128xf32> to vector<8x128xf32>
      %146 = arith.mulf %43, %145 : vector<8x128xf32>
      %147 = vector.extract_strided_slice %8 {offsets = [7, 0], sizes = [1, 128], strides = [1, 1]} : vector<33x128xf32> to vector<1x128xf32>
      %148 = vector.broadcast %147 : vector<1x128xf32> to vector<8x128xf32>
      %149 = arith.mulf %46, %148 : vector<8x128xf32>
      %150 = vector.extract_strided_slice %8 {offsets = [8, 0], sizes = [1, 128], strides = [1, 1]} : vector<33x128xf32> to vector<1x128xf32>
      %151 = vector.broadcast %150 : vector<1x128xf32> to vector<8x128xf32>
      %152 = arith.mulf %49, %151 : vector<8x128xf32>
      %153 = vector.extract_strided_slice %8 {offsets = [9, 0], sizes = [1, 128], strides = [1, 1]} : vector<33x128xf32> to vector<1x128xf32>
      %154 = vector.broadcast %153 : vector<1x128xf32> to vector<8x128xf32>
      %155 = arith.mulf %52, %154 : vector<8x128xf32>
      %156 = arith.mulf %128, %62 : vector<8x128xf32>
      %cst_35 = arith.constant 1.000000e+00 : f32
      %157 = vector.broadcast %cst_35 : f32 to vector<8x128xf32>
      %158 = arith.subf %157, %131 : vector<8x128xf32>
      %159 = arith.mulf %158, %69 : vector<8x128xf32>
      %160 = arith.addf %156, %159 : vector<8x128xf32>
      %161 = arith.mulf %131, %69 : vector<8x128xf32>
      %cst_36 = arith.constant 1.000000e+00 : f32
      %162 = vector.broadcast %cst_36 : f32 to vector<8x128xf32>
      %163 = arith.subf %162, %134 : vector<8x128xf32>
      %164 = arith.mulf %163, %76 : vector<8x128xf32>
      %165 = arith.addf %161, %164 : vector<8x128xf32>
      %166 = arith.mulf %134, %76 : vector<8x128xf32>
      %cst_37 = arith.constant 1.000000e+00 : f32
      %167 = vector.broadcast %cst_37 : f32 to vector<8x128xf32>
      %168 = arith.subf %167, %137 : vector<8x128xf32>
      %169 = arith.mulf %168, %83 : vector<8x128xf32>
      %170 = arith.addf %166, %169 : vector<8x128xf32>
      %171 = arith.mulf %137, %83 : vector<8x128xf32>
      %cst_38 = arith.constant 1.000000e+00 : f32
      %172 = vector.broadcast %cst_38 : f32 to vector<8x128xf32>
      %173 = arith.subf %172, %140 : vector<8x128xf32>
      %174 = arith.mulf %173, %90 : vector<8x128xf32>
      %175 = arith.addf %171, %174 : vector<8x128xf32>
      %176 = arith.mulf %140, %90 : vector<8x128xf32>
      %cst_39 = arith.constant 1.000000e+00 : f32
      %177 = vector.broadcast %cst_39 : f32 to vector<8x128xf32>
      %178 = arith.subf %177, %143 : vector<8x128xf32>
      %179 = arith.mulf %178, %97 : vector<8x128xf32>
      %180 = arith.addf %176, %179 : vector<8x128xf32>
      %181 = arith.mulf %143, %97 : vector<8x128xf32>
      %cst_40 = arith.constant 1.000000e+00 : f32
      %182 = vector.broadcast %cst_40 : f32 to vector<8x128xf32>
      %183 = arith.subf %182, %146 : vector<8x128xf32>
      %184 = arith.mulf %183, %104 : vector<8x128xf32>
      %185 = arith.addf %181, %184 : vector<8x128xf32>
      %186 = arith.mulf %146, %104 : vector<8x128xf32>
      %cst_41 = arith.constant 1.000000e+00 : f32
      %187 = vector.broadcast %cst_41 : f32 to vector<8x128xf32>
      %188 = arith.subf %187, %149 : vector<8x128xf32>
      %189 = arith.mulf %188, %111 : vector<8x128xf32>
      %190 = arith.addf %186, %189 : vector<8x128xf32>
      %191 = arith.mulf %149, %111 : vector<8x128xf32>
      %cst_42 = arith.constant 1.000000e+00 : f32
      %192 = vector.broadcast %cst_42 : f32 to vector<8x128xf32>
      %193 = arith.subf %192, %152 : vector<8x128xf32>
      %194 = arith.mulf %193, %118 : vector<8x128xf32>
      %195 = arith.addf %191, %194 : vector<8x128xf32>
      %196 = arith.mulf %152, %118 : vector<8x128xf32>
      %cst_43 = arith.constant 1.000000e+00 : f32
      %197 = vector.broadcast %cst_43 : f32 to vector<8x128xf32>
      %198 = arith.subf %197, %155 : vector<8x128xf32>
      %199 = arith.mulf %198, %125 : vector<8x128xf32>
      %200 = arith.addf %196, %199 : vector<8x128xf32>
      %201 = vector.extract_strided_slice %8 {offsets = [11, 0], sizes = [1, 128], strides = [1, 1]} : vector<33x128xf32> to vector<1x128xf32>
      %202 = vector.broadcast %201 : vector<1x128xf32> to vector<8x128xf32>
      %203 = arith.mulf %25, %202 : vector<8x128xf32>
      %204 = vector.extract_strided_slice %8 {offsets = [12, 0], sizes = [1, 128], strides = [1, 1]} : vector<33x128xf32> to vector<1x128xf32>
      %205 = vector.broadcast %204 : vector<1x128xf32> to vector<8x128xf32>
      %206 = arith.mulf %28, %205 : vector<8x128xf32>
      %207 = vector.extract_strided_slice %8 {offsets = [13, 0], sizes = [1, 128], strides = [1, 1]} : vector<33x128xf32> to vector<1x128xf32>
      %208 = vector.broadcast %207 : vector<1x128xf32> to vector<8x128xf32>
      %209 = arith.mulf %31, %208 : vector<8x128xf32>
      %210 = vector.extract_strided_slice %8 {offsets = [14, 0], sizes = [1, 128], strides = [1, 1]} : vector<33x128xf32> to vector<1x128xf32>
      %211 = vector.broadcast %210 : vector<1x128xf32> to vector<8x128xf32>
      %212 = arith.mulf %34, %211 : vector<8x128xf32>
      %213 = vector.extract_strided_slice %8 {offsets = [15, 0], sizes = [1, 128], strides = [1, 1]} : vector<33x128xf32> to vector<1x128xf32>
      %214 = vector.broadcast %213 : vector<1x128xf32> to vector<8x128xf32>
      %215 = arith.mulf %37, %214 : vector<8x128xf32>
      %216 = vector.extract_strided_slice %8 {offsets = [16, 0], sizes = [1, 128], strides = [1, 1]} : vector<33x128xf32> to vector<1x128xf32>
      %217 = vector.broadcast %216 : vector<1x128xf32> to vector<8x128xf32>
      %218 = arith.mulf %40, %217 : vector<8x128xf32>
      %219 = vector.extract_strided_slice %8 {offsets = [17, 0], sizes = [1, 128], strides = [1, 1]} : vector<33x128xf32> to vector<1x128xf32>
      %220 = vector.broadcast %219 : vector<1x128xf32> to vector<8x128xf32>
      %221 = arith.mulf %43, %220 : vector<8x128xf32>
      %222 = vector.extract_strided_slice %8 {offsets = [18, 0], sizes = [1, 128], strides = [1, 1]} : vector<33x128xf32> to vector<1x128xf32>
      %223 = vector.broadcast %222 : vector<1x128xf32> to vector<8x128xf32>
      %224 = arith.mulf %46, %223 : vector<8x128xf32>
      %225 = vector.extract_strided_slice %8 {offsets = [19, 0], sizes = [1, 128], strides = [1, 1]} : vector<33x128xf32> to vector<1x128xf32>
      %226 = vector.broadcast %225 : vector<1x128xf32> to vector<8x128xf32>
      %227 = arith.mulf %49, %226 : vector<8x128xf32>
      %228 = arith.mulf %203, %160 : vector<8x128xf32>
      %cst_44 = arith.constant 1.000000e+00 : f32
      %229 = vector.broadcast %cst_44 : f32 to vector<8x128xf32>
      %230 = arith.subf %229, %206 : vector<8x128xf32>
      %231 = arith.mulf %230, %165 : vector<8x128xf32>
      %232 = arith.addf %228, %231 : vector<8x128xf32>
      %233 = arith.mulf %206, %165 : vector<8x128xf32>
      %cst_45 = arith.constant 1.000000e+00 : f32
      %234 = vector.broadcast %cst_45 : f32 to vector<8x128xf32>
      %235 = arith.subf %234, %209 : vector<8x128xf32>
      %236 = arith.mulf %235, %170 : vector<8x128xf32>
      %237 = arith.addf %233, %236 : vector<8x128xf32>
      %238 = arith.mulf %209, %170 : vector<8x128xf32>
      %cst_46 = arith.constant 1.000000e+00 : f32
      %239 = vector.broadcast %cst_46 : f32 to vector<8x128xf32>
      %240 = arith.subf %239, %212 : vector<8x128xf32>
      %241 = arith.mulf %240, %175 : vector<8x128xf32>
      %242 = arith.addf %238, %241 : vector<8x128xf32>
      %243 = arith.mulf %212, %175 : vector<8x128xf32>
      %cst_47 = arith.constant 1.000000e+00 : f32
      %244 = vector.broadcast %cst_47 : f32 to vector<8x128xf32>
      %245 = arith.subf %244, %215 : vector<8x128xf32>
      %246 = arith.mulf %245, %180 : vector<8x128xf32>
      %247 = arith.addf %243, %246 : vector<8x128xf32>
      %248 = arith.mulf %215, %180 : vector<8x128xf32>
      %cst_48 = arith.constant 1.000000e+00 : f32
      %249 = vector.broadcast %cst_48 : f32 to vector<8x128xf32>
      %250 = arith.subf %249, %218 : vector<8x128xf32>
      %251 = arith.mulf %250, %185 : vector<8x128xf32>
      %252 = arith.addf %248, %251 : vector<8x128xf32>
      %253 = arith.mulf %218, %185 : vector<8x128xf32>
      %cst_49 = arith.constant 1.000000e+00 : f32
      %254 = vector.broadcast %cst_49 : f32 to vector<8x128xf32>
      %255 = arith.subf %254, %221 : vector<8x128xf32>
      %256 = arith.mulf %255, %190 : vector<8x128xf32>
      %257 = arith.addf %253, %256 : vector<8x128xf32>
      %258 = arith.mulf %221, %190 : vector<8x128xf32>
      %cst_50 = arith.constant 1.000000e+00 : f32
      %259 = vector.broadcast %cst_50 : f32 to vector<8x128xf32>
      %260 = arith.subf %259, %224 : vector<8x128xf32>
      %261 = arith.mulf %260, %195 : vector<8x128xf32>
      %262 = arith.addf %258, %261 : vector<8x128xf32>
      %263 = arith.mulf %224, %195 : vector<8x128xf32>
      %cst_51 = arith.constant 1.000000e+00 : f32
      %264 = vector.broadcast %cst_51 : f32 to vector<8x128xf32>
      %265 = arith.subf %264, %227 : vector<8x128xf32>
      %266 = arith.mulf %265, %200 : vector<8x128xf32>
      %267 = arith.addf %263, %266 : vector<8x128xf32>
      %268 = vector.extract_strided_slice %8 {offsets = [22, 0], sizes = [1, 128], strides = [1, 1]} : vector<33x128xf32> to vector<1x128xf32>
      %269 = vector.broadcast %268 : vector<1x128xf32> to vector<8x128xf32>
      %270 = arith.mulf %25, %269 : vector<8x128xf32>
      %271 = vector.extract_strided_slice %8 {offsets = [23, 0], sizes = [1, 128], strides = [1, 1]} : vector<33x128xf32> to vector<1x128xf32>
      %272 = vector.broadcast %271 : vector<1x128xf32> to vector<8x128xf32>
      %273 = arith.mulf %28, %272 : vector<8x128xf32>
      %274 = vector.extract_strided_slice %8 {offsets = [24, 0], sizes = [1, 128], strides = [1, 1]} : vector<33x128xf32> to vector<1x128xf32>
      %275 = vector.broadcast %274 : vector<1x128xf32> to vector<8x128xf32>
      %276 = arith.mulf %31, %275 : vector<8x128xf32>
      %277 = vector.extract_strided_slice %8 {offsets = [25, 0], sizes = [1, 128], strides = [1, 1]} : vector<33x128xf32> to vector<1x128xf32>
      %278 = vector.broadcast %277 : vector<1x128xf32> to vector<8x128xf32>
      %279 = arith.mulf %34, %278 : vector<8x128xf32>
      %280 = vector.extract_strided_slice %8 {offsets = [26, 0], sizes = [1, 128], strides = [1, 1]} : vector<33x128xf32> to vector<1x128xf32>
      %281 = vector.broadcast %280 : vector<1x128xf32> to vector<8x128xf32>
      %282 = arith.mulf %37, %281 : vector<8x128xf32>
      %283 = vector.extract_strided_slice %8 {offsets = [27, 0], sizes = [1, 128], strides = [1, 1]} : vector<33x128xf32> to vector<1x128xf32>
      %284 = vector.broadcast %283 : vector<1x128xf32> to vector<8x128xf32>
      %285 = arith.mulf %40, %284 : vector<8x128xf32>
      %286 = vector.extract_strided_slice %8 {offsets = [28, 0], sizes = [1, 128], strides = [1, 1]} : vector<33x128xf32> to vector<1x128xf32>
      %287 = vector.broadcast %286 : vector<1x128xf32> to vector<8x128xf32>
      %288 = arith.mulf %43, %287 : vector<8x128xf32>
      %289 = vector.extract_strided_slice %8 {offsets = [29, 0], sizes = [1, 128], strides = [1, 1]} : vector<33x128xf32> to vector<1x128xf32>
      %290 = vector.broadcast %289 : vector<1x128xf32> to vector<8x128xf32>
      %291 = arith.mulf %46, %290 : vector<8x128xf32>
      %292 = arith.mulf %270, %232 : vector<8x128xf32>
      %cst_52 = arith.constant 1.000000e+00 : f32
      %293 = vector.broadcast %cst_52 : f32 to vector<8x128xf32>
      %294 = arith.subf %293, %273 : vector<8x128xf32>
      %295 = arith.mulf %294, %237 : vector<8x128xf32>
      %296 = arith.addf %292, %295 : vector<8x128xf32>
      %297 = arith.mulf %273, %237 : vector<8x128xf32>
      %cst_53 = arith.constant 1.000000e+00 : f32
      %298 = vector.broadcast %cst_53 : f32 to vector<8x128xf32>
      %299 = arith.subf %298, %276 : vector<8x128xf32>
      %300 = arith.mulf %299, %242 : vector<8x128xf32>
      %301 = arith.addf %297, %300 : vector<8x128xf32>
      %302 = arith.mulf %276, %242 : vector<8x128xf32>
      %cst_54 = arith.constant 1.000000e+00 : f32
      %303 = vector.broadcast %cst_54 : f32 to vector<8x128xf32>
      %304 = arith.subf %303, %279 : vector<8x128xf32>
      %305 = arith.mulf %304, %247 : vector<8x128xf32>
      %306 = arith.addf %302, %305 : vector<8x128xf32>
      %307 = arith.mulf %279, %247 : vector<8x128xf32>
      %cst_55 = arith.constant 1.000000e+00 : f32
      %308 = vector.broadcast %cst_55 : f32 to vector<8x128xf32>
      %309 = arith.subf %308, %282 : vector<8x128xf32>
      %310 = arith.mulf %309, %252 : vector<8x128xf32>
      %311 = arith.addf %307, %310 : vector<8x128xf32>
      %312 = arith.mulf %282, %252 : vector<8x128xf32>
      %cst_56 = arith.constant 1.000000e+00 : f32
      %313 = vector.broadcast %cst_56 : f32 to vector<8x128xf32>
      %314 = arith.subf %313, %285 : vector<8x128xf32>
      %315 = arith.mulf %314, %257 : vector<8x128xf32>
      %316 = arith.addf %312, %315 : vector<8x128xf32>
      %317 = arith.mulf %285, %257 : vector<8x128xf32>
      %cst_57 = arith.constant 1.000000e+00 : f32
      %318 = vector.broadcast %cst_57 : f32 to vector<8x128xf32>
      %319 = arith.subf %318, %288 : vector<8x128xf32>
      %320 = arith.mulf %319, %262 : vector<8x128xf32>
      %321 = arith.addf %317, %320 : vector<8x128xf32>
      %322 = arith.mulf %288, %262 : vector<8x128xf32>
      %cst_58 = arith.constant 1.000000e+00 : f32
      %323 = vector.broadcast %cst_58 : f32 to vector<8x128xf32>
      %324 = arith.subf %323, %291 : vector<8x128xf32>
      %325 = arith.mulf %324, %267 : vector<8x128xf32>
      %326 = arith.addf %322, %325 : vector<8x128xf32>
      %327 = arith.index_cast %12 : i32 to index
      %c128 = arith.constant 128 : index
      %328 = vector.load %arg7[%327, %c128] : memref<8x1024xf32, #tpu.memory_space<vmem>>, vector<8x128xf32>
      tpu.vector_store %arg7[%327, %c128], %296 {strides = array<i32>} : memref<8x1024xf32, #tpu.memory_space<vmem>>, vector<8x128xf32>,
      %329 = arith.index_cast %12 : i32 to index
      %c256 = arith.constant 256 : index
      %330 = vector.load %arg7[%329, %c256] : memref<8x1024xf32, #tpu.memory_space<vmem>>, vector<8x128xf32>
      tpu.vector_store %arg7[%329, %c256], %301 {strides = array<i32>} : memref<8x1024xf32, #tpu.memory_space<vmem>>, vector<8x128xf32>,
      %331 = arith.index_cast %12 : i32 to index
      %c384 = arith.constant 384 : index
      %332 = vector.load %arg7[%331, %c384] : memref<8x1024xf32, #tpu.memory_space<vmem>>, vector<8x128xf32>
      tpu.vector_store %arg7[%331, %c384], %306 {strides = array<i32>} : memref<8x1024xf32, #tpu.memory_space<vmem>>, vector<8x128xf32>,
      %333 = arith.index_cast %12 : i32 to index
      %c512 = arith.constant 512 : index
      %334 = vector.load %arg7[%333, %c512] : memref<8x1024xf32, #tpu.memory_space<vmem>>, vector<8x128xf32>
      tpu.vector_store %arg7[%333, %c512], %311 {strides = array<i32>} : memref<8x1024xf32, #tpu.memory_space<vmem>>, vector<8x128xf32>,
      %335 = arith.index_cast %12 : i32 to index
      %c640 = arith.constant 640 : index
      %336 = vector.load %arg7[%335, %c640] : memref<8x1024xf32, #tpu.memory_space<vmem>>, vector<8x128xf32>
      tpu.vector_store %arg7[%335, %c640], %316 {strides = array<i32>} : memref<8x1024xf32, #tpu.memory_space<vmem>>, vector<8x128xf32>,
      %337 = arith.index_cast %12 : i32 to index
      %c768 = arith.constant 768 : index
      %338 = vector.load %arg7[%337, %c768] : memref<8x1024xf32, #tpu.memory_space<vmem>>, vector<8x128xf32>
      tpu.vector_store %arg7[%337, %c768], %321 {strides = array<i32>} : memref<8x1024xf32, #tpu.memory_space<vmem>>, vector<8x128xf32>,
      %339 = arith.index_cast %12 : i32 to index
      %c896 = arith.constant 896 : index
      %340 = vector.load %arg7[%339, %c896] : memref<8x1024xf32, #tpu.memory_space<vmem>>, vector<8x128xf32>
      tpu.vector_store %arg7[%339, %c896], %326 {strides = array<i32>} : memref<8x1024xf32, #tpu.memory_space<vmem>>, vector<8x128xf32>,
      %c1_i32_59 = arith.constant 1 : i32
    } else {
    }
    %c0 = arith.constant 0 : index
    %c0_1 = arith.constant 0 : index
    %3 = vector.load %arg7[%c0, %c0_1] : memref<8x1024xf32, #tpu.memory_space<vmem>>, vector<8x1024xf32>
    %c0_2 = arith.constant 0 : index
    %c0_3 = arith.constant 0 : index
    %4 = vector.load %arg5[%c0_2, %c0_3] : memref<1024x128xf32, #tpu.memory_space<vmem>>, vector<1024x128xf32>
    %cst = arith.constant dense<0.000000e+00> : vector<8x128xf32>
    %5 = tpu.matmul %3, %4, %cst {dimension_numbers = #tpu.dot_dimension_numbers<[1], [0], [0], [1], [0, 0, 1, 1], [], []>} : vector<8x1024xf32>, vector<1024x128xf32>, vector<8x128xf32> -> vector<8x128xf32>
    %c0_4 = arith.constant 0 : index
    %c0_5 = arith.constant 0 : index
    %6 = vector.load %arg6[%c0_4, %c0_5] : memref<8x128xf32, #tpu.memory_space<vmem>>, vector<8x128xf32>
    tpu.vector_store %arg6[%c0_4, %c0_5], %5 {strides = array<i32>} : memref<8x128xf32, #tpu.memory_space<vmem>>, vector<8x128xf32>,
    return
  }
  func.func @transform_0(%arg0: i32, %arg1: i32) -> (i32, i32) {
    %c0_i32 = arith.constant 0 : i32
    %c0_i32_0 = arith.constant 0 : i32
    return %arg0, %c0_i32 : i32, i32
  }
  func.func @transform_1(%arg0: i32, %arg1: i32) -> (i32, i32) {
    %c0_i32 = arith.constant 0 : i32
    %c0_i32_0 = arith.constant 0 : i32
    %c0_i32_1 = arith.constant 0 : i32
    return %c0_i32, %c0_i32_0 : i32, i32
  }
  func.func @transform_2(%arg0: i32, %arg1: i32) -> (i32, i32) {
    %c0_i32 = arith.constant 0 : i32
    %c0_i32_0 = arith.constant 0 : i32
    %c0_i32_1 = arith.constant 0 : i32
    return %c0_i32, %c0_i32_0 : i32, i32
  }
  func.func @transform_3(%arg0: i32, %arg1: i32) -> (i32, i32) {
    %c0_i32 = arith.constant 0 : i32
    %c0_i32_0 = arith.constant 0 : i32
    return %c0_i32, %arg1 : i32, i32
  }
  func.func @transform_4(%arg0: i32, %arg1: i32) -> (i32, i32) {
    %c0_i32 = arith.constant 0 : i32
    return %arg0, %arg1 : i32, i32
  }
}

module attributes {stable_mosaic.version = 11 : i64} {
  func.func @kan_linear_kernel(%arg0: i32, %arg1: i32, %arg2: memref<8x128xf32, #tpu.memory_space<vmem>>, %arg3: memref<11x128xf32, #tpu.memory_space<vmem>>, %arg4: memref<33x128xf32, #tpu.memory_space<vmem>>, %arg5: memref<1024x128xf32, #tpu.memory_space<vmem>>, %arg6: memref<8x128xf32, #tpu.memory_space<vmem>>, %arg7: memref<8x1024xf32, #tpu.memory_space<vmem>>) attributes {dimension_semantics = [#tpu.dimension_semantics<parallel>, #tpu.dimension_semantics<arbitrary>], iteration_bounds = array<i64: 1, 1>, scalar_prefetch = 0 : i64, scratch_operands = 1 : i64, tpu.core_type = #tpu.core_type<tc>, window_params = [{transform_indices = @transform_0, window_bounds = array<i64: 8, 128>}, {pipeline_mode = #tpu.pipeline_mode<synchronous>, transform_indices = @transform_1, window_bounds = array<i64: 11, 128>}, {pipeline_mode = #tpu.pipeline_mode<synchronous>, transform_indices = @transform_2, window_bounds = array<i64: 33, 128>}, {transform_indices = @transform_3, window_bounds = array<i64: 1024, 128>}, {transform_indices = @transform_4, window_bounds = array<i64: 8, 128>}]} {
    %c0_i32 = arith.constant 0 : i32
    %0 = arith.cmpi eq, %arg1, %c0_i32 : i32
    %1 = arith.extui %0 : i1 to i32
    %c0_i32_0 = arith.constant 0 : i32
    %2 = arith.cmpi ne, %1, %c0_i32_0 : i32
    scf.if %2 {
      %c0_6 = arith.constant 0 : index
      %c0_7 = arith.constant 0 : index
      %7 = vector.load %arg3[%c0_6, %c0_7] : memref<11x128xf32, #tpu.memory_space<vmem>>, vector<11x128xf32>
      %c0_8 = arith.constant 0 : index
      %c0_9 = arith.constant 0 : index
      %8 = vector.load %arg4[%c0_8, %c0_9] : memref<33x128xf32, #tpu.memory_space<vmem>>, vector<33x128xf32>
      %c0_i32_10 = arith.constant 0 : i32
      %c1_i32 = arith.constant 1 : i32
      %9 = arith.muli %c0_i32_10, %c1_i32 : i32
      %c0_i32_11 = arith.constant 0 : i32
      %10 = arith.addi %c0_i32_11, %9 : i32
      %c8_i32 = arith.constant 8 : i32
      %11 = arith.muli %10, %c8_i32 : i32
      %12 = tpu.assume_multiple %11, 8 : i32
      %13 = arith.index_cast %12 : i32 to index
      %c0_12 = arith.constant 0 : index
      %14 = vector.load %arg2[%13, %c0_12] : memref<8x128xf32, #tpu.memory_space<vmem>>, vector<8x128xf32>
      %15 = arith.negf %14 : vector<8x128xf32>
      %16 = math.exp %15 : vector<8x128xf32>
      %cst_13 = arith.constant 1.000000e+00 : f32
      %17 = vector.broadcast %cst_13 : f32 to vector<8x128xf32>
      %18 = arith.addf %17, %16 : vector<8x128xf32>
      %19 = arith.divf %17, %18 : vector<8x128xf32>
      %20 = arith.mulf %14, %19 : vector<8x128xf32>
      %21 = arith.index_cast %12 : i32 to index
      %c0_14 = arith.constant 0 : index
      %22 = vector.load %arg7[%21, %c0_14] : memref<8x1024xf32, #tpu.memory_space<vmem>>, vector<8x128xf32>
      tpu.vector_store %arg7[%21, %c0_14], %20 {strides = array<i32>} : memref<8x1024xf32, #tpu.memory_space<vmem>>, vector<8x128xf32>,
      %23 = vector.extract_strided_slice %7 {offsets = [0, 0], sizes = [1, 128], strides = [1, 1]} : vector<11x128xf32> to vector<1x128xf32>
      %24 = vector.broadcast %23 : vector<1x128xf32> to vector<8x128xf32>
      %25 = arith.subf %14, %24 : vector<8x128xf32>
      %26 = vector.extract_strided_slice %7 {offsets = [1, 0], sizes = [1, 128], strides = [1, 1]} : vector<11x128xf32> to vector<1x128xf32>
      %27 = vector.broadcast %26 : vector<1x128xf32> to vector<8x128xf32>
      %28 = arith.subf %14, %27 : vector<8x128xf32>
      %29 = vector.extract_strided_slice %7 {offsets = [2, 0], sizes = [1, 128], strides = [1, 1]} : vector<11x128xf32> to vector<1x128xf32>
      %30 = vector.broadcast %29 : vector<1x128xf32> to vector<8x128xf32>
      %31 = arith.subf %14, %30 : vector<8x128xf32>
      %32 = vector.extract_strided_slice %7 {offsets = [3, 0], sizes = [1, 128], strides = [1, 1]} : vector<11x128xf32> to vector<1x128xf32>
      %33 = vector.broadcast %32 : vector<1x128xf32> to vector<8x128xf32>
      %34 = arith.subf %14, %33 : vector<8x128xf32>
      %35 = vector.extract_strided_slice %7 {offsets = [4, 0], sizes = [1, 128], strides = [1, 1]} : vector<11x128xf32> to vector<1x128xf32>
      %36 = vector.broadcast %35 : vector<1x128xf32> to vector<8x128xf32>
      %37 = arith.subf %14, %36 : vector<8x128xf32>
      %38 = vector.extract_strided_slice %7 {offsets = [5, 0], sizes = [1, 128], strides = [1, 1]} : vector<11x128xf32> to vector<1x128xf32>
      %39 = vector.broadcast %38 : vector<1x128xf32> to vector<8x128xf32>
      %40 = arith.subf %14, %39 : vector<8x128xf32>
      %41 = vector.extract_strided_slice %7 {offsets = [6, 0], sizes = [1, 128], strides = [1, 1]} : vector<11x128xf32> to vector<1x128xf32>
      %42 = vector.broadcast %41 : vector<1x128xf32> to vector<8x128xf32>
      %43 = arith.subf %14, %42 : vector<8x128xf32>
      %44 = vector.extract_strided_slice %7 {offsets = [7, 0], sizes = [1, 128], strides = [1, 1]} : vector<11x128xf32> to vector<1x128xf32>
      %45 = vector.broadcast %44 : vector<1x128xf32> to vector<8x128xf32>
      %46 = arith.subf %14, %45 : vector<8x128xf32>
      %47 = vector.extract_strided_slice %7 {offsets = [8, 0], sizes = [1, 128], strides = [1, 1]} : vector<11x128xf32> to vector<1x128xf32>
      %48 = vector.broadcast %47 : vector<1x128xf32> to vector<8x128xf32>
      %49 = arith.subf %14, %48 : vector<8x128xf32>
      %50 = vector.extract_strided_slice %7 {offsets = [9, 0], sizes = [1, 128], strides = [1, 1]} : vector<11x128xf32> to vector<1x128xf32>
      %51 = vector.broadcast %50 : vector<1x128xf32> to vector<8x128xf32>
      %52 = arith.subf %14, %51 : vector<8x128xf32>
      %53 = vector.extract_strided_slice %7 {offsets = [10, 0], sizes = [1, 128], strides = [1, 1]} : vector<11x128xf32> to vector<1x128xf32>
      %54 = vector.broadcast %53 : vector<1x128xf32> to vector<8x128xf32>
      %55 = arith.subf %14, %54 : vector<8x128xf32>
      %cst_15 = arith.constant 0.000000e+00 : f32
      %56 = vector.broadcast %cst_15 : f32 to vector<8x128xf32>
      %57 = arith.cmpf oge, %25, %56 : vector<8x128xf32>
      %cst_16 = arith.constant 0.000000e+00 : f32
      %58 = vector.broadcast %cst_16 : f32 to vector<8x128xf32>
      %59 = arith.cmpf olt, %28, %58 : vector<8x128xf32>
      %60 = arith.andi %57, %59 : vector<8x128xi1>
      %61 = arith.extui %60 : vector<8x128xi1> to vector<8x128xi32>
      %62 = arith.sitofp %61 : vector<8x128xi32> to vector<8x128xf32>
      %cst_17 = arith.constant 0.000000e+00 : f32
      %63 = vector.broadcast %cst_17 : f32 to vector<8x128xf32>
      %64 = arith.cmpf oge, %28, %63 : vector<8x128xf32>
      %cst_18 = arith.constant 0.000000e+00 : f32
      %65 = vector.broadcast %cst_18 : f32 to vector<8x128xf32>
      %66 = arith.cmpf olt, %31, %65 : vector<8x128xf32>
      %67 = arith.andi %64, %66 : vector<8x128xi1>
      %68 = arith.extui %67 : vector<8x128xi1> to vector<8x128xi32>
      %69 = arith.sitofp %68 : vector<8x128xi32> to vector<8x128xf32>
      %cst_19 = arith.constant 0.000000e+00 : f32
      %70 = vector.broadcast %cst_19 : f32 to vector<8x128xf32>
      %71 = arith.cmpf oge, %31, %70 : vector<8x128xf32>
      %cst_20 = arith.constant 0.000000e+00 : f32
      %72 = vector.broadcast %cst_20 : f32 to vector<8x128xf32>
      %73 = arith.cmpf olt, %34, %72 : vector<8x128xf32>
      %74 = arith.andi %71, %73 : vector<8x128xi1>
      %75 = arith.extui %74 : vector<8x128xi1> to vector<8x128xi32>
      %76 = arith.sitofp %75 : vector<8x128xi32> to vector<8x128xf32>
      %cst_21 = arith.constant 0.000000e+00 : f32
      %77 = vector.broadcast %cst_21 : f32 to vector<8x128xf32>
      %78 = arith.cmpf oge, %34, %77 : vector<8x128xf32>
      %cst_22 = arith.constant 0.000000e+00 : f32
      %79 = vector.broadcast %cst_22 : f32 to vector<8x128xf32>
      %80 = arith.cmpf olt, %37, %79 : vector<8x128xf32>
      %81 = arith.andi %78, %80 : vector<8x128xi1>
      %82 = arith.extui %81 : vector<8x128xi1> to vector<8x128xi32>
      %83 = arith.sitofp %82 : vector<8x128xi32> to vector<8x128xf32>
      %cst_23 = arith.constant 0.000000e+00 : f32
      %84 = vector.broadcast %cst_23 : f32 to vector<8x128xf32>
      %85 = arith.cmpf oge, %37, %84 : vector<8x128xf32>
      %cst_24 = arith.constant 0.000000e+00 : f32
      %86 = vector.broadcast %cst_24 : f32 to vector<8x128xf32>
      %87 = arith.cmpf olt, %40, %86 : vector<8x128xf32>
      %88 = arith.andi %85, %87 : vector<8x128xi1>
      %89 = arith.extui %88 : vector<8x128xi1> to vector<8x128xi32>
      %90 = arith.sitofp %89 : vector<8x128xi32> to vector<8x128xf32>
      %cst_25 = arith.constant 0.000000e+00 : f32
      %91 = vector.broadcast %cst_25 : f32 to vector<8x128xf32>
      %92 = arith.cmpf oge, %40, %91 : vector<8x128xf32>
      %cst_26 = arith.constant 0.000000e+00 : f32
      %93 = vector.broadcast %cst_26 : f32 to vector<8x128xf32>
      %94 = arith.cmpf olt, %43, %93 : vector<8x128xf32>
      %95 = arith.andi %92, %94 : vector<8x128xi1>
      %96 = arith.extui %95 : vector<8x128xi1> to vector<8x128xi32>
      %97 = arith.sitofp %96 : vector<8x128xi32> to vector<8x128xf32>
      %cst_27 = arith.constant 0.000000e+00 : f32
      %98 = vector.broadcast %cst_27 : f32 to vector<8x128xf32>
      %99 = arith.cmpf oge, %43, %98 : vector<8x128xf32>
      %cst_28 = arith.constant 0.000000e+00 : f32
      %100 = vector.broadcast %cst_28 : f32 to vector<8x128xf32>
      %101 = arith.cmpf olt, %46, %100 : vector<8x128xf32>
      %102 = arith.andi %99, %101 : vector<8x128xi1>
      %103 = arith.extui %102 : vector<8x128xi1> to vector<8x128xi32>
      %104 = arith.sitofp %103 : vector<8x128xi32> to vector<8x128xf32>
      %cst_29 = arith.constant 0.000000e+00 : f32
      %105 = vector.broadcast %cst_29 : f32 to vector<8x128xf32>
      %106 = arith.cmpf oge, %46, %105 : vector<8x128xf32>
      %cst_30 = arith.constant 0.000000e+00 : f32
      %107 = vector.broadcast %cst_30 : f32 to vector<8x128xf32>
      %108 = arith.cmpf olt, %49, %107 : vector<8x128xf32>
      %109 = arith.andi %106, %108 : vector<8x128xi1>
      %110 = arith.extui %109 : vector<8x128xi1> to vector<8x128xi32>
      %111 = arith.sitofp %110 : vector<8x128xi32> to vector<8x128xf32>
      %cst_31 = arith.constant 0.000000e+00 : f32
      %112 = vector.broadcast %cst_31 : f32 to vector<8x128xf32>
      %113 = arith.cmpf oge, %49, %112 : vector<8x128xf32>
      %cst_32 = arith.constant 0.000000e+00 : f32
      %114 = vector.broadcast %cst_32 : f32 to vector<8x128xf32>
      %115 = arith.cmpf olt, %52, %114 : vector<8x128xf32>
      %116 = arith.andi %113, %115 : vector<8x128xi1>
      %117 = arith.extui %116 : vector<8x128xi1> to vector<8x128xi32>
      %118 = arith.sitofp %117 : vector<8x128xi32> to vector<8x128xf32>
      %cst_33 = arith.constant 0.000000e+00 : f32
      %119 = vector.broadcast %cst_33 : f32 to vector<8x128xf32>
      %120 = arith.cmpf oge, %52, %119 : vector<8x128xf32>
      %cst_34 = arith.constant 0.000000e+00 : f32
      %121 = vector.broadcast %cst_34 : f32 to vector<8x128xf32>
      %122 = arith.cmpf olt, %55, %121 : vector<8x128xf32>
      %123 = arith.andi %120, %122 : vector<8x128xi1>
      %124 = arith.extui %123 : vector<8x128xi1> to vector<8x128xi32>
      %125 = arith.sitofp %124 : vector<8x128xi32> to vector<8x128xf32>
      %126 = vector.extract_strided_slice %8 {offsets = [0, 0], sizes = [1, 128], strides = [1, 1]} : vector<33x128xf32> to vector<1x128xf32>
      %127 = vector.broadcast %126 : vector<1x128xf32> to vector<8x128xf32>
      %128 = arith.mulf %25, %127 : vector<8x128xf32>
      %129 = vector.extract_strided_slice %8 {offsets = [1, 0], sizes = [1, 128], strides = [1, 1]} : vector<33x128xf32> to vector<1x128xf32>
      %130 = vector.broadcast %129 : vector<1x128xf32> to vector<8x128xf32>
      %131 = arith.mulf %28, %130 : vector<8x128xf32>
      %132 = vector.extract_strided_slice %8 {offsets = [2, 0], sizes = [1, 128], strides = [1, 1]} : vector<33x128xf32> to vector<1x128xf32>
      %133 = vector.broadcast %132 : vector<1x128xf32> to vector<8x128xf32>
      %134 = arith.mulf %31, %133 : vector<8x128xf32>
      %135 = vector.extract_strided_slice %8 {offsets = [3, 0], sizes = [1, 128], strides = [1, 1]} : vector<33x128xf32> to vector<1x128xf32>
      %136 = vector.broadcast %135 : vector<1x128xf32> to vector<8x128xf32>
      %137 = arith.mulf %34, %136 : vector<8x128xf32>
      %138 = vector.extract_strided_slice %8 {offsets = [4, 0], sizes = [1, 128], strides = [1, 1]} : vector<33x128xf32> to vector<1x128xf32>
      %139 = vector.broadcast %138 : vector<1x128xf32> to vector<8x128xf32>
      %140 = arith.mulf %37, %139 : vector<8x128xf32>
      %141 = vector.extract_strided_slice %8 {offsets = [5, 0], sizes = [1, 128], strides = [1, 1]} : vector<33x128xf32> to vector<1x128xf32>
      %142 = vector.broadcast %141 : vector<1x128xf32> to vector<8x128xf32>
      %143 = arith.mulf %40, %142 : vector<8x128xf32>
      %144 = vector.extract_strided_slice %8 {offsets = [6, 0], sizes = [1, 128], strides = [1, 1]} : vector<33x128xf32> to vector<1x128xf32>
      %145 = vector.broadcast %144 : vector<1x128xf32> to vector<8x128xf32>
      %146 = arith.mulf %43, %145 : vector<8x128xf32>
      %147 = vector.extract_strided_slice %8 {offsets = [7, 0], sizes = [1, 128], strides = [1, 1]} : vector<33x128xf32> to vector<1x128xf32>
      %148 = vector.broadcast %147 : vector<1x128xf32> to vector<8x128xf32>
      %149 = arith.mulf %46, %148 : vector<8x128xf32>
      %150 = vector.extract_strided_slice %8 {offsets = [8, 0], sizes = [1, 128], strides = [1, 1]} : vector<33x128xf32> to vector<1x128xf32>
      %151 = vector.broadcast %150 : vector<1x128xf32> to vector<8x128xf32>
      %152 = arith.mulf %49, %151 : vector<8x128xf32>
      %153 = vector.extract_strided_slice %8 {offsets = [9, 0], sizes = [1, 128], strides = [1, 1]} : vector<33x128xf32> to vector<1x128xf32>
      %154 = vector.broadcast %153 : vector<1x128xf32> to vector<8x128xf32>
      %155 = arith.mulf %52, %154 : vector<8x128xf32>
      %156 = arith.mulf %128, %62 : vector<8x128xf32>
      %cst_35 = arith.constant 1.000000e+00 : f32
      %157 = vector.broadcast %cst_35 : f32 to vector<8x128xf32>
      %158 = arith.subf %157, %131 : vector<8x128xf32>
      %159 = arith.mulf %158, %69 : vector<8x128xf32>
      %160 = arith.addf %156, %159 : vector<8x128xf32>
      %161 = arith.mulf %131, %69 : vector<8x128xf32>
      %cst_36 = arith.constant 1.000000e+00 : f32
      %162 = vector.broadcast %cst_36 : f32 to vector<8x128xf32>
      %163 = arith.subf %162, %134 : vector<8x128xf32>
      %164 = arith.mulf %163, %76 : vector<8x128xf32>
      %165 = arith.addf %161, %164 : vector<8x128xf32>
      %166 = arith.mulf %134, %76 : vector<8x128xf32>
      %cst_37 = arith.constant 1.000000e+00 : f32
      %167 = vector.broadcast %cst_37 : f32 to vector<8x128xf32>
      %168 = arith.subf %167, %137 : vector<8x128xf32>
      %169 = arith.mulf %168, %83 : vector<8x128xf32>
      %170 = arith.addf %166, %169 : vector<8x128xf32>
      %171 = arith.mulf %137, %83 : vector<8x128xf32>
      %cst_38 = arith.constant 1.000000e+00 : f32
      %172 = vector.broadcast %cst_38 : f32 to vector<8x128xf32>
      %173 = arith.subf %172, %140 : vector<8x128xf32>
      %174 = arith.mulf %173, %90 : vector<8x128xf32>
      %175 = arith.addf %171, %174 : vector<8x128xf32>
      %176 = arith.mulf %140, %90 : vector<8x128xf32>
      %cst_39 = arith.constant 1.000000e+00 : f32
      %177 = vector.broadcast %cst_39 : f32 to vector<8x128xf32>
      %178 = arith.subf %177, %143 : vector<8x128xf32>
      %179 = arith.mulf %178, %97 : vector<8x128xf32>
      %180 = arith.addf %176, %179 : vector<8x128xf32>
      %181 = arith.mulf %143, %97 : vector<8x128xf32>
      %cst_40 = arith.constant 1.000000e+00 : f32
      %182 = vector.broadcast %cst_40 : f32 to vector<8x128xf32>
      %183 = arith.subf %182, %146 : vector<8x128xf32>
      %184 = arith.mulf %183, %104 : vector<8x128xf32>
      %185 = arith.addf %181, %184 : vector<8x128xf32>
      %186 = arith.mulf %146, %104 : vector<8x128xf32>
      %cst_41 = arith.constant 1.000000e+00 : f32
      %187 = vector.broadcast %cst_41 : f32 to vector<8x128xf32>
      %188 = arith.subf %187, %149 : vector<8x128xf32>
      %189 = arith.mulf %188, %111 : vector<8x128xf32>
      %190 = arith.addf %186, %189 : vector<8x128xf32>
      %191 = arith.mulf %149, %111 : vector<8x128xf32>
      %cst_42 = arith.constant 1.000000e+00 : f32
      %192 = vector.broadcast %cst_42 : f32 to vector<8x128xf32>
      %193 = arith.subf %192, %152 : vector<8x128xf32>
      %194 = arith.mulf %193, %118 : vector<8x128xf32>
      %195 = arith.addf %191, %194 : vector<8x128xf32>
      %196 = arith.mulf %152, %118 : vector<8x128xf32>
      %cst_43 = arith.constant 1.000000e+00 : f32
      %197 = vector.broadcast %cst_43 : f32 to vector<8x128xf32>
      %198 = arith.subf %197, %155 : vector<8x128xf32>
      %199 = arith.mulf %198, %125 : vector<8x128xf32>
      %200 = arith.addf %196, %199 : vector<8x128xf32>
      %201 = vector.extract_strided_slice %8 {offsets = [11, 0], sizes = [1, 128], strides = [1, 1]} : vector<33x128xf32> to vector<1x128xf32>
      %202 = vector.broadcast %201 : vector<1x128xf32> to vector<8x128xf32>
      %203 = arith.mulf %25, %202 : vector<8x128xf32>
      %204 = vector.extract_strided_slice %8 {offsets = [12, 0], sizes = [1, 128], strides = [1, 1]} : vector<33x128xf32> to vector<1x128xf32>
      %205 = vector.broadcast %204 : vector<1x128xf32> to vector<8x128xf32>
      %206 = arith.mulf %28, %205 : vector<8x128xf32>
      %207 = vector.extract_strided_slice %8 {offsets = [13, 0], sizes = [1, 128], strides = [1, 1]} : vector<33x128xf32> to vector<1x128xf32>
      %208 = vector.broadcast %207 : vector<1x128xf32> to vector<8x128xf32>
      %209 = arith.mulf %31, %208 : vector<8x128xf32>
      %210 = vector.extract_strided_slice %8 {offsets = [14, 0], sizes = [1, 128], strides = [1, 1]} : vector<33x128xf32> to vector<1x128xf32>
      %211 = vector.broadcast %210 : vector<1x128xf32> to vector<8x128xf32>
      %212 = arith.mulf %34, %211 : vector<8x128xf32>
      %213 = vector.extract_strided_slice %8 {offsets = [15, 0], sizes = [1, 128], strides = [1, 1]} : vector<33x128xf32> to vector<1x128xf32>
      %214 = vector.broadcast %213 : vector<1x128xf32> to vector<8x128xf32>
      %215 = arith.mulf %37, %214 : vector<8x128xf32>
      %216 = vector.extract_strided_slice %8 {offsets = [16, 0], sizes = [1, 128], strides = [1, 1]} : vector<33x128xf32> to vector<1x128xf32>
      %217 = vector.broadcast %216 : vector<1x128xf32> to vector<8x128xf32>
      %218 = arith.mulf %40, %217 : vector<8x128xf32>
      %219 = vector.extract_strided_slice %8 {offsets = [17, 0], sizes = [1, 128], strides = [1, 1]} : vector<33x128xf32> to vector<1x128xf32>
      %220 = vector.broadcast %219 : vector<1x128xf32> to vector<8x128xf32>
      %221 = arith.mulf %43, %220 : vector<8x128xf32>
      %222 = vector.extract_strided_slice %8 {offsets = [18, 0], sizes = [1, 128], strides = [1, 1]} : vector<33x128xf32> to vector<1x128xf32>
      %223 = vector.broadcast %222 : vector<1x128xf32> to vector<8x128xf32>
      %224 = arith.mulf %46, %223 : vector<8x128xf32>
      %225 = vector.extract_strided_slice %8 {offsets = [19, 0], sizes = [1, 128], strides = [1, 1]} : vector<33x128xf32> to vector<1x128xf32>
      %226 = vector.broadcast %225 : vector<1x128xf32> to vector<8x128xf32>
      %227 = arith.mulf %49, %226 : vector<8x128xf32>
      %228 = arith.mulf %203, %160 : vector<8x128xf32>
      %cst_44 = arith.constant 1.000000e+00 : f32
      %229 = vector.broadcast %cst_44 : f32 to vector<8x128xf32>
      %230 = arith.subf %229, %206 : vector<8x128xf32>
      %231 = arith.mulf %230, %165 : vector<8x128xf32>
      %232 = arith.addf %228, %231 : vector<8x128xf32>
      %233 = arith.mulf %206, %165 : vector<8x128xf32>
      %cst_45 = arith.constant 1.000000e+00 : f32
      %234 = vector.broadcast %cst_45 : f32 to vector<8x128xf32>
      %235 = arith.subf %234, %209 : vector<8x128xf32>
      %236 = arith.mulf %235, %170 : vector<8x128xf32>
      %237 = arith.addf %233, %236 : vector<8x128xf32>
      %238 = arith.mulf %209, %170 : vector<8x128xf32>
      %cst_46 = arith.constant 1.000000e+00 : f32
      %239 = vector.broadcast %cst_46 : f32 to vector<8x128xf32>
      %240 = arith.subf %239, %212 : vector<8x128xf32>
      %241 = arith.mulf %240, %175 : vector<8x128xf32>
      %242 = arith.addf %238, %241 : vector<8x128xf32>
      %243 = arith.mulf %212, %175 : vector<8x128xf32>
      %cst_47 = arith.constant 1.000000e+00 : f32
      %244 = vector.broadcast %cst_47 : f32 to vector<8x128xf32>
      %245 = arith.subf %244, %215 : vector<8x128xf32>
      %246 = arith.mulf %245, %180 : vector<8x128xf32>
      %247 = arith.addf %243, %246 : vector<8x128xf32>
      %248 = arith.mulf %215, %180 : vector<8x128xf32>
      %cst_48 = arith.constant 1.000000e+00 : f32
      %249 = vector.broadcast %cst_48 : f32 to vector<8x128xf32>
      %250 = arith.subf %249, %218 : vector<8x128xf32>
      %251 = arith.mulf %250, %185 : vector<8x128xf32>
      %252 = arith.addf %248, %251 : vector<8x128xf32>
      %253 = arith.mulf %218, %185 : vector<8x128xf32>
      %cst_49 = arith.constant 1.000000e+00 : f32
      %254 = vector.broadcast %cst_49 : f32 to vector<8x128xf32>
      %255 = arith.subf %254, %221 : vector<8x128xf32>
      %256 = arith.mulf %255, %190 : vector<8x128xf32>
      %257 = arith.addf %253, %256 : vector<8x128xf32>
      %258 = arith.mulf %221, %190 : vector<8x128xf32>
      %cst_50 = arith.constant 1.000000e+00 : f32
      %259 = vector.broadcast %cst_50 : f32 to vector<8x128xf32>
      %260 = arith.subf %259, %224 : vector<8x128xf32>
      %261 = arith.mulf %260, %195 : vector<8x128xf32>
      %262 = arith.addf %258, %261 : vector<8x128xf32>
      %263 = arith.mulf %224, %195 : vector<8x128xf32>
      %cst_51 = arith.constant 1.000000e+00 : f32
      %264 = vector.broadcast %cst_51 : f32 to vector<8x128xf32>
      %265 = arith.subf %264, %227 : vector<8x128xf32>
      %266 = arith.mulf %265, %200 : vector<8x128xf32>
      %267 = arith.addf %263, %266 : vector<8x128xf32>
      %268 = vector.extract_strided_slice %8 {offsets = [22, 0], sizes = [1, 128], strides = [1, 1]} : vector<33x128xf32> to vector<1x128xf32>
      %269 = vector.broadcast %268 : vector<1x128xf32> to vector<8x128xf32>
      %270 = arith.mulf %25, %269 : vector<8x128xf32>
      %271 = vector.extract_strided_slice %8 {offsets = [23, 0], sizes = [1, 128], strides = [1, 1]} : vector<33x128xf32> to vector<1x128xf32>
      %272 = vector.broadcast %271 : vector<1x128xf32> to vector<8x128xf32>
      %273 = arith.mulf %28, %272 : vector<8x128xf32>
      %274 = vector.extract_strided_slice %8 {offsets = [24, 0], sizes = [1, 128], strides = [1, 1]} : vector<33x128xf32> to vector<1x128xf32>
      %275 = vector.broadcast %274 : vector<1x128xf32> to vector<8x128xf32>
      %276 = arith.mulf %31, %275 : vector<8x128xf32>
      %277 = vector.extract_strided_slice %8 {offsets = [25, 0], sizes = [1, 128], strides = [1, 1]} : vector<33x128xf32> to vector<1x128xf32>
      %278 = vector.broadcast %277 : vector<1x128xf32> to vector<8x128xf32>
      %279 = arith.mulf %34, %278 : vector<8x128xf32>
      %280 = vector.extract_strided_slice %8 {offsets = [26, 0], sizes = [1, 128], strides = [1, 1]} : vector<33x128xf32> to vector<1x128xf32>
      %281 = vector.broadcast %280 : vector<1x128xf32> to vector<8x128xf32>
      %282 = arith.mulf %37, %281 : vector<8x128xf32>
      %283 = vector.extract_strided_slice %8 {offsets = [27, 0], sizes = [1, 128], strides = [1, 1]} : vector<33x128xf32> to vector<1x128xf32>
      %284 = vector.broadcast %283 : vector<1x128xf32> to vector<8x128xf32>
      %285 = arith.mulf %40, %284 : vector<8x128xf32>
      %286 = vector.extract_strided_slice %8 {offsets = [28, 0], sizes = [1, 128], strides = [1, 1]} : vector<33x128xf32> to vector<1x128xf32>
      %287 = vector.broadcast %286 : vector<1x128xf32> to vector<8x128xf32>
      %288 = arith.mulf %43, %287 : vector<8x128xf32>
      %289 = vector.extract_strided_slice %8 {offsets = [29, 0], sizes = [1, 128], strides = [1, 1]} : vector<33x128xf32> to vector<1x128xf32>
      %290 = vector.broadcast %289 : vector<1x128xf32> to vector<8x128xf32>
      %291 = arith.mulf %46, %290 : vector<8x128xf32>
      %292 = arith.mulf %270, %232 : vector<8x128xf32>
      %cst_52 = arith.constant 1.000000e+00 : f32
      %293 = vector.broadcast %cst_52 : f32 to vector<8x128xf32>
      %294 = arith.subf %293, %273 : vector<8x128xf32>
      %295 = arith.mulf %294, %237 : vector<8x128xf32>
      %296 = arith.addf %292, %295 : vector<8x128xf32>
      %297 = arith.mulf %273, %237 : vector<8x128xf32>
      %cst_53 = arith.constant 1.000000e+00 : f32
      %298 = vector.broadcast %cst_53 : f32 to vector<8x128xf32>
      %299 = arith.subf %298, %276 : vector<8x128xf32>
      %300 = arith.mulf %299, %242 : vector<8x128xf32>
      %301 = arith.addf %297, %300 : vector<8x128xf32>
      %302 = arith.mulf %276, %242 : vector<8x128xf32>
      %cst_54 = arith.constant 1.000000e+00 : f32
      %303 = vector.broadcast %cst_54 : f32 to vector<8x128xf32>
      %304 = arith.subf %303, %279 : vector<8x128xf32>
      %305 = arith.mulf %304, %247 : vector<8x128xf32>
      %306 = arith.addf %302, %305 : vector<8x128xf32>
      %307 = arith.mulf %279, %247 : vector<8x128xf32>
      %cst_55 = arith.constant 1.000000e+00 : f32
      %308 = vector.broadcast %cst_55 : f32 to vector<8x128xf32>
      %309 = arith.subf %308, %282 : vector<8x128xf32>
      %310 = arith.mulf %309, %252 : vector<8x128xf32>
      %311 = arith.addf %307, %310 : vector<8x128xf32>
      %312 = arith.mulf %282, %252 : vector<8x128xf32>
      %cst_56 = arith.constant 1.000000e+00 : f32
      %313 = vector.broadcast %cst_56 : f32 to vector<8x128xf32>
      %314 = arith.subf %313, %285 : vector<8x128xf32>
      %315 = arith.mulf %314, %257 : vector<8x128xf32>
      %316 = arith.addf %312, %315 : vector<8x128xf32>
      %317 = arith.mulf %285, %257 : vector<8x128xf32>
      %cst_57 = arith.constant 1.000000e+00 : f32
      %318 = vector.broadcast %cst_57 : f32 to vector<8x128xf32>
      %319 = arith.subf %318, %288 : vector<8x128xf32>
      %320 = arith.mulf %319, %262 : vector<8x128xf32>
      %321 = arith.addf %317, %320 : vector<8x128xf32>
      %322 = arith.mulf %288, %262 : vector<8x128xf32>
      %cst_58 = arith.constant 1.000000e+00 : f32
      %323 = vector.broadcast %cst_58 : f32 to vector<8x128xf32>
      %324 = arith.subf %323, %291 : vector<8x128xf32>
      %325 = arith.mulf %324, %267 : vector<8x128xf32>
      %326 = arith.addf %322, %325 : vector<8x128xf32>
      %327 = arith.index_cast %12 : i32 to index
      %c128 = arith.constant 128 : index
      %328 = vector.load %arg7[%327, %c128] : memref<8x1024xf32, #tpu.memory_space<vmem>>, vector<8x128xf32>
      tpu.vector_store %arg7[%327, %c128], %296 {strides = array<i32>} : memref<8x1024xf32, #tpu.memory_space<vmem>>, vector<8x128xf32>,
      %329 = arith.index_cast %12 : i32 to index
      %c256 = arith.constant 256 : index
      %330 = vector.load %arg7[%329, %c256] : memref<8x1024xf32, #tpu.memory_space<vmem>>, vector<8x128xf32>
      tpu.vector_store %arg7[%329, %c256], %301 {strides = array<i32>} : memref<8x1024xf32, #tpu.memory_space<vmem>>, vector<8x128xf32>,
      %331 = arith.index_cast %12 : i32 to index
      %c384 = arith.constant 384 : index
      %332 = vector.load %arg7[%331, %c384] : memref<8x1024xf32, #tpu.memory_space<vmem>>, vector<8x128xf32>
      tpu.vector_store %arg7[%331, %c384], %306 {strides = array<i32>} : memref<8x1024xf32, #tpu.memory_space<vmem>>, vector<8x128xf32>,
      %333 = arith.index_cast %12 : i32 to index
      %c512 = arith.constant 512 : index
      %334 = vector.load %arg7[%333, %c512] : memref<8x1024xf32, #tpu.memory_space<vmem>>, vector<8x128xf32>
      tpu.vector_store %arg7[%333, %c512], %311 {strides = array<i32>} : memref<8x1024xf32, #tpu.memory_space<vmem>>, vector<8x128xf32>,
      %335 = arith.index_cast %12 : i32 to index
      %c640 = arith.constant 640 : index
      %336 = vector.load %arg7[%335, %c640] : memref<8x1024xf32, #tpu.memory_space<vmem>>, vector<8x128xf32>
      tpu.vector_store %arg7[%335, %c640], %316 {strides = array<i32>} : memref<8x1024xf32, #tpu.memory_space<vmem>>, vector<8x128xf32>,
      %337 = arith.index_cast %12 : i32 to index
      %c768 = arith.constant 768 : index
      %338 = vector.load %arg7[%337, %c768] : memref<8x1024xf32, #tpu.memory_space<vmem>>, vector<8x128xf32>
      tpu.vector_store %arg7[%337, %c768], %321 {strides = array<i32>} : memref<8x1024xf32, #tpu.memory_space<vmem>>, vector<8x128xf32>,
      %339 = arith.index_cast %12 : i32 to index
      %c896 = arith.constant 896 : index
      %340 = vector.load %arg7[%339, %c896] : memref<8x1024xf32, #tpu.memory_space<vmem>>, vector<8x128xf32>
      tpu.vector_store %arg7[%339, %c896], %326 {strides = array<i32>} : memref<8x1024xf32, #tpu.memory_space<vmem>>, vector<8x128xf32>,
      %c1_i32_59 = arith.constant 1 : i32
    } else {
    }
    %c0 = arith.constant 0 : index
    %c0_1 = arith.constant 0 : index
    %3 = vector.load %arg7[%c0, %c0_1] : memref<8x1024xf32, #tpu.memory_space<vmem>>, vector<8x1024xf32>
    %c0_2 = arith.constant 0 : index
    %c0_3 = arith.constant 0 : index
    %4 = vector.load %arg5[%c0_2, %c0_3] : memref<1024x128xf32, #tpu.memory_space<vmem>>, vector<1024x128xf32>
    %cst = arith.constant dense<0.000000e+00> : vector<8x128xf32>
    %5 = tpu.matmul %3, %4, %cst {dimension_numbers = #tpu.dot_dimension_numbers<[1], [0], [0], [1], [0, 0, 1, 1], [], []>} : vector<8x1024xf32>, vector<1024x128xf32>, vector<8x128xf32> -> vector<8x128xf32>
    %c0_4 = arith.constant 0 : index
    %c0_5 = arith.constant 0 : index
    %6 = vector.load %arg6[%c0_4, %c0_5] : memref<8x128xf32, #tpu.memory_space<vmem>>, vector<8x128xf32>
    tpu.vector_store %arg6[%c0_4, %c0_5], %5 {strides = array<i32>} : memref<8x128xf32, #tpu.memory_space<vmem>>, vector<8x128xf32>,
    return
  }
  func.func @transform_0(%arg0: i32, %arg1: i32) -> (i32, i32) {
    %c0_i32 = arith.constant 0 : i32
    %c0_i32_0 = arith.constant 0 : i32
    return %arg0, %c0_i32 : i32, i32
  }
  func.func @transform_1(%arg0: i32, %arg1: i32) -> (i32, i32) {
    %c0_i32 = arith.constant 0 : i32
    %c0_i32_0 = arith.constant 0 : i32
    %c0_i32_1 = arith.constant 0 : i32
    return %c0_i32, %c0_i32_0 : i32, i32
  }
  func.func @transform_2(%arg0: i32, %arg1: i32) -> (i32, i32) {
    %c0_i32 = arith.constant 0 : i32
    %c0_i32_0 = arith.constant 0 : i32
    %c0_i32_1 = arith.constant 0 : i32
    return %c0_i32, %c0_i32_0 : i32, i32
  }
  func.func @transform_3(%arg0: i32, %arg1: i32) -> (i32, i32) {
    %c0_i32 = arith.constant 0 : i32
    %c0_i32_0 = arith.constant 0 : i32
    return %c0_i32, %arg1 : i32, i32
  }
  func.func @transform_4(%arg0: i32, %arg1: i32) -> (i32, i32) {
    %c0_i32 = arith.constant 0 : i32
    return %arg0, %arg1 : i32, i32
  }
}

</mosaic_0001>

<bundles_post_ra>
// kernel: tpu_custom_call.1
= control target key start
LH: loop header
LB: loop body
LE: loop exit
PB: predicated region body
PF: predicated region fallthrough
CT: control target
= control target key end

     0   :  { %9 = vsyncpa [#allocation4], 0  ;;  %s1774_s0 = inlined_call_operand.hbm [shape: f32[8,128], index: 0, kind: input, shape index: {}]   ;;  %s1775_s1 = inlined_call_operand.hbm [shape: f32[11,128], index: 1, kind: input, shape index: {}]   ;;  %s1776_s2 = inlined_call_operand.hbm [shape: f32[33,128], index: 2, kind: input, shape index: {}]   ;;  %s1777_s3 = inlined_call_operand.hbm [shape: f32[1024,128], index: 3, kind: input, shape index: {}]   ;;  %s1778_s4 = inlined_call_operand.hbm [shape: f32[8,128], index: 4, kind: output, shape index: {}]  }
   0x1   :  { %10 = vsyncpa [#allocation7], 0 }
   0x2   :  { %11 = vsyncpa [#allocation10], 0 }
   0x3   :  { %12 = vsyncpa [#allocation5], 0  ;;  %s1279_s15 = smov [#allocation6]   ;;  %s1161_s19 = scalar_lea.hbm %s1775_s1, 256 }
   0x4   :  { %s28_s16 = sshll.u32 %s1279_s15, 4  ;;  %p1162_p0 = scmp.ne.s32.totalorder %s1775_s1, %s1161_s19  ;;  %s29_s16 = int_to_ptr.vmem [resolvable:$true] %s28_s16 }
   0x5   :  { %p1165_p1 = scmp.lt.u32.totalorder %s1161_s19, %s1775_s1 }
   0x7   :  { %p1167_p2 = pnand %p1165_p1, %p1162_p0 }
   0x9   :  { %1170 = shalt.err (!%p1167_p2)
}
   0xa   :  { %s1171_s24 = scalar_lea.vmem %s29_s16, 256  ;;  %p1176_p4 = scmp.lt.s32.totalorder %s29_s16, %s29_s16 }
   0xb   :  { %p1172_p3 = scmp.ne.s32.totalorder %s29_s16, %s1171_s24  ;;  %p1177_p5 = scmp.lt.s32.totalorder %s1171_s24, %s1171_s24 }
   0xd   :  { %p1178_p6 = por %p1177_p5, %p1176_p4 }
   0xf   :  { %p1179_p7 = pnand %p1178_p6, %p1172_p3 }
  0x11   :  { %1182 = shalt.err (!%p1179_p7)
}
  0x12   :  { %s1280_s25 = smov 128   ;;  %s1281_s26 = smov 8  }
  0x13   :  { %34 = dma.hbm_to_vmem [thread:$0]  %s1775_s1, 256, %s29_s16, [#allocation7], %s1280_s25, %s1280_s25, %s1281_s26  }
  0x14   :  { %s1282_s29 = smov [#allocation3]   ;;  %s1283_s5 = smov [#allocation8]  }
  0x15   :  { %s19_s30 = sshll.u32 %s1282_s29, 4  ;;  %s40_s6 = sshll.u32 %s1283_s5, 4  ;;  %s20_s30 = int_to_ptr.vmem [resolvable:$true] %s19_s30  ;;  %s41_s6 = int_to_ptr.vmem [resolvable:$true] %s40_s6 }
  0x16   :  { %s1183_s9 = scalar_lea.hbm %s1774_s0, 128 }
  0x17   :  { %p1184_p8 = scmp.ne.s32.totalorder %s1774_s0, %s1183_s9  ;;  %p1187_p9 = scmp.lt.u32.totalorder %s1183_s9, %s1774_s0 }
  0x19   :  { %p1189_p10 = pnand %p1187_p9, %p1184_p8 }
  0x1b   :  { %1192 = shalt.err (!%p1189_p10)
}
  0x1c   :  { %s1193_s1 = scalar_lea.vmem %s20_s30, 128  ;;  %p1198_p12 = scmp.lt.s32.totalorder %s20_s30, %s20_s30 }
  0x1d   :  { %p1194_p11 = scmp.ne.s32.totalorder %s20_s30, %s1193_s1  ;;  %p1199_p13 = scmp.lt.s32.totalorder %s1193_s1, %s1193_s1 }
  0x1f   :  { %p1200_p0 = por %p1199_p13, %p1198_p12 }
  0x21   :  { %p1201_p1 = pnand %p1200_p0, %p1194_p11 }
  0x23   :  { %1204 = shalt.err (!%p1201_p1)
}
  0x24   :  { %22 = dma.hbm_to_vmem [thread:$0]  %s1774_s0, 128, %s20_s30, [#allocation4]  }
  0x25   :  { %s1205_s18 = scalar_lea.hbm %s1776_s2, 640 }
  0x26   :  { %p1206_p2 = scmp.ne.s32.totalorder %s1776_s2, %s1205_s18  ;;  %p1209_p3 = scmp.lt.u32.totalorder %s1205_s18, %s1776_s2 }
  0x28   :  { %p1211_p4 = pnand %p1209_p3, %p1206_p2 }
  0x2a   :  { %1214 = shalt.err (!%p1211_p4)
}
  0x2b   :  { %s1215_s23 = scalar_lea.vmem %s41_s6, 640  ;;  %p1220_p6 = scmp.lt.s32.totalorder %s41_s6, %s41_s6 }
  0x2c   :  { %p1216_p5 = scmp.ne.s32.totalorder %s41_s6, %s1215_s23  ;;  %p1221_p7 = scmp.lt.s32.totalorder %s1215_s23, %s1215_s23 }
  0x2e   :  { %p1222_p8 = por %p1221_p7, %p1220_p6 }
  0x30   :  { %p1223_p9 = pnand %p1222_p8, %p1216_p5 }
  0x32   :  { %1226 = shalt.err (!%p1223_p9)
}
  0x33   :  { %46 = dma.hbm_to_vmem [thread:$0]  %s1776_s2, 640, %s41_s6, [#allocation7], %s1280_s25, %s1280_s25, %s1281_s26  }
  0x34   :  { %s1284_s27 = smov [#allocation9]   ;;  %s1227_s5 = scalar_lea.hbm %s1777_s3, 16384 }
  0x35   :  { %s52_s28 = sshll.u32 %s1284_s27, 4  ;;  %p1228_p10 = scmp.ne.s32.totalorder %s1777_s3, %s1227_s5  ;;  %s53_s28 = int_to_ptr.vmem [resolvable:$true] %s52_s28 }
  0x36   :  { %p1231_p11 = scmp.lt.u32.totalorder %s1227_s5, %s1777_s3 }
  0x38   :  { %p1233_p12 = pnand %p1231_p11, %p1228_p10 }
  0x3a   :  { %1236 = shalt.err (!%p1233_p12)
}
  0x3b   :  { %s1237_s11 = scalar_lea.vmem %s53_s28, 16384  ;;  %p1242_p0 = scmp.lt.s32.totalorder %s53_s28, %s53_s28 }
  0x3c   :  { %p1238_p13 = scmp.ne.s32.totalorder %s53_s28, %s1237_s11  ;;  %p1243_p1 = scmp.lt.s32.totalorder %s1237_s11, %s1237_s11 }
  0x3e   :  { %p1244_p2 = por %p1243_p1, %p1242_p0 }
  0x40   :  { %p1245_p3 = pnand %p1244_p2, %p1238_p13 }
  0x42   :  { %1248 = shalt.err (!%p1245_p3)
}
  0x43   :  { %58 = dma.hbm_to_vmem [thread:$0]  %s1777_s3, 16384, %s53_s28, [#allocation10], %s1280_s25, %s1280_s25, %s1281_s26  }
  0x44   :  { %1271 = dma.done.wait [#allocation4], 128  }
  0x45   :  { %1272 = vsyncadd [#allocation4], 4294967168 }
  0x46   :  { %1273 = dma.done.wait [#allocation7], 896  }
  0x47   :  { %1274 = vsyncadd [#allocation7], 4294966400 }
  0x48   :  { %1275 = dma.done.wait [#allocation10], 16384  }
  0x49   :  { %1276 = vsyncadd [#allocation10], 4294950912  ;;  %v460_v0 = vld [vmem:[#allocation9 + $0x80] sm:$0xff]  ;;  %v461_v1 = vld [vmem:[#allocation9 + $0x88] sm:$0xff]  ;;  %v93_v47 = vlaneseq  ;;  %s1286_s3 = smov [#allocation11]  }
  0x4a   :  { %v492_v2 = vld [vmem:[#allocation9 + $0x180] sm:$0xff]  ;;  %v1021_v3 = vpack.c.bf16 %v461_v1, %v460_v0  ;;  %v493_v4 = vld [vmem:[#allocation9 + $0x188] sm:$0xff]  ;;  %v462_v11 = vld [vmem:[#allocation9 + $0x90] sm:$0xff]  ;;  %s859_s25 = sshll.u32 %s1286_s3, 4  ;;  %s860_s25 = int_to_ptr.vmem [resolvable:$true] %s859_s25 }
  0x4b   :  { %v444_v5 = vld [vmem:[#allocation9] sm:$0xff]  ;;  %v445_v6 = vld [vmem:[#allocation9 + $0x8] sm:$0xff]  ;;  %v1053_v7 = vpack.c.bf16 %v493_v4, %v492_v2  ;;  %v463_v13 = vld [vmem:[#allocation9 + $0x98] sm:$0xff]  ;;  %v1369_v0 = vshrl.u32 %v93_v47, 7  ;;  %s1249_s26 = scalar_lea.vmem %s860_s25, 128  ;;  %p1254_p5 = scmp.lt.s32.totalorder %s860_s25, %s860_s25 }
  0x4c   :  { %v1023_v8 = vpack.c.bf16 %v445_v6, %v444_v5  ;;  %v476_v9 = vld [vmem:[#allocation9 + $0x100] sm:$0xff]  ;;  %v477_v10 = vld [vmem:[#allocation9 + $0x108] sm:$0xff]  ;;  %1022 = vmatprep.subr.bf16.mxu0 %v1021_v3  ;;  %v494_v14 = vld [vmem:[#allocation9 + $0x190] sm:$0xff]  ;;  %v1025_v16 = vpack.c.bf16 %v463_v13, %v462_v11  ;;  %p1250_p4 = scmp.ne.s32.totalorder %s860_s25, %s1249_s26  ;;  %p1255_p6 = scmp.lt.s32.totalorder %s1249_s26, %s1249_s26 }
  0x4d   :  { %v1055_v12 = vpack.c.bf16 %v477_v10, %v476_v9  ;;  %v495_v15 = vld [vmem:[#allocation9 + $0x198] sm:$0xff]  ;;  %1054 = vmatprep.subr.bf16.mxu1 %v1053_v7  ;;  %v446_v18 = vld [vmem:[#allocation9 + $0x10] sm:$0xff]  ;;  %v464_v23 = vld [vmem:[#allocation9 + $0xa0] sm:$0xff] }
  0x4e   :  { %1024 = vmatpush3.bf16.msra.mxu0 %v1023_v8  ;;  %v1057_v17 = vpack.c.bf16 %v495_v15, %v494_v14  ;;  %v447_v19 = vld [vmem:[#allocation9 + $0x18] sm:$0xff]  ;;  %v478_v20 = vld [vmem:[#allocation9 + $0x110] sm:$0xff]  ;;  %v465_v24 = vld [vmem:[#allocation9 + $0xa8] sm:$0xff]  ;;  %p1256_p7 = por %p1255_p6, %p1254_p5 }
  0x4f   :  { %1056 = vmatpush3.bf16.msra.mxu1 %v1055_v12  ;;  %v1027_v21 = vpack.c.bf16 %v447_v19, %v446_v18  ;;  %v479_v22 = vld [vmem:[#allocation9 + $0x118] sm:$0xff]  ;;  %1026 = vmatprep.subr.bf16.mxu0 %v1025_v16  ;;  %v1029_v26 = vpack.c.bf16 %v465_v24, %v464_v23  ;;  %v496_v27 = vld [vmem:[#allocation9 + $0x1a0] sm:$0xff]  ;;  %v497_v28 = vld [vmem:[#allocation9 + $0x1a8] sm:$0xff]  ;;  %v1385_v18 = vsub.s32 1, %v1369_v0  ;;  %v1388_v19 = vsub.s32 2, %v1369_v0 }
  0x50   :  { %1058 = vmatprep.subr.bf16.mxu1 %v1057_v17  ;;  %v1059_v25 = vpack.c.bf16 %v479_v22, %v478_v20  ;;  %v448_v29 = vld [vmem:[#allocation9 + $0x20] sm:$0xff]  ;;  %v1061_v30 = vpack.c.bf16 %v497_v28, %v496_v27  ;;  %v449_v31 = vld [vmem:[#allocation9 + $0x28] sm:$0xff]  ;;  %v466_v35 = vld [vmem:[#allocation9 + $0xb0] sm:$0xff]  ;;  %v1382_v17 = vsub.s32 0, %v1369_v0  ;;  %v1397_v24 = vsub.s32 3, %v1369_v0  ;;  %p1257_p8 = pnand %p1256_p7, %p1250_p4 }
  0x51   :  { %v480_v32 = vld [vmem:[#allocation9 + $0x120] sm:$0xff]  ;;  %v481_v33 = vld [vmem:[#allocation9 + $0x128] sm:$0xff]  ;;  %v1031_v34 = vpack.c.bf16 %v449_v31, %v448_v29  ;;  %v467_v36 = vld [vmem:[#allocation9 + $0xb8] sm:$0xff] }
  0x52   :  { %1028 = vmatpush3.bf16.msra.mxu0 %v1027_v21  ;;  %v498_v37 = vld [vmem:[#allocation9 + $0x1b0] sm:$0xff]  ;;  %v1063_v38 = vpack.c.bf16 %v481_v33, %v480_v32  ;;  %v1033_v39 = vpack.c.bf16 %v467_v36, %v466_v35  ;;  %v499_v40 = vld [vmem:[#allocation9 + $0x1b8] sm:$0xff]  ;;  %v468_v46 = vld [vmem:[#allocation9 + $0xc0] sm:$0xff] }
  0x53   :  { %1060 = vmatpush3.bf16.msra.mxu1 %v1059_v25  ;;  %1030 = vmatprep.subr.bf16.mxu0 %v1029_v26  ;;  %v450_v41 = vld [vmem:[#allocation9 + $0x30] sm:$0xff]  ;;  %v451_v42 = vld [vmem:[#allocation9 + $0x38] sm:$0xff]  ;;  %v1065_v43 = vpack.c.bf16 %v499_v40, %v498_v37  ;;  %v469_v48 = vld [vmem:[#allocation9 + $0xc8] sm:$0xff]  ;;  %v1400_v25 = vsub.s32 4, %v1369_v0  ;;  %v1403_v26 = vsub.s32 6, %v1369_v0 }
  0x54   :  { %1062 = vmatprep.subr.bf16.mxu1 %v1061_v30  ;;  %v482_v44 = vld [vmem:[#allocation9 + $0x130] sm:$0xff]  ;;  %v483_v45 = vld [vmem:[#allocation9 + $0x138] sm:$0xff]  ;;  %v500_v49 = vld [vmem:[#allocation9 + $0x1c0] sm:$0xff]  ;;  %v1035_v51 = vpack.c.bf16 %v451_v42, %v450_v41  ;;  %v1037_v56 = vpack.c.bf16 %v469_v48, %v468_v46 }
  0x55   :  { %v501_v50 = vld [vmem:[#allocation9 + $0x1c8] sm:$0xff]  ;;  %v452_v52 = vld [vmem:[#allocation9 + $0x40] sm:$0xff]  ;;  %v1067_v55 = vpack.c.bf16 %v483_v45, %v482_v44  ;;  %v470_v58 = vld [vmem:[#allocation9 + $0xd0] sm:$0xff] }
  0x56   :  { %1032 = vmatpush3.bf16.msra.mxu0 %v1031_v34  ;;  %v453_v53 = vld [vmem:[#allocation9 + $0x48] sm:$0xff]  ;;  %v484_v54 = vld [vmem:[#allocation9 + $0x140] sm:$0xff]  ;;  %v471_v59 = vld [vmem:[#allocation9 + $0xd8] sm:$0xff]  ;;  %v1069_v60 = vpack.c.bf16 %v501_v50, %v500_v49 }
  0x57   :  { %1064 = vmatpush3.bf16.msra.mxu1 %v1063_v38  ;;  %1034 = vmatprep.subr.bf16.mxu0 %v1033_v39  ;;  %v485_v57 = vld [vmem:[#allocation9 + $0x148] sm:$0xff]  ;;  %v502_v61 = vld [vmem:[#allocation9 + $0x1d0] sm:$0xff]  ;;  %v503_v62 = vld [vmem:[#allocation9 + $0x1d8] sm:$0xff]  ;;  %v1039_v4 = vpack.c.bf16 %v453_v53, %v452_v52  ;;  %v1041_v9 = vpack.c.bf16 %v471_v59, %v470_v58  ;;  %v1424_v39 = vsub.s32 5, %v1369_v0 }
  0x58   :  { %1066 = vmatprep.subr.bf16.mxu1 %v1065_v43  ;;  %v454_v63 = vld [vmem:[#allocation9 + $0x50] sm:$0xff]  ;;  %v455_v1 = vld [vmem:[#allocation9 + $0x58] sm:$0xff]  ;;  %v472_v5 = vld [vmem:[#allocation9 + $0xe0] sm:$0xff]  ;;  %v1071_v8 = vpack.c.bf16 %v485_v57, %v484_v54  ;;  %v1073_v13 = vpack.c.bf16 %v503_v62, %v502_v61  ;;  %v1465_v57 = vsub.s32 7, %v1369_v0 }
  0x59   :  { %v486_v2 = vld [vmem:[#allocation9 + $0x150] sm:$0xff]  ;;  %v487_v3 = vld [vmem:[#allocation9 + $0x158] sm:$0xff]  ;;  %v473_v6 = vld [vmem:[#allocation9 + $0xe8] sm:$0xff]  ;;  %v1043_v20 = vpack.c.bf16 %v455_v1, %v454_v63 }
  0x5a   :  { %1036 = vmatpush3.bf16.msra.mxu0 %v1035_v51  ;;  %v504_v7 = vld [vmem:[#allocation9 + $0x1e0] sm:$0xff]  ;;  %v505_v10 = vld [vmem:[#allocation9 + $0x1e8] sm:$0xff]  ;;  %v1379_v16 = vld [vmem:[#allocation9 + $0xf0] sm:$0xff]  ;;  %v1075_v27 = vpack.c.bf16 %v487_v3, %v486_v2  ;;  %v1045_v28 = vpack.c.bf16 %v473_v6, %v472_v5 }
  0x5b   :  { %1068 = vmatpush3.bf16.msra.mxu1 %v1067_v55  ;;  %1038 = vmatprep.subr.bf16.mxu0 %v1037_v56  ;;  %v1371_v11 = vld [vmem:[#allocation9 + $0x60] sm:$0xff]  ;;  %v1373_v12 = vld [vmem:[#allocation9 + $0x68] sm:$0xff]  ;;  %v1390_v21 = vld [vmem:[#allocation9 + $0xf8] sm:$0xff]  ;;  %v1077_v29 = vpack.c.bf16 %v505_v10, %v504_v7 }
  0x5c   :  { %1070 = vmatprep.subr.bf16.mxu1 %v1069_v60  ;;  %v1375_v14 = vld [vmem:[#allocation9 + $0x160] sm:$0xff]  ;;  %v1377_v15 = vld [vmem:[#allocation9 + $0x168] sm:$0xff]  ;;  %v1392_v22 = vld [vmem:[#allocation9 + $0x1f0] sm:$0xff]  ;;  %v1047_v30 = vpack.c.bf16 %v1373_v12, %v1371_v11  ;;  %v1049_v35 = vpack.c.bf16 %v1390_v21, %v1379_v16  ;;  %v1285_v60 = vmov 0.0  }
  0x5d   :  { %v1394_v23 = vld [vmem:[#allocation9 + $0x1f8] sm:$0xff]  ;;  %v1407_v31 = vld [vmem:[#allocation9 + $0x70] sm:$0xff]  ;;  %v1079_v34 = vpack.c.bf16 %v1377_v15, %v1375_v14  ;;  %v1421_v38 = vld [vmem:[#allocation6] sm:$0xff] }
  0x5e   :  { %1040 = vmatpush3.bf16.msra.mxu0 %v1039_v4  ;;  %v1409_v32 = vld [vmem:[#allocation9 + $0x78] sm:$0xff]  ;;  %v1411_v33 = vld [vmem:[#allocation9 + $0x170] sm:$0xff]  ;;  %v1081_v36 = vpack.c.bf16 %v1394_v23, %v1392_v22  ;;  %v96_v41 = vrot.slane %v1421_v38, %v1382_v17  ;;  %v101_v42 = vrot.slane %v1421_v38, %v1385_v18  ;;  %v106_v43 = vrot.slane %v1421_v38, %v1388_v19  ;;  %v1438_v46 = vld [vmem:[#allocation3] sm:$0xff] }
  0x5f   :  { %1072 = vmatpush3.bf16.msra.mxu1 %v1071_v8  ;;  %1042 = vmatprep.subr.bf16.mxu0 %v1041_v9  ;;  %v1419_v37 = vld [vmem:[#allocation9 + $0x178] sm:$0xff]  ;;  %v1051_v40 = vpack.c.bf16 %v1409_v32, %v1407_v31  ;;  %v111_v47 = vrot.slane %v1421_v38, %v1397_v24  ;;  %v116_v48 = vrot.slane %v1421_v38, %v1400_v25  ;;  %v1470_v58 = vmul.f32 -1.442695, %v1438_v46  ;;  %v1472_v59 = vld [vmem:[#allocation8 + $0x8] sm:$0xff]  ;;  %v1495_v8 = vld [vmem:[#allocation8 + $0x10] sm:$0xff] }
  0x60   :  { %1074 = vmatprep.subr.bf16.mxu1 %v1073_v13  ;;  %v1083_v44 = vpack.c.bf16 %v1419_v37, %v1411_v33  ;;  %v1436_v45 = vld [vmem:[#allocation8] sm:$0xff]  ;;  %v126_v49 = vrot.slane %v1421_v38, %v1403_v26  ;;  %v97_v50 = vsub.f32 %v1438_v46, %v96_v41  ;;  %v1448_v51 = vsub.f32 %v1438_v46, %v101_v42 }
  0x61   :  { %v1451_v52 = vsub.f32 %v1438_v46, %v106_v43  ;;  %v201_v53 = vrot.slane %v1436_v45, %v1382_v17  ;;  %v1456_v54 = vsub.f32 %v1438_v46, %v111_v47  ;;  %v1459_v55 = vsub.f32 %v1438_v46, %v116_v48 }
  0x62   :  { %1044 = vmatpush3.bf16.msra.mxu0 %v1043_v20  ;;  %v1462_v56 = vsub.f32 %v1438_v46, %v126_v49  ;;  %vm148_vm0 = vcmp.ge.f32.partialorder %v97_v50, 0.0  ;;  %vm149_vm1 = vcmp.lt.f32.partialorder %v1448_v51, 0.0  ;;  %vm153_vm2 = vcmp.ge.f32.partialorder %v1448_v51, 0.0 }
  0x63   :  { %1076 = vmatpush3.bf16.msra.mxu1 %v1075_v27  ;;  %1046 = vmatprep.subr.bf16.mxu0 %v1045_v28  ;;  %vm150_vm3 = vmand %vm148_vm0, %vm149_vm1  ;;  %vm154_vm4 = vcmp.lt.f32.partialorder %v1451_v52, 0.0  ;;  %vm158_vm5 = vcmp.ge.f32.partialorder %v1451_v52, 0.0  ;;  %vm159_vm6 = vcmp.lt.f32.partialorder %v1456_v54, 0.0  ;;  %vm163_vm7 = vcmp.ge.f32.partialorder %v1456_v54, 0.0 }
  0x64   :  { %1078 = vmatprep.subr.bf16.mxu1 %v1077_v29  ;;  %v871_v61 = vsel %vm150_vm3, 1.0, %v1285_v60  ;;  %vm155_vm8 = vmand %vm153_vm2, %vm154_vm4  ;;  %vm164_vm9 = vcmp.lt.f32.partialorder %v1459_v55, 0.0  ;;  %v202_v62 = vmul.f32 %v201_v53, %v97_v50  ;;  %v206_v63 = vrot.slane %v1436_v45, %v1385_v18 }
  0x65   :  { %v872_v0 = vsel %vm155_vm8, 1.0, %v1285_v60  ;;  %vm160_vm10 = vmand %vm158_vm5, %vm159_vm6  ;;  %v211_v1 = vrot.slane %v1436_v45, %v1388_v19  ;;  %v216_v2 = vrot.slane %v1436_v45, %v1397_v24  ;;  %v287_v3 = vrot.slane %v1472_v59, %v1397_v24 }
  0x66   :  { %1048 = vmatpush3.bf16.msra.mxu0 %v1047_v30  ;;  %v873_v4 = vsel %vm160_vm10, 1.0, %v1285_v60  ;;  %vm165_vm11 = vmand %vm163_vm7, %vm164_vm9  ;;  %v207_v5 = vmul.f32 %v206_v63, %v1448_v51  ;;  %v248_v6 = vmul.f32 %v871_v61, %v202_v62  ;;  %v292_v7 = vrot.slane %v1472_v59, %v1400_v25 }
  0x67   :  { %1080 = vmatpush3.bf16.msra.mxu1 %v1079_v34  ;;  %1050 = vmatprep.subr.bf16.mxu0 %v1049_v35  ;;  %v874_v9 = vsel %vm165_vm11, 1.0, %v1285_v60  ;;  %v212_v10 = vmul.f32 %v211_v1, %v1451_v52  ;;  %v217_v11 = vmul.f32 %v216_v2, %v1456_v54  ;;  %v288_v12 = vmul.f32 %v287_v3, %v97_v50  ;;  %v1534_v3 = vld [vmem:[#allocation8 + $0x18] sm:$0xff] }
  0x68   :  { %1082 = vmatprep.subr.bf16.mxu1 %v1081_v36  ;;  %v249_v13 = vsub.f32 1.0, %v207_v5  ;;  %v252_v14 = vmul.f32 %v872_v0, %v207_v5  ;;  %v293_v15 = vmul.f32 %v292_v7, %v1448_v51  ;;  %v297_v16 = vrot.slane %v1472_v59, %v1424_v39 }
  0x69   :  { %v253_v20 = vsub.f32 1.0, %v212_v10  ;;  %v256_v21 = vmul.f32 %v873_v4, %v212_v10  ;;  %v257_v22 = vsub.f32 1.0, %v217_v11  ;;  %v364_v23 = vrot.slane %v1495_v8, %v1403_v26 }
  0x6a   :  { %1052 = vmatpush3.bf16.msra.mxu0 %v1051_v40  ;;  %v250_v27 = vmul.f32 %v872_v0, %v249_v13  ;;  %v298_v28 = vmul.f32 %v297_v16, %v1451_v52  ;;  %v330_v29 = vsub.f32 1.0, %v293_v15  ;;  %v369_v30 = vrot.slane %v1495_v8, %v1465_v57  ;;  %v524_v16 = vld [vmem:[#allocation9 + $0x280] sm:$0xff] }
  0x6b   :  { %1084 = vmatpush3.bf16.msra.mxu1 %v1083_v44  ;;  %v254_v31 = vmul.f32 %v873_v4, %v253_v20  ;;  %v258_v32 = vmul.f32 %v874_v9, %v257_v22  ;;  %v365_v33 = vmul.f32 %v364_v23, %v97_v50  ;;  %v121_v34 = vrot.slane %v1421_v38, %v1424_v39  ;;  %v525_v20 = vld [vmem:[#allocation9 + $0x288] sm:$0xff] }
  0x6c   :  { %v251_v35 = vadd.f32 %v250_v27, %v248_v6  ;;  %v334_v36 = vsub.f32 1.0, %v298_v28  ;;  %v1511_v37 = vmul.f32 %v369_v30, %v1448_v51  ;;  %vm168_vm12 = vcmp.ge.f32.partialorder %v1459_v55, 0.0 }
  0x6d   :  { %v255_v40 = vadd.f32 %v254_v31, %v252_v14  ;;  %v259_v41 = vadd.f32 %v258_v32, %v256_v21  ;;  %v1515_v42 = vsub.f32 %v1438_v46, %v121_v34  ;;  %vm174_vm13 = vcmp.lt.f32.partialorder %v1462_v56, 0.0  ;;  %v556_v32 = vld [vmem:[#allocation9 + $0x380] sm:$0xff] }
  0x6e   :  { %v329_v43 = vmul.f32 %v288_v12, %v251_v35  ;;  %v402_v44 = vsub.f32 1.0, %v1511_v37  ;;  %v221_v47 = vrot.slane %v1436_v45, %v1400_v25  ;;  %v226_v48 = vrot.slane %v1436_v45, %v1424_v39 }
  0x6f   :  { %v331_v49 = vmul.f32 %v330_v29, %v255_v40  ;;  %v333_v50 = vmul.f32 %v293_v15, %v255_v40  ;;  %v335_v51 = vmul.f32 %v334_v36, %v259_v41  ;;  %vm169_vm14 = vcmp.lt.f32.partialorder %v1515_v42, 0.0 }
  0x70   :  { %vm170_vm15 = vmand %vm168_vm12, %vm169_vm14  ;;  %vm173_vm0 = vcmp.ge.f32.partialorder %v1515_v42, 0.0  ;;  %v222_v53 = vmul.f32 %v221_v47, %v1459_v55  ;;  %v1527_v61 = vmul.f32 %v226_v48, %v1515_v42  ;;  %v260_v62 = vmul.f32 %v874_v9, %v217_v11 }
  0x71   :  { %v332_v63 = vadd.f32 %v331_v49, %v329_v43  ;;  %v336_v0 = vadd.f32 %v335_v51, %v333_v50  ;;  %v875_v1 = vsel %vm170_vm15, 1.0, %v1285_v60  ;;  %vm175_vm1 = vmand %vm173_vm0, %vm174_vm13  ;;  %v302_v2 = vrot.slane %v1472_v59, %v1403_v26  ;;  %v540_v50 = vld [vmem:[#allocation9 + $0x300] sm:$0xff]  ;;  %v541_v51 = vld [vmem:[#allocation9 + $0x308] sm:$0xff] }
  0x72   :  { %v1537_v4 = vsel %vm175_vm1, 1.0, %v1285_v60  ;;  %v261_v5 = vsub.f32 1.0, %v222_v53  ;;  %v264_v6 = vmul.f32 %v875_v1, %v222_v53  ;;  %v265_v7 = vsub.f32 1.0, %v1527_v61 }
  0x73   :  { %v401_v9 = vmul.f32 %v365_v33, %v332_v63  ;;  %v403_v10 = vmul.f32 %v402_v44, %v336_v0  ;;  %v303_v11 = vmul.f32 %v302_v2, %v1456_v54  ;;  %v307_v14 = vrot.slane %v1472_v59, %v1465_v57  ;;  %v1570_v63 = vld [vmem:[#allocation9 + $0x298] sm:$0xff]  ;;  %v558_v2 = vld [vmem:[#allocation9 + $0x390] sm:$0xff] }
  0x74   :  { %v262_v12 = vmul.f32 %v875_v1, %v261_v5  ;;  %v266_v13 = vmul.f32 %v1537_v4, %v265_v7  ;;  %v337_v15 = vmul.f32 %v298_v28, %v259_v41  ;;  %v374_v23 = vrot.slane %v1534_v3, %v1382_v17  ;;  %v557_v28 = vld [vmem:[#allocation9 + $0x388] sm:$0xff]  ;;  %v1572_v1 = vld [vmem:[#allocation9 + $0x210] sm:$0xff]  ;;  %v559_v5 = vld [vmem:[#allocation9 + $0x398] sm:$0xff] }
  0x75   :  { %v404_v21 = vadd.f32 %v403_v10, %v401_v9  ;;  %v338_v22 = vsub.f32 1.0, %v303_v11  ;;  %v379_v27 = vrot.slane %v1534_v3, %v1385_v18  ;;  %v1551_v31 = vmul.f32 %v307_v14, %v1459_v55  ;;  %v1578_v10 = vld [vmem:[#allocation9 + $0x310] sm:$0xff]  ;;  %v1590_v14 = vld [vmem:[#allocation9 + $0x3a0] sm:$0xff] }
  0x76   :  { %v263_v29 = vadd.f32 %v262_v12, %v260_v62  ;;  %v1548_v30 = vadd.f32 %v266_v13, %v264_v6  ;;  %1157 = vpow2.f32 %v1470_v58  ;;  %v375_v33 = vmul.f32 %v374_v23, %v1451_v52  ;;  %v1563_v52 = vld [vmem:[#allocation9 + $0x200] sm:$0xff]  ;;  %v1568_v62 = vld [vmem:[#allocation9 + $0x290] sm:$0xff]  ;;  %v1588_v13 = vld [vmem:[#allocation9 + $0x228] sm:$0xff] }
  0x77   :  { %636 = vmatprep.mubr.f32.mxu0 %v404_v21  ;;  %v1556_v34 = vmul.f32 %v379_v27, %v1456_v54  ;;  %v1085_v35 = vpack.c.bf16 %v525_v20, %v524_v16  ;;  %v342_v41 = vsub.f32 1.0, %v1551_v31  ;;  %v1117_v44 = vpack.c.bf16 %v557_v28, %v556_v32  ;;  %v1565_v54 = vld [vmem:[#allocation9 + $0x208] sm:$0xff]  ;;  %v1586_v12 = vld [vmem:[#allocation9 + $0x220] sm:$0xff]  ;;  %v1602_v23 = vld [vmem:[#allocation9 + $0x3b0] sm:$0xff] }
  0x78   :  { %v339_v36 = vmul.f32 %v338_v22, %v263_v29  ;;  %v341_v40 = vmul.f32 %v303_v11, %v263_v29  ;;  %v406_v43 = vsub.f32 1.0, %v375_v33  ;;  %v131_v47 = vrot.slane %v1421_v38, %v1465_v57  ;;  %v1574_v38 = vld [vmem:[#allocation9 + $0x218] sm:$0xff]  ;;  %v1594_v16 = vld [vmem:[#allocation9 + $0x320] sm:$0xff]  ;;  %v1596_v20 = vld [vmem:[#allocation9 + $0x328] sm:$0xff] }
  0x79   :  { %1086 = vmatprep.subr.bf16.mxu0 %v1085_v35  ;;  %v343_v48 = vmul.f32 %v342_v41, %v1548_v30  ;;  %v410_v49 = vsub.f32 1.0, %v1556_v34  ;;  %v405_v53 = vmul.f32 %v1511_v37, %v336_v0  ;;  %1118 = vmatprep.subr.bf16.mxu1 %v1117_v44  ;;  %v1580_v11 = vld [vmem:[#allocation9 + $0x318] sm:$0xff]  ;;  %v1582_v37 = vld [vmem:[#allocation9 + $0x2a0] sm:$0xff]  ;;  %v1584_v0 = vld [vmem:[#allocation9 + $0x2a8] sm:$0xff]  ;;  %v1610_v32 = vmul.f32 %v1537_v4, %v1527_v61 }
  0x7a   :  { %v340_v58 = vadd.f32 %v339_v36, %v337_v15  ;;  %v1592_v15 = vld [vmem:[#allocation9 + $0x3a8] sm:$0xff]  ;;  %v1599_v21 = vsub.f32 %v1438_v46, %v131_v47  ;;  %v1604_v27 = vld [vmem:[#allocation9 + $0x3b8] sm:$0xff]  ;;  %v1606_v29 = vld [vmem:[#allocation9 + $0x330] sm:$0xff]  ;;  %v1119_v35 = vpack.c.bf16 %v541_v51, %v540_v50  ;;  %v1121_v4 = vpack.c.bf16 %v559_v5, %v558_v2 }
  0x7b   :  { %v1576_v6 = vadd.f32 %v343_v48, %v341_v40  ;;  %v1614_v36 = vld [vmem:[#allocation9 + $0x338] sm:$0xff]  ;;  %v1616_v40 = vld [vmem:[#allocation9 + $0x3c0] sm:$0xff]  ;;  %v1618_v41 = vld [vmem:[#allocation9 + $0x3c8] sm:$0xff]  ;;  %v1123_v51 = vpack.c.bf16 %v1580_v11, %v1578_v10  ;;  %v1125_v2 = vpack.c.bf16 %v1592_v15, %v1590_v14  ;;  %v1127_v5 = vpack.c.bf16 %v1596_v20, %v1594_v16 }
  0x7c   :  { %v409_v7 = vmul.f32 %v375_v33, %v340_v58  ;;  %v407_v9 = vmul.f32 %v406_v43, %v340_v58  ;;  %v1624_v58 = vld [vmem:[#allocation9 + $0x340] sm:$0xff]  ;;  %v1626_v48 = vld [vmem:[#allocation9 + $0x348] sm:$0xff]  ;;  %v1650_v14 = vld [vmem:[#allocation9 + $0x3d8] sm:$0xff]  ;;  %vm178_vm2 = vcmp.ge.f32.partialorder %v1462_v56, 0.0  ;;  %vm179_vm3 = vcmp.lt.f32.partialorder %v1599_v21, 0.0 }
  0x7d   :  { %v411_v22 = vmul.f32 %v410_v49, %v1576_v6  ;;  %v1628_v49 = vld [vmem:[#allocation6 + $0x8] sm:$0x7]  ;;  %vm183_vm4 = vcmp.ge.f32.partialorder %v1599_v21, 0.0  ;;  %v231_v16 = vrot.slane %v1436_v45, %v1403_v26  ;;  %vm180_vm5 = vmand %vm178_vm2, %vm179_vm3 }
  0x7e   :  { %v408_v28 = vadd.f32 %v407_v9, %v405_v53  ;;  %v1129_v9 = vpack.c.bf16 %v1604_v27, %v1602_v23  ;;  %v136_v15 = vrot.slane %v1628_v49, %v1382_v17  ;;  %v236_v23 = vrot.slane %v1436_v45, %v1465_v57 }
  0x7f   :  { %v412_v44 = vadd.f32 %v411_v22, %v409_v7  ;;  %v1131_v22 = vpack.c.bf16 %v1614_v36, %v1606_v29  ;;  %v312_v27 = vrot.slane %v1495_v8, %v1382_v17  ;;  %v232_v26 = vmul.f32 %v231_v16, %v1462_v56 }
  0x80   :  { %v1158_v43 = vpop.eup %1157  ;;  %v1660_v20 = vsub.f32 %v1438_v46, %v136_v15  ;;  %v237_v45 = vmul.f32 %v236_v23, %v1599_v21  ;;  %v345_v16 = vmul.f32 %v1551_v31, %v1548_v30  ;;  %v389_v53 = vrot.slane %v1534_v3, %v1397_v24 }
  0x81   :  { %v85_v50 = vadd.f32 1.0, %v1158_v43  ;;  %706 = vmatprep.mubr.f32.mxu1 %v412_v44  ;;  %v1648_v43 = vld [vmem:[#allocation9 + $0x3d0] sm:$0xff]  ;;  %v877_v44 = vsel %vm180_vm5, 1.0, %v1285_v60  ;;  %v313_v57 = vmul.f32 %v312_v27, %v1515_v42  ;;  %v269_v15 = vsub.f32 1.0, %v232_v26 }
  0x82   :  { %707 = vmatmul.mubr.f32.vlgmr.msra.gmra.mrb[0].mxu1 %v408_v28  ;;  %v317_v28 = vrot.slane %v1495_v8, %v1385_v18  ;;  %vm184_vm6 = vcmp.lt.f32.partialorder %v1660_v20, 0.0  ;;  %v272_v7 = vmul.f32 %v877_v44, %v232_v26  ;;  %v1692_v11 = vmul.f32 %v389_v53, %v1515_v42 }
  0x83   :  { %1159 = vrcp.f32 %v85_v50  ;;  %1120 = vmatpush3.bf16.msra.mxu1 %v1119_v35  ;;  %vm185_vm7 = vmand %vm183_vm4, %vm184_vm6  ;;  %v273_v35 = vsub.f32 1.0, %v237_v45  ;;  %v346_v27 = vsub.f32 1.0, %v313_v57  ;;  %v141_v30 = vrot.slane %v1628_v49, %v1385_v18 }
  0x84   :  { %1122 = vmatprep.subr.bf16.mxu1 %v1121_v4  ;;  %v384_v4 = vrot.slane %v1534_v3, %v1388_v19  ;;  %v1678_v50 = vmul.f32 %v317_v28, %v1462_v56  ;;  %v878_v23 = vsel %vm185_vm7, 1.0, %v1285_v60  ;;  %vm188_vm8 = vcmp.ge.f32.partialorder %v1660_v20, 0.0 }
  0x85   :  { %v274_v31 = vmul.f32 %v878_v23, %v273_v35  ;;  %v241_v26 = vrot.slane %v1472_v59, %v1382_v17  ;;  %v142_v42 = vsub.f32 %v1438_v46, %v141_v30  ;;  %v246_v53 = vrot.slane %v1472_v59, %v1385_v18  ;;  %v568_v59 = vld [vmem:[#allocation9 + $0x3e0] sm:$0xff] }
  0x86   :  { %v1688_v28 = vmul.f32 %v384_v4, %v1459_v55  ;;  %v350_v61 = vsub.f32 1.0, %v1678_v50  ;;  %v276_v47 = vmul.f32 %v878_v23, %v237_v45  ;;  %v1780_v23 = vpack.c.bf16 %v1618_v41, %v1616_v40 }
  0x87   :  { %1124 = vmatpush3.bf16.msra.mxu1 %v1123_v51  ;;  %v270_v51 = vmul.f32 %v877_v44, %v269_v15  ;;  %v418_v44 = vsub.f32 1.0, %v1692_v11  ;;  %v275_v35 = vadd.f32 %v274_v31, %v272_v7  ;;  %v242_v15 = vmul.f32 %v241_v26, %v1660_v20  ;;  %v569_v7 = vld [vmem:[#allocation9 + $0x3e8] sm:$0xff] }
  0x88   :  { %1126 = vmatprep.subr.bf16.mxu1 %v1125_v2  ;;  %v146_v2 = vrot.slane %v1628_v49, %v1388_v19  ;;  %vm189_vm9 = vcmp.lt.f32.partialorder %v142_v42, 0.0  ;;  %vm193_vm11 = vcmp.ge.f32.partialorder %v142_v42, 0.0  ;;  %v247_v18 = vmul.f32 %v246_v53, %v142_v42 }
  0x89   :  { %v271_v55 = vadd.f32 %v270_v51, %v1610_v32  ;;  %v550_v32 = vld [vmem:[#allocation9 + $0x350] sm:$0xff]  ;;  %v551_v51 = vld [vmem:[#allocation9 + $0x358] sm:$0xff]  ;;  %v351_v33 = vmul.f32 %v350_v61, %v275_v35  ;;  %vm190_vm10 = vmand %vm188_vm8, %vm189_vm9  ;;  %v277_v45 = vsub.f32 1.0, %v242_v15  ;;  %v322_v61 = vrot.slane %v1495_v8, %v1388_v19 }
  0x8a   :  { %v147_v49 = vsub.f32 %v1438_v46, %v146_v2  ;;  %v1139_v30 = vpack.c.bf16 %v551_v51, %v550_v32  ;;  %v531_v2 = vld [vmem:[#allocation9 + $0x2b8] sm:$0xff]  ;;  %v1141_v40 = vpack.c.bf16 %v569_v7, %v568_v59  ;;  %v1783_v42 = vpack.c.bf16 %v1574_v38, %v1572_v1  ;;  %v554_v59 = vld [vmem:[#allocation9 + $0x370] sm:$0xff] }
  0x8b   :  { %1128 = vmatpush3.bf16.msra.mxu1 %v1127_v5  ;;  %v347_v5 = vmul.f32 %v346_v27, %v271_v55  ;;  %v349_v10 = vmul.f32 %v313_v57, %v271_v55  ;;  %v1779_v57 = vpack.c.bf16 %v1565_v54, %v1563_v52  ;;  %v1781_v27 = vpack.c.bf16 %v1570_v63, %v1568_v62  ;;  %v530_v54 = vld [vmem:[#allocation9 + $0x2b0] sm:$0xff]  ;;  %v571_v1 = vld [vmem:[#allocation9 + $0x3f8] sm:$0xff] }
  0x8c   :  { %1130 = vmatprep.subr.bf16.mxu1 %v1129_v9  ;;  %vm194_vm12 = vcmp.lt.f32.partialorder %v147_v49, 0.0  ;;  %v879_v9 = vsel %vm190_vm10, 1.0, %v1285_v60  ;;  %v323_v52 = vmul.f32 %v322_v61, %v1599_v21  ;;  %v353_v63 = vmul.f32 %v1678_v50, %v275_v35  ;;  %v570_v35 = vld [vmem:[#allocation9 + $0x3f0] sm:$0xff] }
  0x8d   :  { %v1160_v4 = vpop.eup %1159  ;;  %vm195_vm13 = vmand %vm193_vm11, %vm194_vm12  ;;  %v352_v29 = vadd.f32 %v351_v33, %v349_v10  ;;  %v278_v31 = vmul.f32 %v879_v9, %v277_v45  ;;  %v1782_v10 = vpack.c.bf16 %v1626_v48, %v1624_v58  ;;  %v394_v55 = vrot.slane %v1534_v3, %v1400_v25  ;;  %v517_v45 = vld [vmem:[#allocation9 + $0x248] sm:$0xff] }
  0x8e   :  { %v88_v17 = vmul.f32 %v1160_v4, %v1438_v46  ;;  %v1714_v46 = vadd.f32 %v347_v5, %v345_v16  ;;  %v880_v36 = vsel %vm195_vm13, 1.0, %v1285_v60  ;;  %v281_v16 = vsub.f32 1.0, %v247_v18  ;;  %v515_v4 = vld [vmem:[#allocation9 + $0x238] sm:$0xff] }
  0x8f   :  { %1132 = vmatpush3.bf16.msra.mxu1 %v1131_v22  ;;  %v280_v22 = vmul.f32 %v879_v9, %v242_v15  ;;  %v419_v41 = vmul.f32 %v418_v44, %v352_v29  ;;  %v327_v60 = vrot.slane %v1495_v8, %v1397_v24  ;;  %v279_v62 = vadd.f32 %v278_v31, %v276_v47  ;;  %v514_v44 = vld [vmem:[#allocation9 + $0x230] sm:$0xff]  ;;  %v552_v24 = vld [vmem:[#allocation9 + $0x360] sm:$0xff]  ;;  %v553_v8 = vld [vmem:[#allocation9 + $0x368] sm:$0xff] }
  0x90   :  { %637 = vmatmul.mubr.f32.vlgmr.msra.gmra.mrb[0].mxu0 %v88_v17  ;;  %1134 = vmatprep.subr.bf16.mxu1 %v1780_v23  ;;  %v417_v19 = vmul.f32 %v1688_v28, %v1714_v46  ;;  %v282_v33 = vmul.f32 %v880_v36, %v281_v16  ;;  %v354_v26 = vsub.f32 1.0, %v323_v52  ;;  %v1784_v53 = vpack.c.bf16 %v1650_v14, %v1648_v43  ;;  %v532_v14 = vld [vmem:[#allocation9 + $0x2c0] sm:$0xff]  ;;  %v533_v15 = vld [vmem:[#allocation9 + $0x2c8] sm:$0xff]  ;;  %v535_v23 = vld [vmem:[#allocation9 + $0x2d8] sm:$0xff] }
  0x91   :  { %1088 = vmatpush3.bf16.msra.mxu0 %v1779_v57  ;;  %v328_v47 = vmul.f32 %v327_v60, %v1660_v20  ;;  %v1785_v50 = vpack.c.bf16 %v1584_v0, %v1582_v37  ;;  %v1097_v25 = vpack.c.bf16 %v531_v2, %v530_v54  ;;  %v395_v49 = vmul.f32 %v394_v55, %v1462_v56  ;;  %v516_v9 = vld [vmem:[#allocation9 + $0x240] sm:$0xff]  ;;  %v534_v57 = vld [vmem:[#allocation9 + $0x2d0] sm:$0xff]  ;;  %v519_v31 = vld [vmem:[#allocation9 + $0x258] sm:$0xff] }
  0x92   :  { %1090 = vmatprep.subr.bf16.mxu0 %v1781_v27  ;;  %v420_v58 = vadd.f32 %v419_v41, %v417_v19  ;;  %v283_v48 = vadd.f32 %v282_v33, %v280_v22  ;;  %v355_v38 = vmul.f32 %v354_v26, %v279_v62  ;;  %v399_v43 = vrot.slane %v1534_v3, %v1424_v39  ;;  %v555_v39 = vld [vmem:[#allocation9 + $0x378] sm:$0xff]  ;;  %v518_v19 = vld [vmem:[#allocation9 + $0x250] sm:$0xff]  ;;  %v537_v54 = vld [vmem:[#allocation9 + $0x2e8] sm:$0xff] }
  0x93   :  { %1136 = vmatpush3.bf16.msra.mxu1 %v1782_v10  ;;  %v357_v17 = vmul.f32 %v323_v52, %v279_v62  ;;  %v358_v5 = vsub.f32 1.0, %v328_v47  ;;  %v1143_v20 = vpack.c.bf16 %v553_v8, %v552_v24  ;;  %v422_v0 = vsub.f32 1.0, %v395_v49  ;;  %v536_v52 = vld [vmem:[#allocation9 + $0x2e0] sm:$0xff]  ;;  %v521_v33 = vld [vmem:[#allocation9 + $0x268] sm:$0xff]  ;;  %v538_v60 = vld [vmem:[#allocation9 + $0x2f0] sm:$0xff] }
  0x94   :  { %1138 = vmatprep.subr.bf16.mxu1 %v1784_v53  ;;  %776 = vmatprep.mubr.f32.mxu0 %v420_v58  ;;  %v356_v32 = vadd.f32 %v355_v38, %v353_v63  ;;  %v400_v37 = vmul.f32 %v399_v43, %v1599_v21  ;;  %v1786_v51 = vpack.c.bf16 %v1588_v13, %v1586_v12  ;;  %v539_v10 = vld [vmem:[#allocation9 + $0x2f8] sm:$0xff]  ;;  %v414_v62 = vsub.f32 1.0, %v1688_v28  ;;  %v522_v55 = vld [vmem:[#allocation9 + $0x270] sm:$0xff] }
  0x95   :  { %1092 = vmatpush3.bf16.msra.mxu0 %v1783_v42  ;;  %v1099_v18 = vpack.c.bf16 %v515_v4, %v514_v44  ;;  %v1145_v56 = vpack.c.bf16 %v571_v1, %v570_v35  ;;  %v359_v3 = vmul.f32 %v358_v5, %v283_v48  ;;  %v1101_v7 = vpack.c.bf16 %v533_v15, %v532_v14  ;;  %v523_v42 = vld [vmem:[#allocation9 + $0x278] sm:$0xff] }
  0x96   :  { %1094 = vmatprep.subr.bf16.mxu0 %v1785_v50  ;;  %v426_v61 = vsub.f32 1.0, %v400_v37  ;;  %v425_v21 = vmul.f32 %v395_v49, %v356_v32  ;;  %v421_v22 = vmul.f32 %v1692_v11, %v352_v29  ;;  %v423_v16 = vmul.f32 %v422_v0, %v356_v32  ;;  %v520_v29 = vld [vmem:[#allocation9 + $0x260] sm:$0xff] }
  0x97   :  { %1140 = vmatpush3.bf16.msra.mxu1 %v1139_v30  ;;  %v360_v36 = vadd.f32 %v359_v3, %v357_v17  ;;  %v1147_v12 = vpack.c.bf16 %v555_v39, %v554_v59  ;;  %v1103_v13 = vpack.c.bf16 %v517_v45, %v516_v9  ;;  %v1105_v30 = vpack.c.bf16 %v535_v23, %v534_v57 }
  0x98   :  { %1142 = vmatprep.subr.bf16.mxu1 %v1141_v40  ;;  %v424_v40 = vadd.f32 %v423_v16, %v421_v22  ;;  %v1107_v41 = vpack.c.bf16 %v519_v31, %v518_v19  ;;  %v1109_v11 = vpack.c.bf16 %v537_v54, %v536_v52  ;;  %v1111_v63 = vpack.c.bf16 %v521_v33, %v520_v29 }
  0x99   :  { %1096 = vmatpush3.bf16.msra.mxu0 %v1786_v51  ;;  %v427_v27 = vmul.f32 %v426_v61, %v360_v36  ;;  %v1113_v26 = vpack.c.bf16 %v539_v10, %v538_v60  ;;  %v413_v44 = vmul.f32 %v1556_v34, %v1576_v6  ;;  %v415_v53 = vmul.f32 %v414_v62, %v1714_v46 }
  0x9a   :  { %1098 = vmatprep.subr.bf16.mxu0 %v1097_v25  ;;  %v1115_v24 = vpack.c.bf16 %v523_v42, %v522_v55 }
  0x9b   :  { %1144 = vmatpush3.bf16.msra.mxu1 %v1143_v20  ;;  %v428_v2 = vadd.f32 %v427_v27, %v425_v21  ;;  %v416_v8 = vadd.f32 %v415_v53, %v413_v44 }
  0x9c   :  { %1146 = vmatprep.subr.bf16.mxu1 %v1145_v56 }
  0x9d   :  { %1100 = vmatpush3.bf16.msra.mxu0 %v1099_v18  ;;  %846 = vmatprep.mubr.f32.mxu1 %v428_v2 }
  0x9e   :  { %1102 = vmatprep.subr.bf16.mxu0 %v1101_v7 }
  0x9f   :  { %1148 = vmatpush3.bf16.msra.mxu1 %v1147_v12 }
  0xa1   :  { %1104 = vmatpush3.bf16.msra.mxu0 %v1103_v13 }
  0xa2   :  { %1106 = vmatprep.subr.bf16.mxu0 %v1105_v30  ;;  %847 = vmatmul.mubr.f32.vlgmr.msra.gmra.mrb[2].mxu1 %v424_v40 }
  0xa5   :  { %1108 = vmatpush3.bf16.msra.mxu0 %v1107_v41 }
  0xa6   :  { %1110 = vmatprep.subr.bf16.mxu0 %v1109_v11 }
  0xa9   :  { %1112 = vmatpush3.bf16.msra.mxu0 %v1111_v63 }
  0xaa   :  { %1114 = vmatprep.subr.bf16.mxu0 %v1113_v26 }
  0xad   :  { %1116 = vmatpush3.bf16.msra.mxu0 %v1115_v24 }
  0xb0   :  { %777 = vmatmul.mubr.f32.vlgmr.msra.gmra.mrb[2].mxu0 %v416_v8 }
 0x155   :  { %v948_v58 = vpop.f32.mrb[0].mxu1 }
 0x156   :  { %v949_v48 = vpop.f32.mrb[1].mxu1 }
 0x157   :  { %v950_v28 = vadd.f32 %v949_v48, %v948_v58 }
 0x163   :  { %v913_v47 = vpop.f32.mrb[0].mxu0 }
 0x164   :  { %v914_v50 = vpop.f32.mrb[1].mxu0 }
 0x165   :  { %v915_v25 = vadd.f32 %v914_v50, %v913_v47 }
 0x167   :  { %v709_v4 = vadd.f32 %v950_v28, %v915_v25 }
 0x175   :  { %v1018_v35 = vpop.f32.mrb[2].mxu1 }
 0x176   :  { %v1019_v1 = vpop.f32.mrb[3].mxu1 }
 0x177   :  { %v1020_v38 = vadd.f32 %v1019_v1, %v1018_v35 }
 0x183   :  { %v983_v49 = vpop.f32.mrb[2].mxu0 }
 0x184   :  { %v984_v34 = vpop.f32.mrb[3].mxu0 }
 0x185   :  { %v985_v6 = vadd.f32 %v984_v34, %v983_v49 }
 0x187   :  { %v779_v46 = vadd.f32 %v985_v6, %v709_v4 }
 0x189   :  { %v849_v43 = vadd.f32 %v1020_v38, %v779_v46 }
 0x18b   :  { %852 = vst [vmem:[#allocation11] sm:$0xff] %v849_v43 }
 0x18c   :  { %1260 = shalt.err (!%p1257_p8)
}
 0x18d   :  { %s1261_s1 = scalar_lea.hbm %s1778_s4, 128 }
 0x18e   :  { %p1262_p9 = scmp.ne.s32.totalorder %s1778_s4, %s1261_s1  ;;  %p1265_p10 = scmp.lt.u32.totalorder %s1261_s1, %s1778_s4 }
 0x190   :  { %p1267_p11 = pnand %p1265_p10, %p1262_p9 }
 0x192   :  { %1270 = shalt.err (!%p1267_p11)
}
 0x193   :  { %862 = dma.vmem_to_hbm [thread:$0]  %s860_s25, 128, %s1778_s4, [#allocation5]  }
 0x194   :  { %1277 = dma.done.wait [#allocation5], 128  }
 0x195   :  { %1278 = vsyncadd [#allocation5], 4294967168 }
 0x196   :  { %866 = vsyncpa [#allocation4], 1 }
 0x197   :  { %867 = vsyncpa [#allocation7], 1 }
 0x198   :  { %868 = vsyncpa [#allocation10], 1 }
 0x199   :  { %869 = vsyncpa [#allocation5], 1 }

// kernel: tpu_custom_call.1
= control target key start
LH: loop header
LB: loop body
LE: loop exit
PB: predicated region body
PF: predicated region fallthrough
CT: control target
= control target key end

     0   :  { %9 = vsyncpa [#allocation4], 0  ;;  %s1774_s0 = inlined_call_operand.hbm [shape: f32[8,128], index: 0, kind: input, shape index: {}]   ;;  %s1775_s1 = inlined_call_operand.hbm [shape: f32[11,128], index: 1, kind: input, shape index: {}]   ;;  %s1776_s2 = inlined_call_operand.hbm [shape: f32[33,128], index: 2, kind: input, shape index: {}]   ;;  %s1777_s3 = inlined_call_operand.hbm [shape: f32[1024,128], index: 3, kind: input, shape index: {}]   ;;  %s1778_s4 = inlined_call_operand.hbm [shape: f32[8,128], index: 4, kind: output, shape index: {}]  }
   0x1   :  { %10 = vsyncpa [#allocation7], 0 }
   0x2   :  { %11 = vsyncpa [#allocation10], 0 }
   0x3   :  { %12 = vsyncpa [#allocation5], 0  ;;  %s1279_s15 = smov [#allocation6]   ;;  %s1161_s19 = scalar_lea.hbm %s1775_s1, 256 }
   0x4   :  { %s28_s16 = sshll.u32 %s1279_s15, 4  ;;  %p1162_p0 = scmp.ne.s32.totalorder %s1775_s1, %s1161_s19  ;;  %s29_s16 = int_to_ptr.vmem [resolvable:$true] %s28_s16 }
   0x5   :  { %p1165_p1 = scmp.lt.u32.totalorder %s1161_s19, %s1775_s1 }
   0x7   :  { %p1167_p2 = pnand %p1165_p1, %p1162_p0 }
   0x9   :  { %1170 = shalt.err (!%p1167_p2)
}
   0xa   :  { %s1171_s24 = scalar_lea.vmem %s29_s16, 256  ;;  %p1176_p4 = scmp.lt.s32.totalorder %s29_s16, %s29_s16 }
   0xb   :  { %p1172_p3 = scmp.ne.s32.totalorder %s29_s16, %s1171_s24  ;;  %p1177_p5 = scmp.lt.s32.totalorder %s1171_s24, %s1171_s24 }
   0xd   :  { %p1178_p6 = por %p1177_p5, %p1176_p4 }
   0xf   :  { %p1179_p7 = pnand %p1178_p6, %p1172_p3 }
  0x11   :  { %1182 = shalt.err (!%p1179_p7)
}
  0x12   :  { %s1280_s25 = smov 128   ;;  %s1281_s26 = smov 8  }
  0x13   :  { %34 = dma.hbm_to_vmem [thread:$0]  %s1775_s1, 256, %s29_s16, [#allocation7], %s1280_s25, %s1280_s25, %s1281_s26  }
  0x14   :  { %s1282_s29 = smov [#allocation3]   ;;  %s1283_s5 = smov [#allocation8]  }
  0x15   :  { %s19_s30 = sshll.u32 %s1282_s29, 4  ;;  %s40_s6 = sshll.u32 %s1283_s5, 4  ;;  %s20_s30 = int_to_ptr.vmem [resolvable:$true] %s19_s30  ;;  %s41_s6 = int_to_ptr.vmem [resolvable:$true] %s40_s6 }
  0x16   :  { %s1183_s9 = scalar_lea.hbm %s1774_s0, 128 }
  0x17   :  { %p1184_p8 = scmp.ne.s32.totalorder %s1774_s0, %s1183_s9  ;;  %p1187_p9 = scmp.lt.u32.totalorder %s1183_s9, %s1774_s0 }
  0x19   :  { %p1189_p10 = pnand %p1187_p9, %p1184_p8 }
  0x1b   :  { %1192 = shalt.err (!%p1189_p10)
}
  0x1c   :  { %s1193_s1 = scalar_lea.vmem %s20_s30, 128  ;;  %p1198_p12 = scmp.lt.s32.totalorder %s20_s30, %s20_s30 }
  0x1d   :  { %p1194_p11 = scmp.ne.s32.totalorder %s20_s30, %s1193_s1  ;;  %p1199_p13 = scmp.lt.s32.totalorder %s1193_s1, %s1193_s1 }
  0x1f   :  { %p1200_p0 = por %p1199_p13, %p1198_p12 }
  0x21   :  { %p1201_p1 = pnand %p1200_p0, %p1194_p11 }
  0x23   :  { %1204 = shalt.err (!%p1201_p1)
}
  0x24   :  { %22 = dma.hbm_to_vmem [thread:$0]  %s1774_s0, 128, %s20_s30, [#allocation4]  }
  0x25   :  { %s1205_s18 = scalar_lea.hbm %s1776_s2, 640 }
  0x26   :  { %p1206_p2 = scmp.ne.s32.totalorder %s1776_s2, %s1205_s18  ;;  %p1209_p3 = scmp.lt.u32.totalorder %s1205_s18, %s1776_s2 }
  0x28   :  { %p1211_p4 = pnand %p1209_p3, %p1206_p2 }
  0x2a   :  { %1214 = shalt.err (!%p1211_p4)
}
  0x2b   :  { %s1215_s23 = scalar_lea.vmem %s41_s6, 640  ;;  %p1220_p6 = scmp.lt.s32.totalorder %s41_s6, %s41_s6 }
  0x2c   :  { %p1216_p5 = scmp.ne.s32.totalorder %s41_s6, %s1215_s23  ;;  %p1221_p7 = scmp.lt.s32.totalorder %s1215_s23, %s1215_s23 }
  0x2e   :  { %p1222_p8 = por %p1221_p7, %p1220_p6 }
  0x30   :  { %p1223_p9 = pnand %p1222_p8, %p1216_p5 }
  0x32   :  { %1226 = shalt.err (!%p1223_p9)
}
  0x33   :  { %46 = dma.hbm_to_vmem [thread:$0]  %s1776_s2, 640, %s41_s6, [#allocation7], %s1280_s25, %s1280_s25, %s1281_s26  }
  0x34   :  { %s1284_s27 = smov [#allocation9]   ;;  %s1227_s5 = scalar_lea.hbm %s1777_s3, 16384 }
  0x35   :  { %s52_s28 = sshll.u32 %s1284_s27, 4  ;;  %p1228_p10 = scmp.ne.s32.totalorder %s1777_s3, %s1227_s5  ;;  %s53_s28 = int_to_ptr.vmem [resolvable:$true] %s52_s28 }
  0x36   :  { %p1231_p11 = scmp.lt.u32.totalorder %s1227_s5, %s1777_s3 }
  0x38   :  { %p1233_p12 = pnand %p1231_p11, %p1228_p10 }
  0x3a   :  { %1236 = shalt.err (!%p1233_p12)
}
  0x3b   :  { %s1237_s11 = scalar_lea.vmem %s53_s28, 16384  ;;  %p1242_p0 = scmp.lt.s32.totalorder %s53_s28, %s53_s28 }
  0x3c   :  { %p1238_p13 = scmp.ne.s32.totalorder %s53_s28, %s1237_s11  ;;  %p1243_p1 = scmp.lt.s32.totalorder %s1237_s11, %s1237_s11 }
  0x3e   :  { %p1244_p2 = por %p1243_p1, %p1242_p0 }
  0x40   :  { %p1245_p3 = pnand %p1244_p2, %p1238_p13 }
  0x42   :  { %1248 = shalt.err (!%p1245_p3)
}
  0x43   :  { %58 = dma.hbm_to_vmem [thread:$0]  %s1777_s3, 16384, %s53_s28, [#allocation10], %s1280_s25, %s1280_s25, %s1281_s26  }
  0x44   :  { %1271 = dma.done.wait [#allocation4], 128  }
  0x45   :  { %1272 = vsyncadd [#allocation4], 4294967168 }
  0x46   :  { %1273 = dma.done.wait [#allocation7], 896  }
  0x47   :  { %1274 = vsyncadd [#allocation7], 4294966400 }
  0x48   :  { %1275 = dma.done.wait [#allocation10], 16384  }
  0x49   :  { %1276 = vsyncadd [#allocation10], 4294950912  ;;  %v460_v0 = vld [vmem:[#allocation9 + $0x80] sm:$0xff]  ;;  %v461_v1 = vld [vmem:[#allocation9 + $0x88] sm:$0xff]  ;;  %v93_v47 = vlaneseq  ;;  %s1286_s3 = smov [#allocation11]  }
  0x4a   :  { %v492_v2 = vld [vmem:[#allocation9 + $0x180] sm:$0xff]  ;;  %v1021_v3 = vpack.c.bf16 %v461_v1, %v460_v0  ;;  %v493_v4 = vld [vmem:[#allocation9 + $0x188] sm:$0xff]  ;;  %v462_v11 = vld [vmem:[#allocation9 + $0x90] sm:$0xff]  ;;  %s859_s25 = sshll.u32 %s1286_s3, 4  ;;  %s860_s25 = int_to_ptr.vmem [resolvable:$true] %s859_s25 }
  0x4b   :  { %v444_v5 = vld [vmem:[#allocation9] sm:$0xff]  ;;  %v445_v6 = vld [vmem:[#allocation9 + $0x8] sm:$0xff]  ;;  %v1053_v7 = vpack.c.bf16 %v493_v4, %v492_v2  ;;  %v463_v13 = vld [vmem:[#allocation9 + $0x98] sm:$0xff]  ;;  %v1369_v0 = vshrl.u32 %v93_v47, 7  ;;  %s1249_s26 = scalar_lea.vmem %s860_s25, 128  ;;  %p1254_p5 = scmp.lt.s32.totalorder %s860_s25, %s860_s25 }
  0x4c   :  { %v1023_v8 = vpack.c.bf16 %v445_v6, %v444_v5  ;;  %v476_v9 = vld [vmem:[#allocation9 + $0x100] sm:$0xff]  ;;  %v477_v10 = vld [vmem:[#allocation9 + $0x108] sm:$0xff]  ;;  %1022 = vmatprep.subr.bf16.mxu0 %v1021_v3  ;;  %v494_v14 = vld [vmem:[#allocation9 + $0x190] sm:$0xff]  ;;  %v1025_v16 = vpack.c.bf16 %v463_v13, %v462_v11  ;;  %p1250_p4 = scmp.ne.s32.totalorder %s860_s25, %s1249_s26  ;;  %p1255_p6 = scmp.lt.s32.totalorder %s1249_s26, %s1249_s26 }
  0x4d   :  { %v1055_v12 = vpack.c.bf16 %v477_v10, %v476_v9  ;;  %v495_v15 = vld [vmem:[#allocation9 + $0x198] sm:$0xff]  ;;  %1054 = vmatprep.subr.bf16.mxu1 %v1053_v7  ;;  %v446_v18 = vld [vmem:[#allocation9 + $0x10] sm:$0xff]  ;;  %v464_v23 = vld [vmem:[#allocation9 + $0xa0] sm:$0xff] }
  0x4e   :  { %1024 = vmatpush3.bf16.msra.mxu0 %v1023_v8  ;;  %v1057_v17 = vpack.c.bf16 %v495_v15, %v494_v14  ;;  %v447_v19 = vld [vmem:[#allocation9 + $0x18] sm:$0xff]  ;;  %v478_v20 = vld [vmem:[#allocation9 + $0x110] sm:$0xff]  ;;  %v465_v24 = vld [vmem:[#allocation9 + $0xa8] sm:$0xff]  ;;  %p1256_p7 = por %p1255_p6, %p1254_p5 }
  0x4f   :  { %1056 = vmatpush3.bf16.msra.mxu1 %v1055_v12  ;;  %v1027_v21 = vpack.c.bf16 %v447_v19, %v446_v18  ;;  %v479_v22 = vld [vmem:[#allocation9 + $0x118] sm:$0xff]  ;;  %1026 = vmatprep.subr.bf16.mxu0 %v1025_v16  ;;  %v1029_v26 = vpack.c.bf16 %v465_v24, %v464_v23  ;;  %v496_v27 = vld [vmem:[#allocation9 + $0x1a0] sm:$0xff]  ;;  %v497_v28 = vld [vmem:[#allocation9 + $0x1a8] sm:$0xff]  ;;  %v1385_v18 = vsub.s32 1, %v1369_v0  ;;  %v1388_v19 = vsub.s32 2, %v1369_v0 }
  0x50   :  { %1058 = vmatprep.subr.bf16.mxu1 %v1057_v17  ;;  %v1059_v25 = vpack.c.bf16 %v479_v22, %v478_v20  ;;  %v448_v29 = vld [vmem:[#allocation9 + $0x20] sm:$0xff]  ;;  %v1061_v30 = vpack.c.bf16 %v497_v28, %v496_v27  ;;  %v449_v31 = vld [vmem:[#allocation9 + $0x28] sm:$0xff]  ;;  %v466_v35 = vld [vmem:[#allocation9 + $0xb0] sm:$0xff]  ;;  %v1382_v17 = vsub.s32 0, %v1369_v0  ;;  %v1397_v24 = vsub.s32 3, %v1369_v0  ;;  %p1257_p8 = pnand %p1256_p7, %p1250_p4 }
  0x51   :  { %v480_v32 = vld [vmem:[#allocation9 + $0x120] sm:$0xff]  ;;  %v481_v33 = vld [vmem:[#allocation9 + $0x128] sm:$0xff]  ;;  %v1031_v34 = vpack.c.bf16 %v449_v31, %v448_v29  ;;  %v467_v36 = vld [vmem:[#allocation9 + $0xb8] sm:$0xff] }
  0x52   :  { %1028 = vmatpush3.bf16.msra.mxu0 %v1027_v21  ;;  %v498_v37 = vld [vmem:[#allocation9 + $0x1b0] sm:$0xff]  ;;  %v1063_v38 = vpack.c.bf16 %v481_v33, %v480_v32  ;;  %v1033_v39 = vpack.c.bf16 %v467_v36, %v466_v35  ;;  %v499_v40 = vld [vmem:[#allocation9 + $0x1b8] sm:$0xff]  ;;  %v468_v46 = vld [vmem:[#allocation9 + $0xc0] sm:$0xff] }
  0x53   :  { %1060 = vmatpush3.bf16.msra.mxu1 %v1059_v25  ;;  %1030 = vmatprep.subr.bf16.mxu0 %v1029_v26  ;;  %v450_v41 = vld [vmem:[#allocation9 + $0x30] sm:$0xff]  ;;  %v451_v42 = vld [vmem:[#allocation9 + $0x38] sm:$0xff]  ;;  %v1065_v43 = vpack.c.bf16 %v499_v40, %v498_v37  ;;  %v469_v48 = vld [vmem:[#allocation9 + $0xc8] sm:$0xff]  ;;  %v1400_v25 = vsub.s32 4, %v1369_v0  ;;  %v1403_v26 = vsub.s32 6, %v1369_v0 }
  0x54   :  { %1062 = vmatprep.subr.bf16.mxu1 %v1061_v30  ;;  %v482_v44 = vld [vmem:[#allocation9 + $0x130] sm:$0xff]  ;;  %v483_v45 = vld [vmem:[#allocation9 + $0x138] sm:$0xff]  ;;  %v500_v49 = vld [vmem:[#allocation9 + $0x1c0] sm:$0xff]  ;;  %v1035_v51 = vpack.c.bf16 %v451_v42, %v450_v41  ;;  %v1037_v56 = vpack.c.bf16 %v469_v48, %v468_v46 }
  0x55   :  { %v501_v50 = vld [vmem:[#allocation9 + $0x1c8] sm:$0xff]  ;;  %v452_v52 = vld [vmem:[#allocation9 + $0x40] sm:$0xff]  ;;  %v1067_v55 = vpack.c.bf16 %v483_v45, %v482_v44  ;;  %v470_v58 = vld [vmem:[#allocation9 + $0xd0] sm:$0xff] }
  0x56   :  { %1032 = vmatpush3.bf16.msra.mxu0 %v1031_v34  ;;  %v453_v53 = vld [vmem:[#allocation9 + $0x48] sm:$0xff]  ;;  %v484_v54 = vld [vmem:[#allocation9 + $0x140] sm:$0xff]  ;;  %v471_v59 = vld [vmem:[#allocation9 + $0xd8] sm:$0xff]  ;;  %v1069_v60 = vpack.c.bf16 %v501_v50, %v500_v49 }
  0x57   :  { %1064 = vmatpush3.bf16.msra.mxu1 %v1063_v38  ;;  %1034 = vmatprep.subr.bf16.mxu0 %v1033_v39  ;;  %v485_v57 = vld [vmem:[#allocation9 + $0x148] sm:$0xff]  ;;  %v502_v61 = vld [vmem:[#allocation9 + $0x1d0] sm:$0xff]  ;;  %v503_v62 = vld [vmem:[#allocation9 + $0x1d8] sm:$0xff]  ;;  %v1039_v4 = vpack.c.bf16 %v453_v53, %v452_v52  ;;  %v1041_v9 = vpack.c.bf16 %v471_v59, %v470_v58  ;;  %v1424_v39 = vsub.s32 5, %v1369_v0 }
  0x58   :  { %1066 = vmatprep.subr.bf16.mxu1 %v1065_v43  ;;  %v454_v63 = vld [vmem:[#allocation9 + $0x50] sm:$0xff]  ;;  %v455_v1 = vld [vmem:[#allocation9 + $0x58] sm:$0xff]  ;;  %v472_v5 = vld [vmem:[#allocation9 + $0xe0] sm:$0xff]  ;;  %v1071_v8 = vpack.c.bf16 %v485_v57, %v484_v54  ;;  %v1073_v13 = vpack.c.bf16 %v503_v62, %v502_v61  ;;  %v1465_v57 = vsub.s32 7, %v1369_v0 }
  0x59   :  { %v486_v2 = vld [vmem:[#allocation9 + $0x150] sm:$0xff]  ;;  %v487_v3 = vld [vmem:[#allocation9 + $0x158] sm:$0xff]  ;;  %v473_v6 = vld [vmem:[#allocation9 + $0xe8] sm:$0xff]  ;;  %v1043_v20 = vpack.c.bf16 %v455_v1, %v454_v63 }
  0x5a   :  { %1036 = vmatpush3.bf16.msra.mxu0 %v1035_v51  ;;  %v504_v7 = vld [vmem:[#allocation9 + $0x1e0] sm:$0xff]  ;;  %v505_v10 = vld [vmem:[#allocation9 + $0x1e8] sm:$0xff]  ;;  %v1379_v16 = vld [vmem:[#allocation9 + $0xf0] sm:$0xff]  ;;  %v1075_v27 = vpack.c.bf16 %v487_v3, %v486_v2  ;;  %v1045_v28 = vpack.c.bf16 %v473_v6, %v472_v5 }
  0x5b   :  { %1068 = vmatpush3.bf16.msra.mxu1 %v1067_v55  ;;  %1038 = vmatprep.subr.bf16.mxu0 %v1037_v56  ;;  %v1371_v11 = vld [vmem:[#allocation9 + $0x60] sm:$0xff]  ;;  %v1373_v12 = vld [vmem:[#allocation9 + $0x68] sm:$0xff]  ;;  %v1390_v21 = vld [vmem:[#allocation9 + $0xf8] sm:$0xff]  ;;  %v1077_v29 = vpack.c.bf16 %v505_v10, %v504_v7 }
  0x5c   :  { %1070 = vmatprep.subr.bf16.mxu1 %v1069_v60  ;;  %v1375_v14 = vld [vmem:[#allocation9 + $0x160] sm:$0xff]  ;;  %v1377_v15 = vld [vmem:[#allocation9 + $0x168] sm:$0xff]  ;;  %v1392_v22 = vld [vmem:[#allocation9 + $0x1f0] sm:$0xff]  ;;  %v1047_v30 = vpack.c.bf16 %v1373_v12, %v1371_v11  ;;  %v1049_v35 = vpack.c.bf16 %v1390_v21, %v1379_v16  ;;  %v1285_v60 = vmov 0.0  }
  0x5d   :  { %v1394_v23 = vld [vmem:[#allocation9 + $0x1f8] sm:$0xff]  ;;  %v1407_v31 = vld [vmem:[#allocation9 + $0x70] sm:$0xff]  ;;  %v1079_v34 = vpack.c.bf16 %v1377_v15, %v1375_v14  ;;  %v1421_v38 = vld [vmem:[#allocation6] sm:$0xff] }
  0x5e   :  { %1040 = vmatpush3.bf16.msra.mxu0 %v1039_v4  ;;  %v1409_v32 = vld [vmem:[#allocation9 + $0x78] sm:$0xff]  ;;  %v1411_v33 = vld [vmem:[#allocation9 + $0x170] sm:$0xff]  ;;  %v1081_v36 = vpack.c.bf16 %v1394_v23, %v1392_v22  ;;  %v96_v41 = vrot.slane %v1421_v38, %v1382_v17  ;;  %v101_v42 = vrot.slane %v1421_v38, %v1385_v18  ;;  %v106_v43 = vrot.slane %v1421_v38, %v1388_v19  ;;  %v1438_v46 = vld [vmem:[#allocation3] sm:$0xff] }
  0x5f   :  { %1072 = vmatpush3.bf16.msra.mxu1 %v1071_v8  ;;  %1042 = vmatprep.subr.bf16.mxu0 %v1041_v9  ;;  %v1419_v37 = vld [vmem:[#allocation9 + $0x178] sm:$0xff]  ;;  %v1051_v40 = vpack.c.bf16 %v1409_v32, %v1407_v31  ;;  %v111_v47 = vrot.slane %v1421_v38, %v1397_v24  ;;  %v116_v48 = vrot.slane %v1421_v38, %v1400_v25  ;;  %v1470_v58 = vmul.f32 -1.442695, %v1438_v46  ;;  %v1472_v59 = vld [vmem:[#allocation8 + $0x8] sm:$0xff]  ;;  %v1495_v8 = vld [vmem:[#allocation8 + $0x10] sm:$0xff] }
  0x60   :  { %1074 = vmatprep.subr.bf16.mxu1 %v1073_v13  ;;  %v1083_v44 = vpack.c.bf16 %v1419_v37, %v1411_v33  ;;  %v1436_v45 = vld [vmem:[#allocation8] sm:$0xff]  ;;  %v126_v49 = vrot.slane %v1421_v38, %v1403_v26  ;;  %v97_v50 = vsub.f32 %v1438_v46, %v96_v41  ;;  %v1448_v51 = vsub.f32 %v1438_v46, %v101_v42 }
  0x61   :  { %v1451_v52 = vsub.f32 %v1438_v46, %v106_v43  ;;  %v201_v53 = vrot.slane %v1436_v45, %v1382_v17  ;;  %v1456_v54 = vsub.f32 %v1438_v46, %v111_v47  ;;  %v1459_v55 = vsub.f32 %v1438_v46, %v116_v48 }
  0x62   :  { %1044 = vmatpush3.bf16.msra.mxu0 %v1043_v20  ;;  %v1462_v56 = vsub.f32 %v1438_v46, %v126_v49  ;;  %vm148_vm0 = vcmp.ge.f32.partialorder %v97_v50, 0.0  ;;  %vm149_vm1 = vcmp.lt.f32.partialorder %v1448_v51, 0.0  ;;  %vm153_vm2 = vcmp.ge.f32.partialorder %v1448_v51, 0.0 }
  0x63   :  { %1076 = vmatpush3.bf16.msra.mxu1 %v1075_v27  ;;  %1046 = vmatprep.subr.bf16.mxu0 %v1045_v28  ;;  %vm150_vm3 = vmand %vm148_vm0, %vm149_vm1  ;;  %vm154_vm4 = vcmp.lt.f32.partialorder %v1451_v52, 0.0  ;;  %vm158_vm5 = vcmp.ge.f32.partialorder %v1451_v52, 0.0  ;;  %vm159_vm6 = vcmp.lt.f32.partialorder %v1456_v54, 0.0  ;;  %vm163_vm7 = vcmp.ge.f32.partialorder %v1456_v54, 0.0 }
  0x64   :  { %1078 = vmatprep.subr.bf16.mxu1 %v1077_v29  ;;  %v871_v61 = vsel %vm150_vm3, 1.0, %v1285_v60  ;;  %vm155_vm8 = vmand %vm153_vm2, %vm154_vm4  ;;  %vm164_vm9 = vcmp.lt.f32.partialorder %v1459_v55, 0.0  ;;  %v202_v62 = vmul.f32 %v201_v53, %v97_v50  ;;  %v206_v63 = vrot.slane %v1436_v45, %v1385_v18 }
  0x65   :  { %v872_v0 = vsel %vm155_vm8, 1.0, %v1285_v60  ;;  %vm160_vm10 = vmand %vm158_vm5, %vm159_vm6  ;;  %v211_v1 = vrot.slane %v1436_v45, %v1388_v19  ;;  %v216_v2 = vrot.slane %v1436_v45, %v1397_v24  ;;  %v287_v3 = vrot.slane %v1472_v59, %v1397_v24 }
  0x66   :  { %1048 = vmatpush3.bf16.msra.mxu0 %v1047_v30  ;;  %v873_v4 = vsel %vm160_vm10, 1.0, %v1285_v60  ;;  %vm165_vm11 = vmand %vm163_vm7, %vm164_vm9  ;;  %v207_v5 = vmul.f32 %v206_v63, %v1448_v51  ;;  %v248_v6 = vmul.f32 %v871_v61, %v202_v62  ;;  %v292_v7 = vrot.slane %v1472_v59, %v1400_v25 }
  0x67   :  { %1080 = vmatpush3.bf16.msra.mxu1 %v1079_v34  ;;  %1050 = vmatprep.subr.bf16.mxu0 %v1049_v35  ;;  %v874_v9 = vsel %vm165_vm11, 1.0, %v1285_v60  ;;  %v212_v10 = vmul.f32 %v211_v1, %v1451_v52  ;;  %v217_v11 = vmul.f32 %v216_v2, %v1456_v54  ;;  %v288_v12 = vmul.f32 %v287_v3, %v97_v50  ;;  %v1534_v3 = vld [vmem:[#allocation8 + $0x18] sm:$0xff] }
  0x68   :  { %1082 = vmatprep.subr.bf16.mxu1 %v1081_v36  ;;  %v249_v13 = vsub.f32 1.0, %v207_v5  ;;  %v252_v14 = vmul.f32 %v872_v0, %v207_v5  ;;  %v293_v15 = vmul.f32 %v292_v7, %v1448_v51  ;;  %v297_v16 = vrot.slane %v1472_v59, %v1424_v39 }
  0x69   :  { %v253_v20 = vsub.f32 1.0, %v212_v10  ;;  %v256_v21 = vmul.f32 %v873_v4, %v212_v10  ;;  %v257_v22 = vsub.f32 1.0, %v217_v11  ;;  %v364_v23 = vrot.slane %v1495_v8, %v1403_v26 }
  0x6a   :  { %1052 = vmatpush3.bf16.msra.mxu0 %v1051_v40  ;;  %v250_v27 = vmul.f32 %v872_v0, %v249_v13  ;;  %v298_v28 = vmul.f32 %v297_v16, %v1451_v52  ;;  %v330_v29 = vsub.f32 1.0, %v293_v15  ;;  %v369_v30 = vrot.slane %v1495_v8, %v1465_v57  ;;  %v524_v16 = vld [vmem:[#allocation9 + $0x280] sm:$0xff] }
  0x6b   :  { %1084 = vmatpush3.bf16.msra.mxu1 %v1083_v44  ;;  %v254_v31 = vmul.f32 %v873_v4, %v253_v20  ;;  %v258_v32 = vmul.f32 %v874_v9, %v257_v22  ;;  %v365_v33 = vmul.f32 %v364_v23, %v97_v50  ;;  %v121_v34 = vrot.slane %v1421_v38, %v1424_v39  ;;  %v525_v20 = vld [vmem:[#allocation9 + $0x288] sm:$0xff] }
  0x6c   :  { %v251_v35 = vadd.f32 %v250_v27, %v248_v6  ;;  %v334_v36 = vsub.f32 1.0, %v298_v28  ;;  %v1511_v37 = vmul.f32 %v369_v30, %v1448_v51  ;;  %vm168_vm12 = vcmp.ge.f32.partialorder %v1459_v55, 0.0 }
  0x6d   :  { %v255_v40 = vadd.f32 %v254_v31, %v252_v14  ;;  %v259_v41 = vadd.f32 %v258_v32, %v256_v21  ;;  %v1515_v42 = vsub.f32 %v1438_v46, %v121_v34  ;;  %vm174_vm13 = vcmp.lt.f32.partialorder %v1462_v56, 0.0  ;;  %v556_v32 = vld [vmem:[#allocation9 + $0x380] sm:$0xff] }
  0x6e   :  { %v329_v43 = vmul.f32 %v288_v12, %v251_v35  ;;  %v402_v44 = vsub.f32 1.0, %v1511_v37  ;;  %v221_v47 = vrot.slane %v1436_v45, %v1400_v25  ;;  %v226_v48 = vrot.slane %v1436_v45, %v1424_v39 }
  0x6f   :  { %v331_v49 = vmul.f32 %v330_v29, %v255_v40  ;;  %v333_v50 = vmul.f32 %v293_v15, %v255_v40  ;;  %v335_v51 = vmul.f32 %v334_v36, %v259_v41  ;;  %vm169_vm14 = vcmp.lt.f32.partialorder %v1515_v42, 0.0 }
  0x70   :  { %vm170_vm15 = vmand %vm168_vm12, %vm169_vm14  ;;  %vm173_vm0 = vcmp.ge.f32.partialorder %v1515_v42, 0.0  ;;  %v222_v53 = vmul.f32 %v221_v47, %v1459_v55  ;;  %v1527_v61 = vmul.f32 %v226_v48, %v1515_v42  ;;  %v260_v62 = vmul.f32 %v874_v9, %v217_v11 }
  0x71   :  { %v332_v63 = vadd.f32 %v331_v49, %v329_v43  ;;  %v336_v0 = vadd.f32 %v335_v51, %v333_v50  ;;  %v875_v1 = vsel %vm170_vm15, 1.0, %v1285_v60  ;;  %vm175_vm1 = vmand %vm173_vm0, %vm174_vm13  ;;  %v302_v2 = vrot.slane %v1472_v59, %v1403_v26  ;;  %v540_v50 = vld [vmem:[#allocation9 + $0x300] sm:$0xff]  ;;  %v541_v51 = vld [vmem:[#allocation9 + $0x308] sm:$0xff] }
  0x72   :  { %v1537_v4 = vsel %vm175_vm1, 1.0, %v1285_v60  ;;  %v261_v5 = vsub.f32 1.0, %v222_v53  ;;  %v264_v6 = vmul.f32 %v875_v1, %v222_v53  ;;  %v265_v7 = vsub.f32 1.0, %v1527_v61 }
  0x73   :  { %v401_v9 = vmul.f32 %v365_v33, %v332_v63  ;;  %v403_v10 = vmul.f32 %v402_v44, %v336_v0  ;;  %v303_v11 = vmul.f32 %v302_v2, %v1456_v54  ;;  %v307_v14 = vrot.slane %v1472_v59, %v1465_v57  ;;  %v1570_v63 = vld [vmem:[#allocation9 + $0x298] sm:$0xff]  ;;  %v558_v2 = vld [vmem:[#allocation9 + $0x390] sm:$0xff] }
  0x74   :  { %v262_v12 = vmul.f32 %v875_v1, %v261_v5  ;;  %v266_v13 = vmul.f32 %v1537_v4, %v265_v7  ;;  %v337_v15 = vmul.f32 %v298_v28, %v259_v41  ;;  %v374_v23 = vrot.slane %v1534_v3, %v1382_v17  ;;  %v557_v28 = vld [vmem:[#allocation9 + $0x388] sm:$0xff]  ;;  %v1572_v1 = vld [vmem:[#allocation9 + $0x210] sm:$0xff]  ;;  %v559_v5 = vld [vmem:[#allocation9 + $0x398] sm:$0xff] }
  0x75   :  { %v404_v21 = vadd.f32 %v403_v10, %v401_v9  ;;  %v338_v22 = vsub.f32 1.0, %v303_v11  ;;  %v379_v27 = vrot.slane %v1534_v3, %v1385_v18  ;;  %v1551_v31 = vmul.f32 %v307_v14, %v1459_v55  ;;  %v1578_v10 = vld [vmem:[#allocation9 + $0x310] sm:$0xff]  ;;  %v1590_v14 = vld [vmem:[#allocation9 + $0x3a0] sm:$0xff] }
  0x76   :  { %v263_v29 = vadd.f32 %v262_v12, %v260_v62  ;;  %v1548_v30 = vadd.f32 %v266_v13, %v264_v6  ;;  %1157 = vpow2.f32 %v1470_v58  ;;  %v375_v33 = vmul.f32 %v374_v23, %v1451_v52  ;;  %v1563_v52 = vld [vmem:[#allocation9 + $0x200] sm:$0xff]  ;;  %v1568_v62 = vld [vmem:[#allocation9 + $0x290] sm:$0xff]  ;;  %v1588_v13 = vld [vmem:[#allocation9 + $0x228] sm:$0xff] }
  0x77   :  { %636 = vmatprep.mubr.f32.mxu0 %v404_v21  ;;  %v1556_v34 = vmul.f32 %v379_v27, %v1456_v54  ;;  %v1085_v35 = vpack.c.bf16 %v525_v20, %v524_v16  ;;  %v342_v41 = vsub.f32 1.0, %v1551_v31  ;;  %v1117_v44 = vpack.c.bf16 %v557_v28, %v556_v32  ;;  %v1565_v54 = vld [vmem:[#allocation9 + $0x208] sm:$0xff]  ;;  %v1586_v12 = vld [vmem:[#allocation9 + $0x220] sm:$0xff]  ;;  %v1602_v23 = vld [vmem:[#allocation9 + $0x3b0] sm:$0xff] }
  0x78   :  { %v339_v36 = vmul.f32 %v338_v22, %v263_v29  ;;  %v341_v40 = vmul.f32 %v303_v11, %v263_v29  ;;  %v406_v43 = vsub.f32 1.0, %v375_v33  ;;  %v131_v47 = vrot.slane %v1421_v38, %v1465_v57  ;;  %v1574_v38 = vld [vmem:[#allocation9 + $0x218] sm:$0xff]  ;;  %v1594_v16 = vld [vmem:[#allocation9 + $0x320] sm:$0xff]  ;;  %v1596_v20 = vld [vmem:[#allocation9 + $0x328] sm:$0xff] }
  0x79   :  { %1086 = vmatprep.subr.bf16.mxu0 %v1085_v35  ;;  %v343_v48 = vmul.f32 %v342_v41, %v1548_v30  ;;  %v410_v49 = vsub.f32 1.0, %v1556_v34  ;;  %v405_v53 = vmul.f32 %v1511_v37, %v336_v0  ;;  %1118 = vmatprep.subr.bf16.mxu1 %v1117_v44  ;;  %v1580_v11 = vld [vmem:[#allocation9 + $0x318] sm:$0xff]  ;;  %v1582_v37 = vld [vmem:[#allocation9 + $0x2a0] sm:$0xff]  ;;  %v1584_v0 = vld [vmem:[#allocation9 + $0x2a8] sm:$0xff]  ;;  %v1610_v32 = vmul.f32 %v1537_v4, %v1527_v61 }
  0x7a   :  { %v340_v58 = vadd.f32 %v339_v36, %v337_v15  ;;  %v1592_v15 = vld [vmem:[#allocation9 + $0x3a8] sm:$0xff]  ;;  %v1599_v21 = vsub.f32 %v1438_v46, %v131_v47  ;;  %v1604_v27 = vld [vmem:[#allocation9 + $0x3b8] sm:$0xff]  ;;  %v1606_v29 = vld [vmem:[#allocation9 + $0x330] sm:$0xff]  ;;  %v1119_v35 = vpack.c.bf16 %v541_v51, %v540_v50  ;;  %v1121_v4 = vpack.c.bf16 %v559_v5, %v558_v2 }
  0x7b   :  { %v1576_v6 = vadd.f32 %v343_v48, %v341_v40  ;;  %v1614_v36 = vld [vmem:[#allocation9 + $0x338] sm:$0xff]  ;;  %v1616_v40 = vld [vmem:[#allocation9 + $0x3c0] sm:$0xff]  ;;  %v1618_v41 = vld [vmem:[#allocation9 + $0x3c8] sm:$0xff]  ;;  %v1123_v51 = vpack.c.bf16 %v1580_v11, %v1578_v10  ;;  %v1125_v2 = vpack.c.bf16 %v1592_v15, %v1590_v14  ;;  %v1127_v5 = vpack.c.bf16 %v1596_v20, %v1594_v16 }
  0x7c   :  { %v409_v7 = vmul.f32 %v375_v33, %v340_v58  ;;  %v407_v9 = vmul.f32 %v406_v43, %v340_v58  ;;  %v1624_v58 = vld [vmem:[#allocation9 + $0x340] sm:$0xff]  ;;  %v1626_v48 = vld [vmem:[#allocation9 + $0x348] sm:$0xff]  ;;  %v1650_v14 = vld [vmem:[#allocation9 + $0x3d8] sm:$0xff]  ;;  %vm178_vm2 = vcmp.ge.f32.partialorder %v1462_v56, 0.0  ;;  %vm179_vm3 = vcmp.lt.f32.partialorder %v1599_v21, 0.0 }
  0x7d   :  { %v411_v22 = vmul.f32 %v410_v49, %v1576_v6  ;;  %v1628_v49 = vld [vmem:[#allocation6 + $0x8] sm:$0x7]  ;;  %vm183_vm4 = vcmp.ge.f32.partialorder %v1599_v21, 0.0  ;;  %v231_v16 = vrot.slane %v1436_v45, %v1403_v26  ;;  %vm180_vm5 = vmand %vm178_vm2, %vm179_vm3 }
  0x7e   :  { %v408_v28 = vadd.f32 %v407_v9, %v405_v53  ;;  %v1129_v9 = vpack.c.bf16 %v1604_v27, %v1602_v23  ;;  %v136_v15 = vrot.slane %v1628_v49, %v1382_v17  ;;  %v236_v23 = vrot.slane %v1436_v45, %v1465_v57 }
  0x7f   :  { %v412_v44 = vadd.f32 %v411_v22, %v409_v7  ;;  %v1131_v22 = vpack.c.bf16 %v1614_v36, %v1606_v29  ;;  %v312_v27 = vrot.slane %v1495_v8, %v1382_v17  ;;  %v232_v26 = vmul.f32 %v231_v16, %v1462_v56 }
  0x80   :  { %v1158_v43 = vpop.eup %1157  ;;  %v1660_v20 = vsub.f32 %v1438_v46, %v136_v15  ;;  %v237_v45 = vmul.f32 %v236_v23, %v1599_v21  ;;  %v345_v16 = vmul.f32 %v1551_v31, %v1548_v30  ;;  %v389_v53 = vrot.slane %v1534_v3, %v1397_v24 }
  0x81   :  { %v85_v50 = vadd.f32 1.0, %v1158_v43  ;;  %706 = vmatprep.mubr.f32.mxu1 %v412_v44  ;;  %v1648_v43 = vld [vmem:[#allocation9 + $0x3d0] sm:$0xff]  ;;  %v877_v44 = vsel %vm180_vm5, 1.0, %v1285_v60  ;;  %v313_v57 = vmul.f32 %v312_v27, %v1515_v42  ;;  %v269_v15 = vsub.f32 1.0, %v232_v26 }
  0x82   :  { %707 = vmatmul.mubr.f32.vlgmr.msra.gmra.mrb[0].mxu1 %v408_v28  ;;  %v317_v28 = vrot.slane %v1495_v8, %v1385_v18  ;;  %vm184_vm6 = vcmp.lt.f32.partialorder %v1660_v20, 0.0  ;;  %v272_v7 = vmul.f32 %v877_v44, %v232_v26  ;;  %v1692_v11 = vmul.f32 %v389_v53, %v1515_v42 }
  0x83   :  { %1159 = vrcp.f32 %v85_v50  ;;  %1120 = vmatpush3.bf16.msra.mxu1 %v1119_v35  ;;  %vm185_vm7 = vmand %vm183_vm4, %vm184_vm6  ;;  %v273_v35 = vsub.f32 1.0, %v237_v45  ;;  %v346_v27 = vsub.f32 1.0, %v313_v57  ;;  %v141_v30 = vrot.slane %v1628_v49, %v1385_v18 }
  0x84   :  { %1122 = vmatprep.subr.bf16.mxu1 %v1121_v4  ;;  %v384_v4 = vrot.slane %v1534_v3, %v1388_v19  ;;  %v1678_v50 = vmul.f32 %v317_v28, %v1462_v56  ;;  %v878_v23 = vsel %vm185_vm7, 1.0, %v1285_v60  ;;  %vm188_vm8 = vcmp.ge.f32.partialorder %v1660_v20, 0.0 }
  0x85   :  { %v274_v31 = vmul.f32 %v878_v23, %v273_v35  ;;  %v241_v26 = vrot.slane %v1472_v59, %v1382_v17  ;;  %v142_v42 = vsub.f32 %v1438_v46, %v141_v30  ;;  %v246_v53 = vrot.slane %v1472_v59, %v1385_v18  ;;  %v568_v59 = vld [vmem:[#allocation9 + $0x3e0] sm:$0xff] }
  0x86   :  { %v1688_v28 = vmul.f32 %v384_v4, %v1459_v55  ;;  %v350_v61 = vsub.f32 1.0, %v1678_v50  ;;  %v276_v47 = vmul.f32 %v878_v23, %v237_v45  ;;  %v1780_v23 = vpack.c.bf16 %v1618_v41, %v1616_v40 }
  0x87   :  { %1124 = vmatpush3.bf16.msra.mxu1 %v1123_v51  ;;  %v270_v51 = vmul.f32 %v877_v44, %v269_v15  ;;  %v418_v44 = vsub.f32 1.0, %v1692_v11  ;;  %v275_v35 = vadd.f32 %v274_v31, %v272_v7  ;;  %v242_v15 = vmul.f32 %v241_v26, %v1660_v20  ;;  %v569_v7 = vld [vmem:[#allocation9 + $0x3e8] sm:$0xff] }
  0x88   :  { %1126 = vmatprep.subr.bf16.mxu1 %v1125_v2  ;;  %v146_v2 = vrot.slane %v1628_v49, %v1388_v19  ;;  %vm189_vm9 = vcmp.lt.f32.partialorder %v142_v42, 0.0  ;;  %vm193_vm11 = vcmp.ge.f32.partialorder %v142_v42, 0.0  ;;  %v247_v18 = vmul.f32 %v246_v53, %v142_v42 }
  0x89   :  { %v271_v55 = vadd.f32 %v270_v51, %v1610_v32  ;;  %v550_v32 = vld [vmem:[#allocation9 + $0x350] sm:$0xff]  ;;  %v551_v51 = vld [vmem:[#allocation9 + $0x358] sm:$0xff]  ;;  %v351_v33 = vmul.f32 %v350_v61, %v275_v35  ;;  %vm190_vm10 = vmand %vm188_vm8, %vm189_vm9  ;;  %v277_v45 = vsub.f32 1.0, %v242_v15  ;;  %v322_v61 = vrot.slane %v1495_v8, %v1388_v19 }
  0x8a   :  { %v147_v49 = vsub.f32 %v1438_v46, %v146_v2  ;;  %v1139_v30 = vpack.c.bf16 %v551_v51, %v550_v32  ;;  %v531_v2 = vld [vmem:[#allocation9 + $0x2b8] sm:$0xff]  ;;  %v1141_v40 = vpack.c.bf16 %v569_v7, %v568_v59  ;;  %v1783_v42 = vpack.c.bf16 %v1574_v38, %v1572_v1  ;;  %v554_v59 = vld [vmem:[#allocation9 + $0x370] sm:$0xff] }
  0x8b   :  { %1128 = vmatpush3.bf16.msra.mxu1 %v1127_v5  ;;  %v347_v5 = vmul.f32 %v346_v27, %v271_v55  ;;  %v349_v10 = vmul.f32 %v313_v57, %v271_v55  ;;  %v1779_v57 = vpack.c.bf16 %v1565_v54, %v1563_v52  ;;  %v1781_v27 = vpack.c.bf16 %v1570_v63, %v1568_v62  ;;  %v530_v54 = vld [vmem:[#allocation9 + $0x2b0] sm:$0xff]  ;;  %v571_v1 = vld [vmem:[#allocation9 + $0x3f8] sm:$0xff] }
  0x8c   :  { %1130 = vmatprep.subr.bf16.mxu1 %v1129_v9  ;;  %vm194_vm12 = vcmp.lt.f32.partialorder %v147_v49, 0.0  ;;  %v879_v9 = vsel %vm190_vm10, 1.0, %v1285_v60  ;;  %v323_v52 = vmul.f32 %v322_v61, %v1599_v21  ;;  %v353_v63 = vmul.f32 %v1678_v50, %v275_v35  ;;  %v570_v35 = vld [vmem:[#allocation9 + $0x3f0] sm:$0xff] }
  0x8d   :  { %v1160_v4 = vpop.eup %1159  ;;  %vm195_vm13 = vmand %vm193_vm11, %vm194_vm12  ;;  %v352_v29 = vadd.f32 %v351_v33, %v349_v10  ;;  %v278_v31 = vmul.f32 %v879_v9, %v277_v45  ;;  %v1782_v10 = vpack.c.bf16 %v1626_v48, %v1624_v58  ;;  %v394_v55 = vrot.slane %v1534_v3, %v1400_v25  ;;  %v517_v45 = vld [vmem:[#allocation9 + $0x248] sm:$0xff] }
  0x8e   :  { %v88_v17 = vmul.f32 %v1160_v4, %v1438_v46  ;;  %v1714_v46 = vadd.f32 %v347_v5, %v345_v16  ;;  %v880_v36 = vsel %vm195_vm13, 1.0, %v1285_v60  ;;  %v281_v16 = vsub.f32 1.0, %v247_v18  ;;  %v515_v4 = vld [vmem:[#allocation9 + $0x238] sm:$0xff] }
  0x8f   :  { %1132 = vmatpush3.bf16.msra.mxu1 %v1131_v22  ;;  %v280_v22 = vmul.f32 %v879_v9, %v242_v15  ;;  %v419_v41 = vmul.f32 %v418_v44, %v352_v29  ;;  %v327_v60 = vrot.slane %v1495_v8, %v1397_v24  ;;  %v279_v62 = vadd.f32 %v278_v31, %v276_v47  ;;  %v514_v44 = vld [vmem:[#allocation9 + $0x230] sm:$0xff]  ;;  %v552_v24 = vld [vmem:[#allocation9 + $0x360] sm:$0xff]  ;;  %v553_v8 = vld [vmem:[#allocation9 + $0x368] sm:$0xff] }
  0x90   :  { %637 = vmatmul.mubr.f32.vlgmr.msra.gmra.mrb[0].mxu0 %v88_v17  ;;  %1134 = vmatprep.subr.bf16.mxu1 %v1780_v23  ;;  %v417_v19 = vmul.f32 %v1688_v28, %v1714_v46  ;;  %v282_v33 = vmul.f32 %v880_v36, %v281_v16  ;;  %v354_v26 = vsub.f32 1.0, %v323_v52  ;;  %v1784_v53 = vpack.c.bf16 %v1650_v14, %v1648_v43  ;;  %v532_v14 = vld [vmem:[#allocation9 + $0x2c0] sm:$0xff]  ;;  %v533_v15 = vld [vmem:[#allocation9 + $0x2c8] sm:$0xff]  ;;  %v535_v23 = vld [vmem:[#allocation9 + $0x2d8] sm:$0xff] }
  0x91   :  { %1088 = vmatpush3.bf16.msra.mxu0 %v1779_v57  ;;  %v328_v47 = vmul.f32 %v327_v60, %v1660_v20  ;;  %v1785_v50 = vpack.c.bf16 %v1584_v0, %v1582_v37  ;;  %v1097_v25 = vpack.c.bf16 %v531_v2, %v530_v54  ;;  %v395_v49 = vmul.f32 %v394_v55, %v1462_v56  ;;  %v516_v9 = vld [vmem:[#allocation9 + $0x240] sm:$0xff]  ;;  %v534_v57 = vld [vmem:[#allocation9 + $0x2d0] sm:$0xff]  ;;  %v519_v31 = vld [vmem:[#allocation9 + $0x258] sm:$0xff] }
  0x92   :  { %1090 = vmatprep.subr.bf16.mxu0 %v1781_v27  ;;  %v420_v58 = vadd.f32 %v419_v41, %v417_v19  ;;  %v283_v48 = vadd.f32 %v282_v33, %v280_v22  ;;  %v355_v38 = vmul.f32 %v354_v26, %v279_v62  ;;  %v399_v43 = vrot.slane %v1534_v3, %v1424_v39  ;;  %v555_v39 = vld [vmem:[#allocation9 + $0x378] sm:$0xff]  ;;  %v518_v19 = vld [vmem:[#allocation9 + $0x250] sm:$0xff]  ;;  %v537_v54 = vld [vmem:[#allocation9 + $0x2e8] sm:$0xff] }
  0x93   :  { %1136 = vmatpush3.bf16.msra.mxu1 %v1782_v10  ;;  %v357_v17 = vmul.f32 %v323_v52, %v279_v62  ;;  %v358_v5 = vsub.f32 1.0, %v328_v47  ;;  %v1143_v20 = vpack.c.bf16 %v553_v8, %v552_v24  ;;  %v422_v0 = vsub.f32 1.0, %v395_v49  ;;  %v536_v52 = vld [vmem:[#allocation9 + $0x2e0] sm:$0xff]  ;;  %v521_v33 = vld [vmem:[#allocation9 + $0x268] sm:$0xff]  ;;  %v538_v60 = vld [vmem:[#allocation9 + $0x2f0] sm:$0xff] }
  0x94   :  { %1138 = vmatprep.subr.bf16.mxu1 %v1784_v53  ;;  %776 = vmatprep.mubr.f32.mxu0 %v420_v58  ;;  %v356_v32 = vadd.f32 %v355_v38, %v353_v63  ;;  %v400_v37 = vmul.f32 %v399_v43, %v1599_v21  ;;  %v1786_v51 = vpack.c.bf16 %v1588_v13, %v1586_v12  ;;  %v539_v10 = vld [vmem:[#allocation9 + $0x2f8] sm:$0xff]  ;;  %v414_v62 = vsub.f32 1.0, %v1688_v28  ;;  %v522_v55 = vld [vmem:[#allocation9 + $0x270] sm:$0xff] }
  0x95   :  { %1092 = vmatpush3.bf16.msra.mxu0 %v1783_v42  ;;  %v1099_v18 = vpack.c.bf16 %v515_v4, %v514_v44  ;;  %v1145_v56 = vpack.c.bf16 %v571_v1, %v570_v35  ;;  %v359_v3 = vmul.f32 %v358_v5, %v283_v48  ;;  %v1101_v7 = vpack.c.bf16 %v533_v15, %v532_v14  ;;  %v523_v42 = vld [vmem:[#allocation9 + $0x278] sm:$0xff] }
  0x96   :  { %1094 = vmatprep.subr.bf16.mxu0 %v1785_v50  ;;  %v426_v61 = vsub.f32 1.0, %v400_v37  ;;  %v425_v21 = vmul.f32 %v395_v49, %v356_v32  ;;  %v421_v22 = vmul.f32 %v1692_v11, %v352_v29  ;;  %v423_v16 = vmul.f32 %v422_v0, %v356_v32  ;;  %v520_v29 = vld [vmem:[#allocation9 + $0x260] sm:$0xff] }
  0x97   :  { %1140 = vmatpush3.bf16.msra.mxu1 %v1139_v30  ;;  %v360_v36 = vadd.f32 %v359_v3, %v357_v17  ;;  %v1147_v12 = vpack.c.bf16 %v555_v39, %v554_v59  ;;  %v1103_v13 = vpack.c.bf16 %v517_v45, %v516_v9  ;;  %v1105_v30 = vpack.c.bf16 %v535_v23, %v534_v57 }
  0x98   :  { %1142 = vmatprep.subr.bf16.mxu1 %v1141_v40  ;;  %v424_v40 = vadd.f32 %v423_v16, %v421_v22  ;;  %v1107_v41 = vpack.c.bf16 %v519_v31, %v518_v19  ;;  %v1109_v11 = vpack.c.bf16 %v537_v54, %v536_v52  ;;  %v1111_v63 = vpack.c.bf16 %v521_v33, %v520_v29 }
  0x99   :  { %1096 = vmatpush3.bf16.msra.mxu0 %v1786_v51  ;;  %v427_v27 = vmul.f32 %v426_v61, %v360_v36  ;;  %v1113_v26 = vpack.c.bf16 %v539_v10, %v538_v60  ;;  %v413_v44 = vmul.f32 %v1556_v34, %v1576_v6  ;;  %v415_v53 = vmul.f32 %v414_v62, %v1714_v46 }
  0x9a   :  { %1098 = vmatprep.subr.bf16.mxu0 %v1097_v25  ;;  %v1115_v24 = vpack.c.bf16 %v523_v42, %v522_v55 }
  0x9b   :  { %1144 = vmatpush3.bf16.msra.mxu1 %v1143_v20  ;;  %v428_v2 = vadd.f32 %v427_v27, %v425_v21  ;;  %v416_v8 = vadd.f32 %v415_v53, %v413_v44 }
  0x9c   :  { %1146 = vmatprep.subr.bf16.mxu1 %v1145_v56 }
  0x9d   :  { %1100 = vmatpush3.bf16.msra.mxu0 %v1099_v18  ;;  %846 = vmatprep.mubr.f32.mxu1 %v428_v2 }
  0x9e   :  { %1102 = vmatprep.subr.bf16.mxu0 %v1101_v7 }
  0x9f   :  { %1148 = vmatpush3.bf16.msra.mxu1 %v1147_v12 }
  0xa1   :  { %1104 = vmatpush3.bf16.msra.mxu0 %v1103_v13 }
  0xa2   :  { %1106 = vmatprep.subr.bf16.mxu0 %v1105_v30  ;;  %847 = vmatmul.mubr.f32.vlgmr.msra.gmra.mrb[2].mxu1 %v424_v40 }
  0xa5   :  { %1108 = vmatpush3.bf16.msra.mxu0 %v1107_v41 }
  0xa6   :  { %1110 = vmatprep.subr.bf16.mxu0 %v1109_v11 }
  0xa9   :  { %1112 = vmatpush3.bf16.msra.mxu0 %v1111_v63 }
  0xaa   :  { %1114 = vmatprep.subr.bf16.mxu0 %v1113_v26 }
  0xad   :  { %1116 = vmatpush3.bf16.msra.mxu0 %v1115_v24 }
  0xb0   :  { %777 = vmatmul.mubr.f32.vlgmr.msra.gmra.mrb[2].mxu0 %v416_v8 }
 0x155   :  { %v948_v58 = vpop.f32.mrb[0].mxu1 }
 0x156   :  { %v949_v48 = vpop.f32.mrb[1].mxu1 }
 0x157   :  { %v950_v28 = vadd.f32 %v949_v48, %v948_v58 }
 0x163   :  { %v913_v47 = vpop.f32.mrb[0].mxu0 }
 0x164   :  { %v914_v50 = vpop.f32.mrb[1].mxu0 }
 0x165   :  { %v915_v25 = vadd.f32 %v914_v50, %v913_v47 }
 0x167   :  { %v709_v4 = vadd.f32 %v950_v28, %v915_v25 }
 0x175   :  { %v1018_v35 = vpop.f32.mrb[2].mxu1 }
 0x176   :  { %v1019_v1 = vpop.f32.mrb[3].mxu1 }
 0x177   :  { %v1020_v38 = vadd.f32 %v1019_v1, %v1018_v35 }
 0x183   :  { %v983_v49 = vpop.f32.mrb[2].mxu0 }
 0x184   :  { %v984_v34 = vpop.f32.mrb[3].mxu0 }
 0x185   :  { %v985_v6 = vadd.f32 %v984_v34, %v983_v49 }
 0x187   :  { %v779_v46 = vadd.f32 %v985_v6, %v709_v4 }
 0x189   :  { %v849_v43 = vadd.f32 %v1020_v38, %v779_v46 }
 0x18b   :  { %852 = vst [vmem:[#allocation11] sm:$0xff] %v849_v43 }
 0x18c   :  { %1260 = shalt.err (!%p1257_p8)
}
 0x18d   :  { %s1261_s1 = scalar_lea.hbm %s1778_s4, 128 }
 0x18e   :  { %p1262_p9 = scmp.ne.s32.totalorder %s1778_s4, %s1261_s1  ;;  %p1265_p10 = scmp.lt.u32.totalorder %s1261_s1, %s1778_s4 }
 0x190   :  { %p1267_p11 = pnand %p1265_p10, %p1262_p9 }
 0x192   :  { %1270 = shalt.err (!%p1267_p11)
}
 0x193   :  { %862 = dma.vmem_to_hbm [thread:$0]  %s860_s25, 128, %s1778_s4, [#allocation5]  }
 0x194   :  { %1277 = dma.done.wait [#allocation5], 128  }
 0x195   :  { %1278 = vsyncadd [#allocation5], 4294967168 }
 0x196   :  { %866 = vsyncpa [#allocation4], 1 }
 0x197   :  { %867 = vsyncpa [#allocation7], 1 }
 0x198   :  { %868 = vsyncpa [#allocation10], 1 }
 0x199   :  { %869 = vsyncpa [#allocation5], 1 }

</bundles_post_ra>
